<compile_context>
chip_gen: v6e
topology: v6e:2x2x1
jax: 0.10.0
libtpu: 0.0.40
codegen_flags: <defaults>
</compile_context>

<pallas_src>
import numpy as np
import jax
import jax.numpy as jnp
from jax.experimental import pallas as pl
from jax.experimental.pallas import tpu as pltpu

FEATURE_DIM = 5


def _derive_vmem_limit():
    try:
        cap = int(pltpu.get_tpu_info().vmem_capacity_bytes)
        return max(32 * 1024 * 1024, min(100 * 1024 * 1024, (cap * 3) // 4))
    except Exception:
        return 32 * 1024 * 1024


_VMEM_LIMIT = _derive_vmem_limit()


# ----------------------------------------------------------------------------
# Conv2d(3x3, pad=1) + ReLU + MaxPool2d(2,2), fused, in-VMEM im2col
# ----------------------------------------------------------------------------
def conv_relu_pool(x_pad, w_gemm, bias, out_dtype=jnp.bfloat16):
    """x_pad : (B, H+2, W+2, Cin) bf16  zero-padded NHWC activations
       w_gemm: (9*Cin, Cout)      bf16  conv weight rows ordered (ky, kx, cin)
       bias  : (1, Cout)          f32
       returns (B, H//2, W//2, Cout) NHWC in out_dtype."""
    b, hp, wp, cin = x_pad.shape
    h, w = hp - 2, wp - 2
    assert h % 2 == 0 and w % 2 == 0
    ho, wo = h // 2, w // 2
    k, n = w_gemm.shape
    assert k == 9 * cin

    def kernel(x_ref, w_ref, b_ref, o_ref):
        x = x_ref[...]                                        # (1, H+2, W+2, Cin)
        # In-VMEM im2col: 9 shifted views, columns ordered (ky, kx, cin) to
        # match the packed weight rows.  No HBM im2col is ever materialized.
        taps = [x[:, ky:ky + h, kx:kx + w, :]
                for ky in range(3) for kx in range(3)]
        a = jnp.concatenate(taps, axis=-1).reshape(h * w, k)  # (H*W, 9*Cin)
        r = jnp.dot(a, w_ref[...], preferred_element_type=jnp.float32)
        # 2x2 max-pool; bias + ReLU deferred past the max (both monotone).
        r = r.reshape(ho, 2, wo, 2, n)
        r = jnp.max(jnp.max(r, axis=3), axis=1)               # (Ho, Wo, Cout)
        r = jnp.maximum(r + b_ref[...], 0.0)
        o_ref[...] = r.reshape(1, ho, wo, n).astype(o_ref.dtype)

    return pl.pallas_call(
        kernel,
        out_shape=jax.ShapeDtypeStruct((b, ho, wo, n), out_dtype),
        grid=(b,),
        in_specs=[
            pl.BlockSpec((1, hp, wp, cin), lambda i: (i, 0, 0, 0)),
            pl.BlockSpec((k, n), lambda i: (0, 0)),      # resident weight
            pl.BlockSpec((1, n), lambda i: (0, 0)),      # resident bias
        ],
        out_specs=pl.BlockSpec((1, ho, wo, n), lambda i: (i, 0, 0, 0)),
        compiler_params=pltpu.CompilerParams(
            dimension_semantics=("parallel",),
            vmem_limit_bytes=_VMEM_LIMIT),
    )(x_pad, w_gemm, bias)


# ----------------------------------------------------------------------------
# fc_layers: Linear(n_flatten, 128) -> ReLU -> Linear(128, Npad)
# ----------------------------------------------------------------------------
def mlp(x, w1, b1, w2, b2, bt=8):
    bsz, kdim = x.shape
    hid = w1.shape[1]
    npad = w2.shape[1]
    bp = ((bsz + bt - 1) // bt) * bt          # pad batch -> robust tiling
    if bp != bsz:
        x = jnp.pad(x, ((0, bp - bsz), (0, 0)))

    def kernel(x_ref, w1_ref, b1_ref, w2_ref, b2_ref, o_ref):
        hcur = jnp.dot(x_ref[...], w1_ref[...], preferred_element_type=jnp.float32)
        hcur = jnp.maximum(hcur + b1_ref[...], 0.0).astype(w2_ref.dtype)
        o = jnp.dot(hcur, w2_ref[...], preferred_element_type=jnp.float32)
        o_ref[...] = (o + b2_ref[...]).astype(o_ref.dtype)

    out = pl.pallas_call(
        kernel,
        out_shape=jax.ShapeDtypeStruct((bp, npad), jnp.float32),
        grid=(bp // bt,),
        in_specs=[
            pl.BlockSpec((bt, kdim), lambda i: (i, 0)),
            pl.BlockSpec((kdim, hid), lambda i: (0, 0)),   # fc1 weight resident
            pl.BlockSpec((1, hid), lambda i: (0, 0)),
            pl.BlockSpec((hid, npad), lambda i: (0, 0)),   # fc2 weight resident
            pl.BlockSpec((1, npad), lambda i: (0, 0)),
        ],
        out_specs=pl.BlockSpec((bt, npad), lambda i: (i, 0)),
        compiler_params=pltpu.CompilerParams(
            dimension_semantics=("parallel",),
            vmem_limit_bytes=_VMEM_LIMIT),
    )(x, w1, b1, w2, b2)
    return out[:bsz]


# ----------------------------------------------------------------------------
# One-time weight repack (call OUTSIDE the jitted forward)
# ----------------------------------------------------------------------------
def pack_params(params, h, w):
    w1c, b1c, w2c, b2c, wf1, bf1, wf2, bf2 = params
    c1, cin = w1c.shape[0], w1c.shape[1]
    c2 = w2c.shape[0]
    hid, n_flat = wf1.shape
    n_out = wf2.shape[0]
    h2, w2_ = h // 4, w // 4
    assert n_flat == c2 * h2 * w2_
    cdt = jnp.bfloat16
    # Conv weights: OIHW -> (ky, kx, cin) x cout GEMM form.
    w1g = jnp.transpose(w1c, (2, 3, 1, 0)).reshape(9 * cin, c1).astype(cdt)
    w2g = jnp.transpose(w2c, (2, 3, 1, 0)).reshape(9 * c1, c2).astype(cdt)
    # fc1 columns permuted from PyTorch's NCHW flatten order to NHWC order.
    w1m = jnp.transpose(wf1.reshape(hid, c2, h2, w2_),
                        (2, 3, 1, 0)).reshape(h2 * w2_ * c2, hid).astype(cdt)
    # Tiny final Linear padded to 128 lanes for unmasked, lane-dense stores.
    npad = max(128, ((n_out + 127) // 128) * 128)
    w2m = jnp.zeros((hid, npad), cdt).at[:, :n_out].set(wf2.T.astype(cdt))
    b2m = jnp.zeros((1, npad), jnp.float32).at[0, :n_out].set(
        bf2.astype(jnp.float32))
    return dict(
        w1g=w1g, b1g=b1c.reshape(1, c1).astype(jnp.float32),
        w2g=w2g, b2g=b2c.reshape(1, c2).astype(jnp.float32),
        w1m=w1m, b1m=bf1.reshape(1, hid).astype(jnp.float32),
        w2m=w2m, b2m=b2m)


# ----------------------------------------------------------------------------
# Full forward pass (conv_layers + flatten + fc_layers)
# ----------------------------------------------------------------------------
def qnetwork_forward(x_nchw, packed):
    b, cin, h, w = x_nchw.shape
    assert h % 4 == 0 and w % 4 == 0
    c2 = packed["w2g"].shape[1]
    h2, w2 = h // 4, w // 4
    # NCHW f32 -> NHWC bf16 once at the input; everything downstream is NHWC.
    x = jnp.transpose(x_nchw, (0, 2, 3, 1)).astype(jnp.bfloat16)
    xp = jnp.pad(x, ((0, 0), (1, 1), (1, 1), (0, 0)))
    y1 = conv_relu_pool(xp, packed["w1g"], packed["b1g"])      # (B, H/2, W/2, 16)
    y1p = jnp.pad(y1, ((0, 0), (1, 1), (1, 1), (0, 0)))
    y2 = conv_relu_pool(y1p, packed["w2g"], packed["b2g"])     # (B, H/4, W/4, 32)
    xf = y2.reshape(b, h2 * w2 * c2)
    out = mlp(xf, packed["w1m"], packed["b1m"], packed["w2m"], packed["b2m"])
    return out[:, :FEATURE_DIM]


# ----------------------------------------------------------------------------
# Pure-JAX f32 reference (mirrors the PyTorch module) for validation
# ----------------------------------------------------------------------------
def reference_forward(x, params):
    w1c, b1c, w2c, b2c, wf1, bf1, wf2, bf2 = params
    hp = jax.lax.Precision.HIGHEST

    def conv(x, w, bb):
        y = jax.lax.conv_general_dilated(
            x, w, window_strides=(1, 1), padding=((1, 1), (1, 1)),
            dimension_numbers=("NCHW", "OIHW", "NCHW"), precision=hp)
        return y + bb[None, :, None, None]

    def pool(x):
        return jax.lax.reduce_window(x, -jnp.inf, jax.lax.max,
                                     (1, 1, 2, 2), (1, 1, 2, 2), "VALID")

    y = pool(jax.nn.relu(conv(x, w1c, b1c)))
    y = pool(jax.nn.relu(conv(y, w2c, b2c)))
    y = y.reshape(y.shape[0], -1)
    y = jax.nn.relu(jnp.dot(y, wf1.T, precision=hp) + bf1)
    return jnp.dot(y, wf2.T, precision=hp) + bf2


if __name__ == "__main__":
    # Small shapes consistent with the module: 3 input channels, 16x16 spatial
    # (instead of 96x96), batch of 2.
    B, C, H, W = 2, 3, 16, 16
    n_flatten = 32 * (H // 4) * (W // 4)       # nn.Flatten() output size

    key = jax.random.PRNGKey(0)
    ks = jax.random.split(key, 9)
    x = jax.random.uniform(ks[0], (B, C, H, W), jnp.float32)

    # Deterministic parameters (PyTorch layouts: conv OIHW, linear (out, in)).
    w1c = jax.random.normal(ks[1], (16, C, 3, 3), jnp.float32) * 0.2
    b1c = jax.random.normal(ks[2], (16,), jnp.float32) * 0.1
    w2c = jax.random.normal(ks[3], (32, 16, 3, 3), jnp.float32) * 0.2
    b2c = jax.random.normal(ks[4], (32,), jnp.float32) * 0.1
    wf1 = jax.random.normal(ks[5], (128, n_flatten), jnp.float32) * 0.1
    bf1 = jax.random.normal(ks[6], (128,), jnp.float32) * 0.1
    wf2 = jax.random.normal(ks[7], (FEATURE_DIM, 128), jnp.float32) * 0.1
    bf2 = jax.random.normal(ks[8], (FEATURE_DIM,), jnp.float32) * 0.1
    params = (w1c, b1c, w2c, b2c, wf1, bf1, wf2, bf2)

    packed = jax.block_until_ready(pack_params(params, H, W))   # once, un-jitted

    out = jax.block_until_ready(jax.jit(qnetwork_forward)(x, packed))
    assert out.shape == (B, FEATURE_DIM)

    ref = jax.block_until_ready(reference_forward(x, params))
    # bf16 MXU operands with f32 accumulation -> loose tolerance (intentional).
    np.testing.assert_allclose(np.asarray(out), np.asarray(ref),
                               rtol=5e-2, atol=1e-1)
    print("KERNEL_OK")
</pallas_src>

<mosaic_0001>
module attributes {stable_mosaic.version = 11 : i64} {
  func.func @kernel(%arg0: i32, %arg1: memref<1x18x18x3xbf16, #tpu.memory_space<vmem>>, %arg2: memref<27x16xbf16, #tpu.memory_space<vmem>>, %arg3: memref<1x16xf32, #tpu.memory_space<vmem>>, %arg4: memref<1x8x8x16xbf16, #tpu.memory_space<vmem>>) attributes {dimension_semantics = [#tpu.dimension_semantics<parallel>], iteration_bounds = array<i64: 2>, scalar_prefetch = 0 : i64, scratch_operands = 0 : i64, tpu.core_type = #tpu.core_type<tc>, window_params = [{transform_indices = @transform_0, window_bounds = array<i64: 1, 18, 18, 3>}, {pipeline_mode = #tpu.pipeline_mode<synchronous>, transform_indices = @transform_1, window_bounds = array<i64: 27, 16>}, {pipeline_mode = #tpu.pipeline_mode<synchronous>, transform_indices = @transform_2, window_bounds = array<i64: 1, 16>}, {transform_indices = @transform_3, window_bounds = array<i64: 1, 8, 8, 16>}]} {
    %c0 = arith.constant 0 : index
    %c0_0 = arith.constant 0 : index
    %c0_1 = arith.constant 0 : index
    %c0_2 = arith.constant 0 : index
    %0 = vector.load %arg1[%c0, %c0_0, %c0_1, %c0_2] : memref<1x18x18x3xbf16, #tpu.memory_space<vmem>>, vector<1x18x18x3xbf16>
    %1 = vector.extract_strided_slice %0 {offsets = [0, 0, 0, 0], sizes = [1, 16, 16, 3], strides = [1, 1, 1, 1]} : vector<1x18x18x3xbf16> to vector<1x16x16x3xbf16>
    %2 = vector.extract_strided_slice %0 {offsets = [0, 0, 1, 0], sizes = [1, 16, 16, 3], strides = [1, 1, 1, 1]} : vector<1x18x18x3xbf16> to vector<1x16x16x3xbf16>
    %3 = vector.extract_strided_slice %0 {offsets = [0, 0, 2, 0], sizes = [1, 16, 16, 3], strides = [1, 1, 1, 1]} : vector<1x18x18x3xbf16> to vector<1x16x16x3xbf16>
    %4 = vector.extract_strided_slice %0 {offsets = [0, 1, 0, 0], sizes = [1, 16, 16, 3], strides = [1, 1, 1, 1]} : vector<1x18x18x3xbf16> to vector<1x16x16x3xbf16>
    %5 = vector.extract_strided_slice %0 {offsets = [0, 1, 1, 0], sizes = [1, 16, 16, 3], strides = [1, 1, 1, 1]} : vector<1x18x18x3xbf16> to vector<1x16x16x3xbf16>
    %6 = vector.extract_strided_slice %0 {offsets = [0, 1, 2, 0], sizes = [1, 16, 16, 3], strides = [1, 1, 1, 1]} : vector<1x18x18x3xbf16> to vector<1x16x16x3xbf16>
    %7 = vector.extract_strided_slice %0 {offsets = [0, 2, 0, 0], sizes = [1, 16, 16, 3], strides = [1, 1, 1, 1]} : vector<1x18x18x3xbf16> to vector<1x16x16x3xbf16>
    %8 = vector.extract_strided_slice %0 {offsets = [0, 2, 1, 0], sizes = [1, 16, 16, 3], strides = [1, 1, 1, 1]} : vector<1x18x18x3xbf16> to vector<1x16x16x3xbf16>
    %9 = vector.extract_strided_slice %0 {offsets = [0, 2, 2, 0], sizes = [1, 16, 16, 3], strides = [1, 1, 1, 1]} : vector<1x18x18x3xbf16> to vector<1x16x16x3xbf16>
    %10 = tpu.concatenate %1, %2, %3, %4, %5, %6, %7, %8, %9 in 3 : vector<1x16x16x3xbf16>, vector<1x16x16x3xbf16>, vector<1x16x16x3xbf16>, vector<1x16x16x3xbf16>, vector<1x16x16x3xbf16>, vector<1x16x16x3xbf16>, vector<1x16x16x3xbf16>, vector<1x16x16x3xbf16>, vector<1x16x16x3xbf16> -> vector<1x16x16x27xbf16>
    %11 = vector.shape_cast %10 : vector<1x16x16x27xbf16> to vector<256x27xbf16>
    %c0_3 = arith.constant 0 : index
    %c0_4 = arith.constant 0 : index
    %12 = vector.load %arg2[%c0_3, %c0_4] : memref<27x16xbf16, #tpu.memory_space<vmem>>, vector<27x16xbf16>
    %cst = arith.constant dense<0.000000e+00> : vector<256x16xf32>
    %13 = tpu.matmul %11, %12, %cst {dimension_numbers = #tpu.dot_dimension_numbers<[1], [0], [0], [1], [0, 0, 1, 1], [], []>} : vector<256x27xbf16>, vector<27x16xbf16>, vector<256x16xf32> -> vector<256x16xf32>
    %14 = vector.shape_cast %13 : vector<256x16xf32> to vector<8x2x8x2x16xf32>
    %cst_5 = arith.constant dense<0xFF800000> : vector<8x2x8x16xf32>
    %15 = vector.multi_reduction <maximumf>, %14, %cst_5 [3] : vector<8x2x8x2x16xf32> to vector<8x2x8x16xf32>
    %cst_6 = arith.constant dense<0xFF800000> : vector<8x8x16xf32>
    %16 = vector.multi_reduction <maximumf>, %15, %cst_6 [1] : vector<8x2x8x16xf32> to vector<8x8x16xf32>
    %c0_7 = arith.constant 0 : index
    %c0_8 = arith.constant 0 : index
    %17 = vector.load %arg3[%c0_7, %c0_8] : memref<1x16xf32, #tpu.memory_space<vmem>>, vector<1x16xf32>
    %18 = vector.shape_cast %17 : vector<1x16xf32> to vector<1x1x16xf32>
    %19 = vector.broadcast %18 : vector<1x1x16xf32> to vector<8x8x16xf32>
    %20 = arith.addf %16, %19 : vector<8x8x16xf32>
    %cst_9 = arith.constant 0.000000e+00 : f32
    %21 = vector.broadcast %cst_9 : f32 to vector<8x8x16xf32>
    %22 = arith.maximumf %20, %21 : vector<8x8x16xf32>
    %23 = vector.shape_cast %22 : vector<8x8x16xf32> to vector<1x8x8x16xf32>
    %24 = arith.truncf %23 : vector<1x8x8x16xf32> to vector<1x8x8x16xbf16>
    %c0_10 = arith.constant 0 : index
    %c0_11 = arith.constant 0 : index
    %c0_12 = arith.constant 0 : index
    %c0_13 = arith.constant 0 : index
    %25 = vector.load %arg4[%c0_10, %c0_11, %c0_12, %c0_13] : memref<1x8x8x16xbf16, #tpu.memory_space<vmem>>, vector<1x8x8x16xbf16>
    tpu.vector_store %arg4[%c0_10, %c0_11, %c0_12, %c0_13], %24 {strides = array<i32>} : memref<1x8x8x16xbf16, #tpu.memory_space<vmem>>, vector<1x8x8x16xbf16>,
    return
  }
  func.func @transform_0(%arg0: i32) -> (i32, i32, i32, i32) {
    %c0_i32 = arith.constant 0 : i32
    %c0_i32_0 = arith.constant 0 : i32
    %c0_i32_1 = arith.constant 0 : i32
    %c0_i32_2 = arith.constant 0 : i32
    return %arg0, %c0_i32, %c0_i32_0, %c0_i32_1 : i32, i32, i32, i32
  }
  func.func @transform_1(%arg0: i32) -> (i32, i32) {
    %c0_i32 = arith.constant 0 : i32
    %c0_i32_0 = arith.constant 0 : i32
    %c0_i32_1 = arith.constant 0 : i32
    return %c0_i32, %c0_i32_0 : i32, i32
  }
  func.func @transform_2(%arg0: i32) -> (i32, i32) {
    %c0_i32 = arith.constant 0 : i32
    %c0_i32_0 = arith.constant 0 : i32
    %c0_i32_1 = arith.constant 0 : i32
    return %c0_i32, %c0_i32_0 : i32, i32
  }
  func.func @transform_3(%arg0: i32) -> (i32, i32, i32, i32) {
    %c0_i32 = arith.constant 0 : i32
    %c0_i32_0 = arith.constant 0 : i32
    %c0_i32_1 = arith.constant 0 : i32
    %c0_i32_2 = arith.constant 0 : i32
    return %arg0, %c0_i32, %c0_i32_0, %c0_i32_1 : i32, i32, i32, i32
  }
}

module attributes {stable_mosaic.version = 11 : i64} {
  func.func @kernel(%arg0: i32, %arg1: memref<1x10x10x16xbf16, #tpu.memory_space<vmem>>, %arg2: memref<144x32xbf16, #tpu.memory_space<vmem>>, %arg3: memref<1x32xf32, #tpu.memory_space<vmem>>, %arg4: memref<1x4x4x32xbf16, #tpu.memory_space<vmem>>) attributes {dimension_semantics = [#tpu.dimension_semantics<parallel>], iteration_bounds = array<i64: 2>, scalar_prefetch = 0 : i64, scratch_operands = 0 : i64, tpu.core_type = #tpu.core_type<tc>, window_params = [{transform_indices = @transform_0, window_bounds = array<i64: 1, 10, 10, 16>}, {pipeline_mode = #tpu.pipeline_mode<synchronous>, transform_indices = @transform_1, window_bounds = array<i64: 144, 32>}, {pipeline_mode = #tpu.pipeline_mode<synchronous>, transform_indices = @transform_2, window_bounds = array<i64: 1, 32>}, {transform_indices = @transform_3, window_bounds = array<i64: 1, 4, 4, 32>}]} {
    %c0 = arith.constant 0 : index
    %c0_0 = arith.constant 0 : index
    %c0_1 = arith.constant 0 : index
    %c0_2 = arith.constant 0 : index
    %0 = vector.load %arg1[%c0, %c0_0, %c0_1, %c0_2] : memref<1x10x10x16xbf16, #tpu.memory_space<vmem>>, vector<1x10x10x16xbf16>
    %1 = vector.extract_strided_slice %0 {offsets = [0, 0, 0, 0], sizes = [1, 8, 8, 16], strides = [1, 1, 1, 1]} : vector<1x10x10x16xbf16> to vector<1x8x8x16xbf16>
    %2 = vector.extract_strided_slice %0 {offsets = [0, 0, 1, 0], sizes = [1, 8, 8, 16], strides = [1, 1, 1, 1]} : vector<1x10x10x16xbf16> to vector<1x8x8x16xbf16>
    %3 = vector.extract_strided_slice %0 {offsets = [0, 0, 2, 0], sizes = [1, 8, 8, 16], strides = [1, 1, 1, 1]} : vector<1x10x10x16xbf16> to vector<1x8x8x16xbf16>
    %4 = vector.extract_strided_slice %0 {offsets = [0, 1, 0, 0], sizes = [1, 8, 8, 16], strides = [1, 1, 1, 1]} : vector<1x10x10x16xbf16> to vector<1x8x8x16xbf16>
    %5 = vector.extract_strided_slice %0 {offsets = [0, 1, 1, 0], sizes = [1, 8, 8, 16], strides = [1, 1, 1, 1]} : vector<1x10x10x16xbf16> to vector<1x8x8x16xbf16>
    %6 = vector.extract_strided_slice %0 {offsets = [0, 1, 2, 0], sizes = [1, 8, 8, 16], strides = [1, 1, 1, 1]} : vector<1x10x10x16xbf16> to vector<1x8x8x16xbf16>
    %7 = vector.extract_strided_slice %0 {offsets = [0, 2, 0, 0], sizes = [1, 8, 8, 16], strides = [1, 1, 1, 1]} : vector<1x10x10x16xbf16> to vector<1x8x8x16xbf16>
    %8 = vector.extract_strided_slice %0 {offsets = [0, 2, 1, 0], sizes = [1, 8, 8, 16], strides = [1, 1, 1, 1]} : vector<1x10x10x16xbf16> to vector<1x8x8x16xbf16>
    %9 = vector.extract_strided_slice %0 {offsets = [0, 2, 2, 0], sizes = [1, 8, 8, 16], strides = [1, 1, 1, 1]} : vector<1x10x10x16xbf16> to vector<1x8x8x16xbf16>
    %10 = tpu.concatenate %1, %2, %3, %4, %5, %6, %7, %8, %9 in 3 : vector<1x8x8x16xbf16>, vector<1x8x8x16xbf16>, vector<1x8x8x16xbf16>, vector<1x8x8x16xbf16>, vector<1x8x8x16xbf16>, vector<1x8x8x16xbf16>, vector<1x8x8x16xbf16>, vector<1x8x8x16xbf16>, vector<1x8x8x16xbf16> -> vector<1x8x8x144xbf16>
    %11 = vector.shape_cast %10 : vector<1x8x8x144xbf16> to vector<64x144xbf16>
    %c0_3 = arith.constant 0 : index
    %c0_4 = arith.constant 0 : index
    %12 = vector.load %arg2[%c0_3, %c0_4] : memref<144x32xbf16, #tpu.memory_space<vmem>>, vector<144x32xbf16>
    %cst = arith.constant dense<0.000000e+00> : vector<64x32xf32>
    %13 = tpu.matmul %11, %12, %cst {dimension_numbers = #tpu.dot_dimension_numbers<[1], [0], [0], [1], [0, 0, 1, 1], [], []>} : vector<64x144xbf16>, vector<144x32xbf16>, vector<64x32xf32> -> vector<64x32xf32>
    %14 = vector.shape_cast %13 : vector<64x32xf32> to vector<4x2x4x2x32xf32>
    %cst_5 = arith.constant dense<0xFF800000> : vector<4x2x4x32xf32>
    %15 = vector.multi_reduction <maximumf>, %14, %cst_5 [3] : vector<4x2x4x2x32xf32> to vector<4x2x4x32xf32>
    %cst_6 = arith.constant dense<0xFF800000> : vector<4x4x32xf32>
    %16 = vector.multi_reduction <maximumf>, %15, %cst_6 [1] : vector<4x2x4x32xf32> to vector<4x4x32xf32>
    %c0_7 = arith.constant 0 : index
    %c0_8 = arith.constant 0 : index
    %17 = vector.load %arg3[%c0_7, %c0_8] : memref<1x32xf32, #tpu.memory_space<vmem>>, vector<1x32xf32>
    %18 = vector.shape_cast %17 : vector<1x32xf32> to vector<1x1x32xf32>
    %19 = vector.broadcast %18 : vector<1x1x32xf32> to vector<4x4x32xf32>
    %20 = arith.addf %16, %19 : vector<4x4x32xf32>
    %cst_9 = arith.constant 0.000000e+00 : f32
    %21 = vector.broadcast %cst_9 : f32 to vector<4x4x32xf32>
    %22 = arith.maximumf %20, %21 : vector<4x4x32xf32>
    %23 = vector.shape_cast %22 : vector<4x4x32xf32> to vector<1x4x4x32xf32>
    %24 = arith.truncf %23 : vector<1x4x4x32xf32> to vector<1x4x4x32xbf16>
    %c0_10 = arith.constant 0 : index
    %c0_11 = arith.constant 0 : index
    %c0_12 = arith.constant 0 : index
    %c0_13 = arith.constant 0 : index
    %25 = vector.load %arg4[%c0_10, %c0_11, %c0_12, %c0_13] : memref<1x4x4x32xbf16, #tpu.memory_space<vmem>>, vector<1x4x4x32xbf16>
    tpu.vector_store %arg4[%c0_10, %c0_11, %c0_12, %c0_13], %24 {strides = array<i32>} : memref<1x4x4x32xbf16, #tpu.memory_space<vmem>>, vector<1x4x4x32xbf16>,
    return
  }
  func.func @transform_0(%arg0: i32) -> (i32, i32, i32, i32) {
    %c0_i32 = arith.constant 0 : i32
    %c0_i32_0 = arith.constant 0 : i32
    %c0_i32_1 = arith.constant 0 : i32
    %c0_i32_2 = arith.constant 0 : i32
    return %arg0, %c0_i32, %c0_i32_0, %c0_i32_1 : i32, i32, i32, i32
  }
  func.func @transform_1(%arg0: i32) -> (i32, i32) {
    %c0_i32 = arith.constant 0 : i32
    %c0_i32_0 = arith.constant 0 : i32
    %c0_i32_1 = arith.constant 0 : i32
    return %c0_i32, %c0_i32_0 : i32, i32
  }
  func.func @transform_2(%arg0: i32) -> (i32, i32) {
    %c0_i32 = arith.constant 0 : i32
    %c0_i32_0 = arith.constant 0 : i32
    %c0_i32_1 = arith.constant 0 : i32
    return %c0_i32, %c0_i32_0 : i32, i32
  }
  func.func @transform_3(%arg0: i32) -> (i32, i32, i32, i32) {
    %c0_i32 = arith.constant 0 : i32
    %c0_i32_0 = arith.constant 0 : i32
    %c0_i32_1 = arith.constant 0 : i32
    %c0_i32_2 = arith.constant 0 : i32
    return %arg0, %c0_i32, %c0_i32_0, %c0_i32_1 : i32, i32, i32, i32
  }
}

module attributes {stable_mosaic.version = 11 : i64} {
  func.func @kernel(%arg0: i32, %arg1: memref<8x512xbf16, #tpu.memory_space<vmem>>, %arg2: memref<512x128xbf16, #tpu.memory_space<vmem>>, %arg3: memref<1x128xf32, #tpu.memory_space<vmem>>, %arg4: memref<128x128xbf16, #tpu.memory_space<vmem>>, %arg5: memref<1x128xf32, #tpu.memory_space<vmem>>, %arg6: memref<8x128xf32, #tpu.memory_space<vmem>>) attributes {dimension_semantics = [#tpu.dimension_semantics<parallel>], iteration_bounds = array<i64: 1>, scalar_prefetch = 0 : i64, scratch_operands = 0 : i64, tpu.core_type = #tpu.core_type<tc>, window_params = [{transform_indices = @transform_0, window_bounds = array<i64: 8, 512>}, {pipeline_mode = #tpu.pipeline_mode<synchronous>, transform_indices = @transform_1, window_bounds = array<i64: 512, 128>}, {pipeline_mode = #tpu.pipeline_mode<synchronous>, transform_indices = @transform_2, window_bounds = array<i64: 1, 128>}, {pipeline_mode = #tpu.pipeline_mode<synchronous>, transform_indices = @transform_3, window_bounds = array<i64: 128, 128>}, {pipeline_mode = #tpu.pipeline_mode<synchronous>, transform_indices = @transform_4, window_bounds = array<i64: 1, 128>}, {transform_indices = @transform_5, window_bounds = array<i64: 8, 128>}]} {
    %c0 = arith.constant 0 : index
    %c0_0 = arith.constant 0 : index
    %0 = vector.load %arg1[%c0, %c0_0] : memref<8x512xbf16, #tpu.memory_space<vmem>>, vector<8x512xbf16>
    %c0_1 = arith.constant 0 : index
    %c0_2 = arith.constant 0 : index
    %1 = vector.load %arg2[%c0_1, %c0_2] : memref<512x128xbf16, #tpu.memory_space<vmem>>, vector<512x128xbf16>
    %cst = arith.constant dense<0.000000e+00> : vector<8x128xf32>
    %2 = tpu.matmul %0, %1, %cst {dimension_numbers = #tpu.dot_dimension_numbers<[1], [0], [0], [1], [0, 0, 1, 1], [], []>} : vector<8x512xbf16>, vector<512x128xbf16>, vector<8x128xf32> -> vector<8x128xf32>
    %c0_3 = arith.constant 0 : index
    %c0_4 = arith.constant 0 : index
    %3 = vector.load %arg3[%c0_3, %c0_4] : memref<1x128xf32, #tpu.memory_space<vmem>>, vector<1x128xf32>
    %4 = vector.broadcast %3 : vector<1x128xf32> to vector<8x128xf32>
    %5 = arith.addf %2, %4 : vector<8x128xf32>
    %cst_5 = arith.constant 0.000000e+00 : f32
    %6 = vector.broadcast %cst_5 : f32 to vector<8x128xf32>
    %7 = arith.maximumf %5, %6 : vector<8x128xf32>
    %8 = arith.truncf %7 : vector<8x128xf32> to vector<8x128xbf16>
    %c0_6 = arith.constant 0 : index
    %c0_7 = arith.constant 0 : index
    %9 = vector.load %arg4[%c0_6, %c0_7] : memref<128x128xbf16, #tpu.memory_space<vmem>>, vector<128x128xbf16>
    %cst_8 = arith.constant dense<0.000000e+00> : vector<8x128xf32>
    %10 = tpu.matmul %8, %9, %cst_8 {dimension_numbers = #tpu.dot_dimension_numbers<[1], [0], [0], [1], [0, 0, 1, 1], [], []>} : vector<8x128xbf16>, vector<128x128xbf16>, vector<8x128xf32> -> vector<8x128xf32>
    %c0_9 = arith.constant 0 : index
    %c0_10 = arith.constant 0 : index
    %11 = vector.load %arg5[%c0_9, %c0_10] : memref<1x128xf32, #tpu.memory_space<vmem>>, vector<1x128xf32>
    %12 = vector.broadcast %11 : vector<1x128xf32> to vector<8x128xf32>
    %13 = arith.addf %10, %12 : vector<8x128xf32>
    %c0_11 = arith.constant 0 : index
    %c0_12 = arith.constant 0 : index
    %14 = vector.load %arg6[%c0_11, %c0_12] : memref<8x128xf32, #tpu.memory_space<vmem>>, vector<8x128xf32>
    tpu.vector_store %arg6[%c0_11, %c0_12], %13 {strides = array<i32>} : memref<8x128xf32, #tpu.memory_space<vmem>>, vector<8x128xf32>,
    return
  }
  func.func @transform_0(%arg0: i32) -> (i32, i32) {
    %c0_i32 = arith.constant 0 : i32
    %c0_i32_0 = arith.constant 0 : i32
    return %arg0, %c0_i32 : i32, i32
  }
  func.func @transform_1(%arg0: i32) -> (i32, i32) {
    %c0_i32 = arith.constant 0 : i32
    %c0_i32_0 = arith.constant 0 : i32
    %c0_i32_1 = arith.constant 0 : i32
    return %c0_i32, %c0_i32_0 : i32, i32
  }
  func.func @transform_2(%arg0: i32) -> (i32, i32) {
    %c0_i32 = arith.constant 0 : i32
    %c0_i32_0 = arith.constant 0 : i32
    %c0_i32_1 = arith.constant 0 : i32
    return %c0_i32, %c0_i32_0 : i32, i32
  }
  func.func @transform_3(%arg0: i32) -> (i32, i32) {
    %c0_i32 = arith.constant 0 : i32
    %c0_i32_0 = arith.constant 0 : i32
    %c0_i32_1 = arith.constant 0 : i32
    return %c0_i32, %c0_i32_0 : i32, i32
  }
  func.func @transform_4(%arg0: i32) -> (i32, i32) {
    %c0_i32 = arith.constant 0 : i32
    %c0_i32_0 = arith.constant 0 : i32
    %c0_i32_1 = arith.constant 0 : i32
    return %c0_i32, %c0_i32_0 : i32, i32
  }
  func.func @transform_5(%arg0: i32) -> (i32, i32) {
    %c0_i32 = arith.constant 0 : i32
    %c0_i32_0 = arith.constant 0 : i32
    return %arg0, %c0_i32 : i32, i32
  }
}

</mosaic_0001>

<bundles_post_ra>
// kernel: qnetwork_forward.5
= control target key start
LH: loop header
LB: loop body
LE: loop exit
PB: predicated region body
PF: predicated region fallthrough
CT: control target
= control target key end

     0   :  { %v663_v39 = vmov 0.0   ;;  %vm664_vm0 = vmmov 0   ;;  %s830_s1 = inlined_call_operand.vmem [shape: bf16[512,128], index: 1, kind: input, shape index: {}]   ;;  %s831_s0 = inlined_call_operand.vmem [shape: bf16[8,512], index: 0, kind: input, shape index: {}]   ;;  %s832_s3 = inlined_call_operand.vmem [shape: bf16[128,128], index: 3, kind: input, shape index: {}]   ;;  %s833_s2 = inlined_call_operand.vmem [shape: f32[1,128], index: 2, kind: input, shape index: {}]   ;;  %s834_s4 = inlined_call_operand.vmem [shape: f32[1,128], index: 4, kind: input, shape index: {}]   ;;  %s835_s5 = inlined_call_operand.vmem [shape: f32[8,128], index: 5, kind: output, shape index: {}]  }
   0x1   :  { %v619_v0 = vld [vmem:[%s830_s1 + $0x78] sm:$0xff]   ;;  %v623_v4 = vld [vmem:[%s830_s1 + $0x70] sm:$0xff]   ;;  %v627_v8 = vld [vmem:[%s830_s1 + $0x68] sm:$0xff]  }
   0x2   :  { %v620_v1 = vld [vmem:[%s830_s1 + $0xf8] sm:$0xff]   ;;  %544 = vmatprep.subr.bf16.mxu0 %v619_v0  ;;  %v624_v5 = vld [vmem:[%s830_s1 + $0xf0] sm:$0xff]   ;;  %v628_v9 = vld [vmem:[%s830_s1 + $0xe8] sm:$0xff]  }
   0x3   :  { %v621_v2 = vld [vmem:[%s830_s1 + $0x38] sm:$0xff]   ;;  %566 = vmatprep.subr.bf16.mxu1 %v620_v1  ;;  %v625_v6 = vld [vmem:[%s830_s1 + $0x30] sm:$0xff]   ;;  %v629_v10 = vld [vmem:[%s830_s1 + $0x28] sm:$0xff]  }
   0x4   :  { %v622_v3 = vld [vmem:[%s830_s1 + $0xb8] sm:$0xff]   ;;  %545 = vmatpush3.bf16.msra.mxu0 %v621_v2  ;;  %v626_v7 = vld [vmem:[%s830_s1 + $0xb0] sm:$0xff]   ;;  %v630_v11 = vld [vmem:[%s830_s1 + $0xa8] sm:$0xff]  }
   0x5   :  { %567 = vmatpush3.bf16.msra.mxu1 %v622_v3  ;;  %546 = vmatprep.subr.bf16.mxu0 %v623_v4  ;;  %v631_v12 = vld [vmem:[%s830_s1 + $0x60] sm:$0xff]   ;;  %v635_v16 = vld [vmem:[%s830_s1 + $0x58] sm:$0xff]   ;;  %v639_v20 = vld [vmem:[%s830_s1 + $0x50] sm:$0xff]  }
   0x6   :  { %568 = vmatprep.subr.bf16.mxu1 %v624_v5  ;;  %v632_v13 = vld [vmem:[%s830_s1 + $0xe0] sm:$0xff]   ;;  %v636_v17 = vld [vmem:[%s830_s1 + $0xd8] sm:$0xff]   ;;  %v640_v21 = vld [vmem:[%s830_s1 + $0xd0] sm:$0xff]  }
   0x7   :  { %v633_v14 = vld [vmem:[%s830_s1 + $0x20] sm:$0xff]   ;;  %v637_v18 = vld [vmem:[%s830_s1 + $0x18] sm:$0xff]   ;;  %v641_v22 = vld [vmem:[%s830_s1 + $0x10] sm:$0xff]  }
   0x8   :  { %547 = vmatpush3.bf16.msra.mxu0 %v625_v6  ;;  %v634_v15 = vld [vmem:[%s830_s1 + $0xa0] sm:$0xff]   ;;  %v638_v19 = vld [vmem:[%s830_s1 + $0x98] sm:$0xff]   ;;  %v642_v23 = vld [vmem:[%s830_s1 + $0x90] sm:$0xff]  }
   0x9   :  { %569 = vmatpush3.bf16.msra.mxu1 %v626_v7  ;;  %548 = vmatprep.subr.bf16.mxu0 %v627_v8  ;;  %v643_v24 = vld [vmem:[%s830_s1 + $0x48] sm:$0xff]   ;;  %v647_v28 = vld [vmem:[%s830_s1 + $0x40] sm:$0xff]   ;;  %v655_v38 = vld [vmem:[%s832_s3 + $0x38] sm:$0xff]  }
   0xa   :  { %570 = vmatprep.subr.bf16.mxu1 %v628_v9  ;;  %v644_v25 = vld [vmem:[%s830_s1 + $0xc8] sm:$0xff]   ;;  %v648_v29 = vld [vmem:[%s830_s1 + $0xc0] sm:$0xff]   ;;  %v656_v40 = vld [vmem:[%s832_s3 + $0x30] sm:$0xff]  }
   0xb   :  { %v645_v26 = vld [vmem:[%s830_s1 + $0x8] sm:$0xff]   ;;  %v649_v30 = vld [vmem:[%s830_s1] sm:$0xff]   ;;  %v659_v43 = vld [vmem:[%s832_s3 + $0x18] sm:$0xff]  }
   0xc   :  { %549 = vmatpush3.bf16.msra.mxu0 %v629_v10  ;;  %v646_v27 = vld [vmem:[%s830_s1 + $0x88] sm:$0xff]   ;;  %v650_v31 = vld [vmem:[%s830_s1 + $0x80] sm:$0xff]   ;;  %v660_v44 = vld [vmem:[%s832_s3 + $0x10] sm:$0xff]  }
   0xd   :  { %571 = vmatpush3.bf16.msra.mxu1 %v630_v11  ;;  %550 = vmatprep.subr.bf16.mxu0 %v631_v12  ;;  %v21_v32 = vld [vmem:[%s831_s0] sm:$0xff]  ;;  %v22_v33 = vld [vmem:[%s831_s0 + $0x8] sm:$0xff] }
   0xe   :  { %572 = vmatprep.subr.bf16.mxu1 %v632_v13  ;;  %v499_v34 = vcombine.low %v21_v32, %v21_v32  ;;  %v500_v35 = vcombine.high %v21_v32, %v21_v32  ;;  %v501_v36 = vcombine.low %v22_v33, %v22_v33  ;;  %v502_v37 = vcombine.high %v22_v33, %v22_v33  ;;  %v657_v41 = vld [vmem:[%s832_s3 + $0x28] sm:$0xff]   ;;  %v658_v42 = vld [vmem:[%s832_s3 + $0x20] sm:$0xff]  }
   0xf   :  { %v661_v45 = vld [vmem:[%s832_s3 + $0x8] sm:$0xff]   ;;  %v662_v46 = vld [vmem:[%s832_s3] sm:$0xff]  }
  0x10   :  { %551 = vmatpush3.bf16.msra.mxu0 %v633_v14  ;;  %332 = vmatprep.mubr.bf16.mxu0 %v500_v35  ;;  %v498_v49 = vld [vmem:[%s833_s2] ss:$0 sm:$0xff] }
  0x11   :  { %573 = vmatpush3.bf16.msra.mxu1 %v634_v15  ;;  %552 = vmatprep.subr.bf16.mxu0 %v635_v16  ;;  %v535_v62 = vld [vmem:[%s834_s4] ss:$0 sm:$0xff] }
  0x12   :  { %574 = vmatprep.subr.bf16.mxu1 %v636_v17  ;;  %372 = vmatprep.mubr.bf16.mxu1 %v502_v37 }
  0x14   :  { %553 = vmatpush3.bf16.msra.mxu0 %v637_v18 }
  0x15   :  { %575 = vmatpush3.bf16.msra.mxu1 %v638_v19  ;;  %554 = vmatprep.subr.bf16.mxu0 %v639_v20 }
  0x16   :  { %576 = vmatprep.subr.bf16.mxu1 %v640_v21 }
  0x18   :  { %555 = vmatpush3.bf16.msra.mxu0 %v641_v22 }
  0x19   :  { %577 = vmatpush3.bf16.msra.mxu1 %v642_v23  ;;  %556 = vmatprep.subr.bf16.mxu0 %v643_v24 }
  0x1a   :  { %578 = vmatprep.subr.bf16.mxu1 %v644_v25 }
  0x1c   :  { %557 = vmatpush3.bf16.msra.mxu0 %v645_v26 }
  0x1d   :  { %579 = vmatpush3.bf16.msra.mxu1 %v646_v27  ;;  %558 = vmatprep.subr.bf16.mxu0 %v647_v28 }
  0x1e   :  { %580 = vmatprep.subr.bf16.mxu1 %v648_v29 }
  0x20   :  { %559 = vmatpush3.bf16.msra.mxu0 %v649_v30 }
  0x21   :  { %581 = vmatpush3.bf16.msra.mxu1 %v650_v31  ;;  %597 = vmatprep.subr.bf16.mxu0 %v663_v39 }
  0x23   :  { %333 = vmatmul.mubr.bf16.vlgmr.msra.gmra.mxu0 %v499_v34 }
  0x24   :  { %373 = vmatmul.mubr.bf16.vlgmr.msra.gmra.mxu1 %v501_v36  ;;  %598 = vmatpush3.bf16.msra.mxu0 %v655_v38 }
  0x25   :  { %599 = vmatprep.subr.bf16.mxu0 %v663_v39  ;;  %613 = vmatprep.mubr.msk.bf16.mxu0 %vm664_vm0, %v663_v39 }
  0x28   :  { %600 = vmatpush3.bf16.msra.mxu0 %v656_v40 }
  0x29   :  { %601 = vmatprep.subr.bf16.mxu0 %v663_v39 }
  0x2c   :  { %602 = vmatpush3.bf16.msra.mxu0 %v657_v41 }
  0x2d   :  { %603 = vmatprep.subr.bf16.mxu0 %v663_v39 }
  0x30   :  { %604 = vmatpush3.bf16.msra.mxu0 %v658_v42 }
  0x31   :  { %605 = vmatprep.subr.bf16.mxu0 %v663_v39 }
  0x34   :  { %606 = vmatpush3.bf16.msra.mxu0 %v659_v43 }
  0x35   :  { %607 = vmatprep.subr.bf16.mxu0 %v663_v39 }
  0x38   :  { %608 = vmatpush3.bf16.msra.mxu0 %v660_v44 }
  0x39   :  { %609 = vmatprep.subr.bf16.mxu0 %v663_v39 }
  0x3c   :  { %610 = vmatpush3.bf16.msra.mxu0 %v661_v45 }
  0x3d   :  { %611 = vmatprep.subr.bf16.mxu0 %v663_v39 }
  0x40   :  { %612 = vmatpush3.bf16.msra.mxu0 %v662_v46 }
  0xe3   :  { %v560_v47 = vpop.f32.mrf.mxu0 }
  0xe4   :  { %v582_v48 = vpop.f32.mrf.mxu1 }
  0xe5   :  { %v561_v50 = vpop.f32.mrf.mxu0 }
  0xe6   :  { %v583_v51 = vpop.f32.mrf.mxu1  ;;  %v562_v52 = vadd.f32 %v561_v50, %v560_v47 }
  0xe7   :  { %v563_v53 = vpop.f32.mrf.mxu0  ;;  %v584_v56 = vadd.f32 %v583_v51, %v582_v48 }
  0xe8   :  { %v585_v54 = vpop.f32.mrf.mxu1  ;;  %v335_v55 = vadd.f32 %v562_v52, %v498_v49 }
  0xe9   :  { %v564_v57 = vpop.f32.mrf.mxu0 }
  0xea   :  { %v586_v58 = vpop.f32.mrf.mxu1  ;;  %v375_v59 = vadd.f32 %v584_v56, %v335_v55 }
  0xec   :  { %v380_v60 = vmax.f32 %v375_v59, 0.0 }
  0xee   :  { %v381_v61 = vpack.c.bf16 %v380_v60, %v380_v60 }
  0xf0   :  { %614 = vmatmul.mubr.bf16.vlgmr.msra.gmra.mxu0 %v381_v61 }
 0x1b0   :  { %v487_v63 = vpop.f32.mrf.mxu0 }
 0x1b1   :  { %v488_v0 = vadd.f32 %v535_v62, %v487_v63 }
 0x1b2   :  { %v615_v1 = vpop.f32.mrf.mxu0 }
 0x1b3   :  { %493 = vst [vmem:[%s835_s5] sm:$0xff] %v488_v0 }
 0x1b4   :  { %v490_v2 = vpop.f32.mrf.mxu0 }
 0x1b6   :  { %v616_v3 = vpop.f32.mrf.mxu0 }

// kernel: qnetwork_forward.4
= control target key start
LH: loop header
LB: loop body
LE: loop exit
PB: predicated region body
PF: predicated region fallthrough
CT: control target
= control target key end

     0   :  { %s1790_s12 = smov 0   ;;  %s2296_s0 = inlined_call_operand.vmem [shape: bf16[2,10,10,16], index: 0, kind: input, shape index: {}]   ;;  %s2297_s1 = inlined_call_operand.vmem [shape: bf16[144,32], index: 1, kind: input, shape index: {}]   ;;  %s2298_s2 = inlined_call_operand.vmem [shape: f32[1,32], index: 2, kind: input, shape index: {}]   ;;  %s2299_s3 = inlined_call_operand.vmem [shape: bf16[2,4,4,32], index: 3, kind: output, shape index: {}]  }
   0x1 LB: > { %s1637_s13 = sadd.s32 4294967295, %s1759_s12   ;;  %p1641_p0 = scmp.ge.s32.totalorder %s1759_s12, 1  ;;  %s1759_s12 = sphi %s1790_s12, %s13_s12  }
   0x2   : > { %p137_p1 = scmp.lt.s32.totalorder %s1759_s12, 3 }
   0x4   : > { %p138_p2 = pnand %p1641_p0, %p137_p1 }
   0x5   : > { %p161_p3 = scmp.lt.s32.totalorder (!%p138_p2), %s1637_s13, 1  ;;  %s1761_s18 = smov (!%p138_p2), 48  }
   0x6   : > { %141 = sbr.rel (%p138_p2) target bundleno = 510 (0x1fe), region = 32  ;;  %s1762_s19 = smov (!%p138_p2), 32  }
   0x7   : > { %s1763_s22 = smov (!%p138_p2), 16   ;;  %s1765_s29 = smov (!%p138_p2), 64  }
   0x8   : > { %s1766_s7 = smov (!%p138_p2), 80   ;;  %s1768_s20 = smov (!%p138_p2), 112  }
   0xb   : > { %s2301_s13 = smov (!%p161_p3, %s1637_s13), 1  ;;  %v1744_v37 = vld [vmem:[%s2297_s1 + $0x38] sm:$0xff]   ;;  %v1764_v42 = vmov 0   ;;  %v1745_v44 = vld [vmem:[%s2297_s1 + $0x30] sm:$0xff]   ;;  %v1746_v49 = vld [vmem:[%s2297_s1 + $0x28] sm:$0xff]   ;;  %vm443_vm0 = vcmask 130048  }
   0xc   : > { %s1707_s14 = smul.u32 80, %s2301_s13  ;;  %690 = vmatprep.subr.bf16.mxu0 %v1764_v42  ;;  %1689 = vmatprep.subr.bf16.mxu1 %v1764_v42  ;;  %v1747_v53 = vld [vmem:[%s2297_s1 + $0x20] sm:$0xff]   ;;  %v1748_v55 = vld [vmem:[%s2297_s1 + $0x18] sm:$0xff]   ;;  %v1749_v60 = vld [vmem:[%s2297_s1 + $0x10] sm:$0xff]   ;;  %vm468_vm1 = vcmask 261120   ;;  %vm485_vm2 = vcmask 392192  }
   0xd   : > { %691 = vmatpush1.bf16.msra.mxu0 %v1744_v37  ;;  %1698 = vmatpush1.bf16.msra.mxu1 %v1744_v37  ;;  %vm502_vm3 = vcmask 523264   ;;  %vm519_vm4 = vcmask 654336   ;;  %vm536_vm5 = vcmask 785408   ;;  %vm553_vm6 = vcmask 916480  }
   0xe   : > { %s1804_s17 = scalar_lea.vmem %s2296_s0, %s1707_s14  ;;  %692 = vmatprep.subr.bf16.mxu0 %v1764_v42  ;;  %1690 = vmatprep.subr.bf16.mxu1 %v1764_v42  ;;  %s1767_s14 = smov 96   ;;  %vm931_vm7 = vcmask 254976   ;;  %vm1516_vm8 = vcmask 1041409   ;;  %vm1519_vm9 = vcmask 1042434   ;;  %vm1522_vm10 = vcmask 1043459  }
   0xf   : > { %v1807_v0 = vld [vmem:[%s1804_s17 + $0x10] sm:$0xf]  ;;  %v1810_v1 = vld [vmem:[%s1804_s17 + $0x8] sm:$0xf]  ;;  %v175_v3 = vld [vmem:[%s1804_s17 + $0xc] sm:$0x1] }
  0x10   : > { %v1814_v2 = vcombine.low %v1807_v0, %v1807_v0  ;;  %v1653_v4 = vcombine.low %v1810_v1, %v1810_v1  ;;  %v1820_v5 = vld [vmem:[%s1804_s17] sm:$0xf]  ;;  %v173_v6 = vld [vmem:[%s1804_s17 + $0x4] sm:$0x1]  ;;  %v1824_v7 = vcombine.low %v1810_v1, %v175_v3  ;;  %v1828_v9 = vld [vmem:[%s1804_s17 + $0x28] sm:$0xf] }
  0x11   : > { %v1645_v8 = vcombine.low %v1820_v5, %v173_v6  ;;  %v183_v10 = vld [vmem:[%s1804_s17 + $0x2c] sm:$0x1]  ;;  %v1832_v11 = vld [vmem:[%s1804_s17 + $0x20] sm:$0xf]  ;;  %v181_v13 = vld [vmem:[%s1804_s17 + $0x24] sm:$0x1]  ;;  %v1876_v43 = vcombine.low %v1828_v9, %v1828_v9  ;;  %693 = vmatpush1.bf16.msra.mxu0 %v1745_v44  ;;  %1699 = vmatpush1.bf16.msra.mxu1 %v1745_v44 }
  0x12   : > { %340 = vrot.lane.b32.xlu1 %v1814_v2, %s1761_s18  ;;  %338 = vrot.lane.b32.xlu0 %v1653_v4, %s1761_s18  ;;  %v1650_v12 = vcombine.low %v1828_v9, %v183_v10  ;;  %v305_v14 = vrot.slane %v1824_v7, 1  ;;  %v1649_v16 = vcombine.low %v1832_v11, %v181_v13  ;;  %v177_v22 = vld [vmem:[%s1804_s17 + $0x14] sm:$0x1]  ;;  %v242_v26 = vshll.u32 %v1824_v7, 16  ;;  %v1861_v36 = vld [vmem:[%s1804_s17 + $0x30] sm:$0xf] }
  0x13   : > { %v304_v15 = vrot.slane %v1645_v8, 1  ;;  %v235_v17 = vshll.u32 %v1645_v8, 16  ;;  %v233_v20 = vshrl.u32 %v1645_v8, 16  ;;  %v1647_v28 = vcombine.low %v1807_v0, %v177_v22  ;;  %v185_v35 = vld [vmem:[%s1804_s17 + $0x34] sm:$0x1]  ;;  %694 = vmatprep.subr.bf16.mxu0 %v1764_v42  ;;  %1691 = vmatprep.subr.bf16.mxu1 %v1764_v42  ;;  %v1750_v6 = vld [vmem:[%s2297_s1 + $0x8] sm:$0xff]  }
  0x14   : > { %v1841_v18 = vrot.slane %v1650_v12, 1  ;;  %v263_v19 = vshll.u32 %v1649_v16, 16  ;;  %v270_v21 = vshll.u32 %v1650_v12, 16  ;;  %v1848_v23 = vrot.slane %v1649_v16, 1  ;;  %v179_v57 = vld [vmem:[%s1804_s17 + $0x1c] sm:$0x1] }
  0x15   : > { %v261_v24 = vshrl.u32 %v1649_v16, 16  ;;  %v237_v25 = vrot.slane %v235_v17, 1  ;;  %v268_v29 = vshrl.u32 %v1650_v12, 16  ;;  %v240_v30 = vshrl.u32 %v1824_v7, 16  ;;  %695 = vmatpush1.bf16.msra.mxu0 %v1746_v49  ;;  %1700 = vmatpush1.bf16.msra.mxu1 %v1746_v49  ;;  %v1924_v58 = vld [vmem:[%s1804_s17 + $0x18] sm:$0xf] }
  0x16   : > { %314 = vrot.lane.b32.xlu1 %v305_v14, %s1762_s19  ;;  %312 = vrot.lane.b32.xlu0 %v304_v15, %s1762_s19  ;;  %v265_v27 = vrot.slane %v263_v19, 1  ;;  %v272_v33 = vrot.slane %v270_v21, 1  ;;  %v244_v34 = vrot.slane %v242_v26, 1  ;;  %v1651_v40 = vcombine.low %v1861_v36, %v185_v35  ;;  %v187_v62 = vld [vmem:[%s1804_s17 + $0x3c] sm:$0x1]  ;;  %v1751_v13 = vld [vmem:[%s2297_s1] sm:$0xff]  }
  0x17   : > { %v238_v32 = vor.u32 %v237_v25, %v233_v20  ;;  %v249_v41 = vshll.u32 %v1647_v28, 16  ;;  %v1886_v45 = vcombine.low %v1861_v36, %v1861_v36  ;;  %v247_v46 = vshrl.u32 %v1647_v28, 16  ;;  %696 = vmatprep.subr.bf16.mxu0 %v1764_v42  ;;  %1692 = vmatprep.subr.bf16.mxu1 %v1764_v42  ;;  %v1941_v3 = vld [vmem:[%s1804_s17 + $0x38] sm:$0xf]  ;;  %v1752_v20 = vld [vmem:[%s2297_s1 + $0x40] sm:$0xff]  }
  0x18   : > { %v1857_v31 = vor.u32 %v265_v27, %v261_v24  ;;  %v1869_v38 = vor.u32 %v272_v33, %v268_v29  ;;  %v245_v39 = vor.u32 %v244_v34, %v240_v30  ;;  %v277_v48 = vshll.u32 %v1651_v40, 16  ;;  %v189_v25 = vld [vmem:[%s1804_s17 + $0x44] sm:$0x1]  ;;  %v188_v26 = vld [vmem:[%s1804_s17 + $0x40] sm:$0xf] }
  0x19   : > { %v251_v47 = vrot.slane %v249_v41, 1  ;;  %v275_v51 = vshrl.u32 %v1651_v40, 16  ;;  %697 = vmatpush1.bf16.msra.mxu0 %v1747_v53  ;;  %1701 = vmatpush1.bf16.msra.mxu1 %v1747_v53  ;;  %v1918_v56 = vrot.slane %v1647_v28, 1  ;;  %v1648_v59 = vcombine.low %v1924_v58, %v179_v57  ;;  %v191_v37 = vld [vmem:[%s1804_s17 + $0x4c] sm:$0x1] }
  0x1a   : > { %322 = vrot.lane.b32.xlu1 %v1841_v18, %s1762_s19  ;;  %320 = vrot.lane.b32.xlu0 %v1848_v23, %s1762_s19  ;;  %v279_v52 = vrot.slane %v277_v48, 1  ;;  %v310_v61 = vrot.slane %v1651_v40, 1  ;;  %v1652_v4 = vcombine.low %v1941_v3, %v187_v62  ;;  %v1655_v8 = vcombine.low %v1924_v58, %v1924_v58 }
  0x1b   : > { %v1897_v50 = vor.u32 %v251_v47, %v247_v46  ;;  %698 = vmatprep.subr.bf16.mxu0 %v1764_v42  ;;  %1693 = vmatprep.subr.bf16.mxu1 %v1764_v42  ;;  %v1936_v63 = vrot.slane %v1648_v59, 1  ;;  %v256_v10 = vshll.u32 %v1648_v59, 16  ;;  %v1659_v15 = vcombine.low %v1941_v3, %v1941_v3 }
  0x1c   : > { %v1907_v54 = vor.u32 %v279_v52, %v275_v51  ;;  %v1954_v12 = vrot.slane %v1652_v4, 1  ;;  %v254_v16 = vshrl.u32 %v1648_v59, 16  ;;  %v284_v19 = vshll.u32 %v1652_v4, 16 }
  0x1d   : > { %699 = vmatpush1.bf16.msra.mxu0 %v1748_v55  ;;  %1702 = vmatpush1.bf16.msra.mxu1 %v1748_v55  ;;  %v1665_v7 = vcombine.low %v1918_v56, %v1936_v63  ;;  %v258_v17 = vrot.slane %v256_v10, 1  ;;  %v282_v21 = vshrl.u32 %v1652_v4, 16  ;;  %v1656_v27 = vcombine.low %v1832_v11, %v1832_v11 }
  0x1e   : > { %296 = vrot.lane.b32.xlu1 %v1857_v31, %s1763_s22  ;;  %288 = vrot.lane.b32.xlu0 %v238_v32, %s1763_s22  ;;  %v286_v22 = vrot.slane %v284_v19, 1  ;;  %v2002_v28 = vcombine.low %v188_v26, %v189_v25  ;;  %v1660_v29 = vcombine.low %v188_v26, %v188_v26 }
  0x1f   : > { %700 = vmatprep.subr.bf16.mxu0 %v1764_v42  ;;  %1694 = vmatprep.subr.bf16.mxu1 %v1764_v42 }
  0x20   : > { %1681 = vmatprep.mubr.msk.bf16.mxu0 %vm443_vm0, %v1665_v7  ;;  %v287_v24 = vor.u32 %v286_v22, %v282_v21  ;;  %v360_v30 = vshll.u32 %v2002_v28, 16  ;;  %v358_v32 = vshrl.u32 %v2002_v28, 16  ;;  %v380_v35 = vrot.slane %v2002_v28, 1 }
  0x21   : > { %701 = vmatpush1.bf16.msra.mxu0 %v1749_v60  ;;  %1703 = vmatpush1.bf16.msra.mxu1 %v1749_v60  ;;  %v1667_v22 = vcombine.low %v1848_v23, %v1841_v18 }
  0x22   : > { %298 = vrot.lane.b32.xlu1 %v1869_v38, %s1763_s22  ;;  %290 = vrot.lane.b32.xlu0 %v245_v39, %s1763_s22  ;;  %v362_v33 = vrot.slane %v360_v30, 1 }
  0x23   : > { %702 = vmatprep.subr.bf16.mxu0 %v1764_v42  ;;  %1695 = vmatprep.subr.bf16.mxu1 %v1764_v42 }
  0x24   : > { %v363_v34 = vor.u32 %v362_v33, %v358_v32 }
  0x25   : > { %703 = vmatpush1.bf16.msra.mxu0 %v1750_v6  ;;  %1704 = vmatpush1.bf16.msra.mxu1 %v1750_v6 }
  0x26   : > { %348 = vrot.lane.b32.xlu1 %v1886_v45, %s1761_s18  ;;  %346 = vrot.lane.b32.xlu0 %v1876_v43, %s1761_s18 }
  0x27   : > { %704 = vmatprep.subr.bf16.mxu0 %v1764_v42  ;;  %1696 = vmatprep.subr.bf16.mxu1 %v1764_v42 }
  0x29   : > { %705 = vmatpush1.bf16.msra.mxu0 %v1751_v13  ;;  %1705 = vmatpush1.bf16.msra.mxu1 %v1751_v13 }
  0x2a   : > { %366 = vrot.lane.b32.xlu1 %v1897_v50, %s1765_s29  ;;  %364 = vrot.lane.b32.xlu0 %v245_v39, %s1765_s29  ;;  %v190_v39 = vld [vmem:[%s1804_s17 + $0x48] sm:$0xf] }
  0x2b   : > { %720 = vmatprep.subr.bf16.mxu0 %v1764_v42  ;;  %1697 = vmatprep.subr.bf16.mxu1 %v1764_v42  ;;  %v2027_v40 = vcombine.low %v190_v39, %v191_v37  ;;  %v1662_v41 = vcombine.low %v190_v39, %v190_v39 }
  0x2d   : > { %721 = vmatpush2.bf16.msra.mxu0 %v1752_v20  ;;  %1706 = vmatpush2.bf16.msra.mxu1 %v1752_v20  ;;  %v422_v42 = vshll.u32 %v2027_v40, 16  ;;  %v420_v44 = vshrl.u32 %v2027_v40, 16 }
  0x2e   : > { %374 = vrot.lane.b32.xlu1 %v1907_v54, %s1765_s29  ;;  %372 = vrot.lane.b32.xlu0 %v1869_v38, %s1765_s29 }
  0x32   : > { %383 = vrot.lane.b32.xlu1 %v1918_v56, %s1766_s7  ;;  %381 = vrot.lane.b32.xlu0 %v305_v14, %s1766_s7  ;;  %v1669_v14 = vcombine.low %v310_v61, %v1954_v12 }
  0x34   : > { %1683 = vmatprep.mubr.msk.bf16.mxu1 %vm443_vm0, %v1669_v14 }
  0x36   : > { %391 = vrot.lane.b32.xlu1 %v310_v61, %s1766_s7  ;;  %389 = vrot.lane.b32.xlu0 %v1841_v18, %s1766_s7 }
  0x3a   : > { %402 = vrot.lane.b32.xlu1 %v1655_v8, %s1767_s14  ;;  %400 = vrot.lane.b32.xlu0 %v1814_v2, %s1767_s14  ;;  %v259_v2 = vor.u32 %v258_v17, %v254_v16 }
  0x3e   : > { %410 = vrot.lane.b32.xlu1 %v1659_v15, %s1767_s14  ;;  %408 = vrot.lane.b32.xlu0 %v1886_v45, %s1767_s14  ;;  %v424_v45 = vrot.slane %v422_v42, 1 }
  0x40   : > { %v425_v46 = vor.u32 %v424_v45, %v420_v44 }
  0x42   : > { %428 = vrot.lane.b32.xlu1 %v259_v2, %s1768_s20  ;;  %426 = vrot.lane.b32.xlu0 %v1897_v50, %s1768_s20 }
  0x46   : > { %436 = vrot.lane.b32.xlu1 %v287_v24, %s1768_s20  ;;  %434 = vrot.lane.b32.xlu0 %v1907_v54, %s1768_s20 }
  0x4a   : > { %294 = vrot.lane.b32.xlu1 %v259_v2, %s1763_s22  ;;  %292 = vrot.lane.b32.xlu0 %v1897_v50, %s1763_s22 }
  0x4e   : > { %302 = vrot.lane.b32.xlu1 %v287_v24, %s1763_s22  ;;  %300 = vrot.lane.b32.xlu0 %v1907_v54, %s1763_s22 }
  0x52   : > { %318 = vrot.lane.b32.xlu1 %v1936_v63, %s1762_s19  ;;  %316 = vrot.lane.b32.xlu0 %v1918_v56, %s1762_s19 }
  0x56   : > { %326 = vrot.lane.b32.xlu1 %v1954_v12, %s1762_s19  ;;  %324 = vrot.lane.b32.xlu0 %v310_v61, %s1762_s19  ;;  %s1688_s19 = sshll.u32 %s2301_s13, 3 }
  0x57   : > { %s2176_s23 = scalar_lea.vmem %s2299_s3, %s1688_s19 }
  0x5a   : > { %344 = vrot.lane.b32.xlu1 %v1656_v27, %s1761_s18  ;;  %342 = vrot.lane.b32.xlu0 %v1655_v8, %s1761_s18 }
  0x5e   : > { %352 = vrot.lane.b32.xlu1 %v1660_v29, %s1761_s18  ;;  %350 = vrot.lane.b32.xlu0 %v1659_v15, %s1761_s18 }
  0x62   : > { %370 = vrot.lane.b32.xlu1 %v1857_v31, %s1765_s29  ;;  %368 = vrot.lane.b32.xlu0 %v259_v2, %s1765_s29 }
  0x66   : > { %378 = vrot.lane.b32.xlu1 %v363_v34, %s1765_s29  ;;  %376 = vrot.lane.b32.xlu0 %v287_v24, %s1765_s29 }
  0x6a   : > { %387 = vrot.lane.b32.xlu1 %v1848_v23, %s1766_s7  ;;  %385 = vrot.lane.b32.xlu0 %v1936_v63, %s1766_s7 }
  0x6e   : > { %395 = vrot.lane.b32.xlu1 %v380_v35, %s1766_s7  ;;  %393 = vrot.lane.b32.xlu0 %v1954_v12, %s1766_s7 }
  0x72   : > { %406 = vrot.lane.b32.xlu1 %v1876_v43, %s1767_s14  ;;  %404 = vrot.lane.b32.xlu0 %v1656_v27, %s1767_s14 }
  0x76   : > { %414 = vrot.lane.b32.xlu1 %v1662_v41, %s1767_s14  ;;  %412 = vrot.lane.b32.xlu0 %v1660_v29, %s1767_s14 }
  0x7a   : > { %432 = vrot.lane.b32.xlu1 %v1869_v38, %s1768_s20  ;;  %430 = vrot.lane.b32.xlu0 %v1857_v31, %s1768_s20 }
  0x7e   : > { %440 = vrot.lane.b32.xlu1 %v425_v46, %s1768_s20  ;;  %438 = vrot.lane.b32.xlu0 %v363_v34, %s1768_s20 }
  0x84   : > { %v341_v43 = vpop.permute.xlu1 %340  ;;  %v339_v47 = vpop.permute.xlu0 %338 }
  0x88   : > { %v315_v48 = vpop.permute.xlu1 %314  ;;  %v313_v49 = vpop.permute.xlu0 %312 }
  0x8c   : > { %v323_v50 = vpop.permute.xlu1 %322  ;;  %v321_v51 = vpop.permute.xlu0 %320 }
  0x90   : > { %v297_v52 = vpop.permute.xlu1 %296  ;;  %v289_v53 = vpop.permute.xlu0 %288 }
  0x91   : > { %v446_v6 = vsel %vm443_vm0, %v1820_v5, %v289_v53  ;;  %v458_v16 = vsel %vm443_vm0, %v1832_v11, %v297_v52  ;;  %v442_v11 = vrot.slane %v2027_v40, 1 }
  0x92   : > { %v470_v12 = vsel %vm468_vm1, %v446_v6, %v313_v49  ;;  %v478_v24 = vsel %vm468_vm1, %v458_v16, %v321_v51 }
  0x93   : > { %v487_v17 = vsel %vm485_vm2, %v470_v12, %v339_v47  ;;  %v1671_v47 = vcombine.low %v380_v35, %v442_v11 }
  0x94   : > { %v299_v54 = vpop.permute.xlu1 %298  ;;  %v291_v55 = vpop.permute.xlu0 %290 }
  0x95   : > { %v449_v7 = vsel %vm443_vm0, %v1810_v1, %v291_v55  ;;  %v461_v5 = vsel %vm443_vm0, %v1828_v9, %v299_v54 }
  0x96   : > { %v472_v13 = vsel %vm468_vm1, %v449_v7, %v315_v48  ;;  %v480_v9 = vsel %vm468_vm1, %v461_v5, %v323_v50 }
  0x97   : > { %v489_v1 = vsel %vm485_vm2, %v472_v13, %v341_v43 }
  0x98   : > { %v349_v56 = vpop.permute.xlu1 %348  ;;  %v347_v38 = vpop.permute.xlu0 %346 }
  0x99   : > { %v497_v30 = vsel %vm485_vm2, %v480_v9, %v349_v56  ;;  %v495_v32 = vsel %vm485_vm2, %v478_v24, %v347_v38 }
  0x9c   : > { %v367_v57 = vpop.permute.xlu1 %366  ;;  %v365_v59 = vpop.permute.xlu0 %364 }
  0x9d   : > { %v506_v19 = vsel %vm502_vm3, %v489_v1, %v367_v57  ;;  %v504_v20 = vsel %vm502_vm3, %v487_v17, %v365_v59 }
  0xa0   : > { %v375_v31 = vpop.permute.xlu1 %374  ;;  %v373_v60 = vpop.permute.xlu0 %372 }
  0xa1   : > { %v514_v23 = vsel %vm502_vm3, %v497_v30, %v375_v31  ;;  %v512_v34 = vsel %vm502_vm3, %v495_v32, %v373_v60 }
  0xa4   : > { %v384_v61 = vpop.permute.xlu1 %383  ;;  %v382_v62 = vpop.permute.xlu0 %381 }
  0xa5   : > { %v523_v2 = vsel %vm519_vm4, %v506_v19, %v384_v61  ;;  %v521_v21 = vsel %vm519_vm4, %v504_v20, %v382_v62 }
  0xa8   : > { %v392_v63 = vpop.permute.xlu1 %391  ;;  %v390_v4 = vpop.permute.xlu0 %389 }
  0xa9   : > { %v531_v39 = vsel %vm519_vm4, %v514_v23, %v392_v63  ;;  %v529_v40 = vsel %vm519_vm4, %v512_v34, %v390_v4 }
  0xac   : > { %v403_v8 = vpop.permute.xlu1 %402  ;;  %v401_v10 = vpop.permute.xlu0 %400 }
  0xad   : > { %v540_v25 = vsel %vm536_vm5, %v523_v2, %v403_v8  ;;  %v538_v26 = vsel %vm536_vm5, %v521_v21, %v401_v10 }
  0xb0   : > { %v411_v14 = vpop.permute.xlu1 %410  ;;  %v409_v15 = vpop.permute.xlu0 %408 }
  0xb1   : > { %v548_v41 = vsel %vm536_vm5, %v531_v39, %v411_v14  ;;  %v546_v42 = vsel %vm536_vm5, %v529_v40, %v409_v15 }
  0xb4   : > { %v429_v27 = vpop.permute.xlu1 %428  ;;  %v427_v29 = vpop.permute.xlu0 %426 }
  0xb5   : > { %v557_v33 = vsel %vm553_vm6, %v540_v25, %v429_v27  ;;  %v555_v18 = vsel %vm553_vm6, %v538_v26, %v427_v29 }
  0xb6   : > { %v1664_v37 = vcombine.low %v555_v18, %v557_v33 }
  0xb8   : > { %v437_v44 = vpop.permute.xlu1 %436  ;;  %723 = vmatmul.mubr.bf16.vlgmr.msra.gmra.mxu0 %v1664_v37  ;;  %v435_v45 = vpop.permute.xlu0 %434 }
  0xb9   : > { %v565_v46 = vsel %vm553_vm6, %v548_v41, %v437_v44  ;;  %v563_v43 = vsel %vm553_vm6, %v546_v42, %v435_v45  ;;  %1682 = vmatprep.mubr.msk.bf16.mxu0 %vm443_vm0, %v1667_v22  ;;  %v1769_v44 = vmov 1983009808  }
  0xba   : > { %v1668_v48 = vcombine.low %v563_v43, %v565_v46  ;;  %v765_v45 = vunpack.c.l.s4 %v1769_v44  ;;  %v767_v46 = vlaneseq }
  0xbc   : > { %v295_v49 = vpop.permute.xlu1 %294  ;;  %739 = vmatmul.mubr.bf16.vlgmr.msra.gmra.mxu1 %v1668_v48  ;;  %v293_v50 = vpop.permute.xlu0 %292  ;;  %v766_v43 = vunpack.c.0.s8 %v765_v45 }
  0xbd   : > { %1684 = vmatprep.mubr.msk.bf16.mxu1 %vm443_vm0, %v1671_v47  ;;  %v455_v10 = vsel %vm443_vm0, %v1924_v58, %v295_v49  ;;  %v452_v12 = vsel %vm443_vm0, %v1807_v0, %v293_v50  ;;  %v768_v47 = vshrl.u32 %v767_v46, 7 }
  0xbf   : > { %v2113_v48 = vsub.s32 %v766_v43, %v768_v47 }
  0xc0   : > { %v303_v51 = vpop.permute.xlu1 %302  ;;  %v301_v52 = vpop.permute.xlu0 %300 }
  0xc1   : > { %v467_v58 = vsel %vm443_vm0, %v1941_v3, %v303_v51  ;;  %v464_v0 = vsel %vm443_vm0, %v1861_v36, %v301_v52 }
  0xc4   : > { %v319_v53 = vpop.permute.xlu1 %318  ;;  %v317_v54 = vpop.permute.xlu0 %316 }
  0xc5   : > { %v476_v13 = vsel %vm468_vm1, %v455_v10, %v319_v53  ;;  %v474_v14 = vsel %vm468_vm1, %v452_v12, %v317_v54 }
  0xc8   : > { %v327_v55 = vpop.permute.xlu1 %326  ;;  %v325_v56 = vpop.permute.xlu0 %324 }
  0xc9   : > { %v484_v21 = vsel %vm468_vm1, %v467_v58, %v327_v55  ;;  %v482_v22 = vsel %vm468_vm1, %v464_v0, %v325_v56 }
  0xcc   : > { %v345_v38 = vpop.permute.xlu1 %344  ;;  %v343_v57 = vpop.permute.xlu0 %342 }
  0xcd   : > { %v493_v5 = vsel %vm485_vm2, %v476_v13, %v345_v38  ;;  %v491_v1 = vsel %vm485_vm2, %v474_v14, %v343_v57 }
  0xd0   : > { %v353_v59 = vpop.permute.xlu1 %352  ;;  %v351_v31 = vpop.permute.xlu0 %350 }
  0xd1   : > { %v501_v26 = vsel %vm485_vm2, %v484_v21, %v353_v59  ;;  %v499_v3 = vsel %vm485_vm2, %v482_v22, %v351_v31 }
  0xd4   : > { %v371_v60 = vpop.permute.xlu1 %370  ;;  %v369_v61 = vpop.permute.xlu0 %368 }
  0xd5   : > { %v510_v17 = vsel %vm502_vm3, %v493_v5, %v371_v60  ;;  %v508_v19 = vsel %vm502_vm3, %v491_v1, %v369_v61 }
  0xd8   : > { %v379_v28 = vpop.permute.xlu1 %378  ;;  %v377_v35 = vpop.permute.xlu0 %376 }
  0xd9   : > { %v518_v29 = vsel %vm502_vm3, %v501_v26, %v379_v28  ;;  %v516_v30 = vsel %vm502_vm3, %v499_v3, %v377_v35 }
  0xdc   : > { %v388_v62 = vpop.permute.xlu1 %387  ;;  %v386_v63 = vpop.permute.xlu0 %385 }
  0xdd   : > { %v527_v20 = vsel %vm519_vm4, %v510_v17, %v388_v62  ;;  %v525_v2 = vsel %vm519_vm4, %v508_v19, %v386_v63 }
  0xe0   : > { %v396_v4 = vpop.permute.xlu1 %395  ;;  %v394_v6 = vpop.permute.xlu0 %393 }
  0xe1   : > { %v535_v33 = vsel %vm519_vm4, %v518_v29, %v396_v4  ;;  %v533_v18 = vsel %vm519_vm4, %v516_v30, %v394_v6 }
  0xe4   : > { %v407_v7 = vpop.permute.xlu1 %406  ;;  %v405_v8 = vpop.permute.xlu0 %404 }
  0xe5   : > { %v544_v11 = vsel %vm536_vm5, %v527_v20, %v407_v7  ;;  %v542_v9 = vsel %vm536_vm5, %v525_v2, %v405_v8 }
  0xe8   : > { %v415_v15 = vpop.permute.xlu1 %414  ;;  %v413_v16 = vpop.permute.xlu0 %412 }
  0xe9   : > { %v552_v23 = vsel %vm536_vm5, %v535_v33, %v415_v15  ;;  %v550_v34 = vsel %vm536_vm5, %v533_v18, %v413_v16 }
  0xec   : > { %v433_v24 = vpop.permute.xlu1 %432  ;;  %v431_v25 = vpop.permute.xlu0 %430 }
  0xed   : > { %v561_v36 = vsel %vm553_vm6, %v544_v11, %v433_v24  ;;  %v559_v27 = vsel %vm553_vm6, %v542_v9, %v431_v25 }
  0xee   : > { %v1666_v32 = vcombine.low %v559_v27, %v561_v36 }
  0xf0   : > { %v441_v37 = vpop.permute.xlu1 %440  ;;  %731 = vmatmul.mubr.bf16.gmra.mxu0 %v1666_v32  ;;  %v439_v39 = vpop.permute.xlu0 %438 }
  0xf1   : > { %v569_v40 = vsel %vm553_vm6, %v552_v23, %v441_v37  ;;  %v567_v41 = vsel %vm553_vm6, %v550_v34, %v439_v39 }
  0xf2   : > { %v1670_v42 = vcombine.low %v567_v41, %v569_v40 }
  0xf4   : > { %747 = vmatmul.mubr.bf16.gmra.mxu1 %v1670_v42 }
 0x178   : > { %v724_v49 = vpop.f32.mrf.mxu0 }
 0x179   : > { %v763_v50 = vcombine.high %v724_v49, %v724_v49  ;;  %v770_v51 = vrot.slane %v724_v49, %v2113_v48 }
 0x17a   : > { %v726_v52 = vpop.f32.mrf.mxu0 }
 0x17b   : > { %v777_v53 = vrot.slane %v763_v50, %v2113_v48  ;;  %v778_v54 = vcombine.high %v770_v51, %v770_v51  ;;  %v932_v55 = vsel %vm931_vm7, %v770_v51, -inf }
 0x17c   : > { %v933_v56 = vrot.slane %v932_v55, 4  ;;  %v727_v38 = vpop.f32.mrf.mxu0  ;;  %v740_v57 = vpop.f32.mrf.mxu1 }
 0x17d   : > { %v779_v59 = vcombine.high %v777_v53, %v777_v53  ;;  %v939_v31 = vsel %vm931_vm7, %v778_v54, -inf  ;;  %v946_v60 = vsel %vm931_vm7, %v777_v53, -inf  ;;  %v780_v61 = vcombine.high %v727_v38, %v727_v38 }
 0x17e   : > { %v934_v28 = vmax.f32 %v932_v55, %v933_v56  ;;  %v940_v35 = vrot.slane %v939_v31, 4  ;;  %v947_v62 = vrot.slane %v946_v60, 4  ;;  %v787_v63 = vrot.slane %v727_v38, %v2113_v48  ;;  %v729_v4 = vpop.f32.mrf.mxu0  ;;  %v742_v6 = vpop.f32.mrf.mxu1 }
 0x17f   : > { %v953_v7 = vsel %vm931_vm7, %v779_v59, -inf  ;;  %v794_v8 = vrot.slane %v780_v61, %v2113_v48  ;;  %v831_v3 = vcombine.high %v740_v57, %v740_v57  ;;  %v838_v42 = vrot.slane %v740_v57, %v2113_v48 }
 0x180   : > { %v935_v10 = vrot.slane %v934_v28, 2  ;;  %v941_v12 = vmax.f32 %v939_v31, %v940_v35  ;;  %v948_v13 = vmax.f32 %v946_v60, %v947_v62  ;;  %v954_v14 = vrot.slane %v953_v7, 4  ;;  %v2123_v15 = vpop.f32.mrf.mxu1 }
 0x181   : > { %v795_v16 = vcombine.high %v787_v63, %v787_v63  ;;  %v796_v5 = vcombine.high %v794_v8, %v794_v8  ;;  %v960_v1 = vsel %vm931_vm7, %v787_v63, -inf  ;;  %v974_v17 = vsel %vm931_vm7, %v794_v8, -inf }
 0x182   : > { %v936_v19 = vmax.f32 %v934_v28, %v935_v10  ;;  %v942_v58 = vrot.slane %v941_v12, 2  ;;  %v949_v0 = vrot.slane %v948_v13, 2  ;;  %v955_v20 = vmax.f32 %v953_v7, %v954_v14  ;;  %v745_v2 = vpop.f32.mrf.mxu1  ;;  %v2140_v10 = vld [vmem:[%s2298_s2] ss:$0 sm:$0xff] }
 0x183   : > { %v961_v21 = vrot.slane %v960_v1, 4  ;;  %v967_v22 = vsel %vm931_vm7, %v795_v16, -inf  ;;  %v975_v11 = vrot.slane %v974_v17, 4  ;;  %v981_v9 = vsel %vm931_vm7, %v796_v5, -inf }
 0x184   : > { %v943_v24 = vmax.f32 %v941_v12, %v942_v58  ;;  %v950_v25 = vmax.f32 %v948_v13, %v949_v0  ;;  %v956_v26 = vrot.slane %v955_v20, 2  ;;  %v968_v27 = vrot.slane %v967_v22, 4 }
 0x185   : > { %v962_v36 = vmax.f32 %v960_v1, %v961_v21  ;;  %v976_v29 = vmax.f32 %v974_v17, %v975_v11  ;;  %v982_v30 = vrot.slane %v981_v9, 4  ;;  %v937_v32 = vrot.slane %v936_v19, 1 }
 0x186   : > { %v944_v33 = vrot.slane %v943_v24, 1  ;;  %v951_v18 = vrot.slane %v950_v25, 1  ;;  %v957_v23 = vmax.f32 %v955_v20, %v956_v26  ;;  %v969_v37 = vmax.f32 %v967_v22, %v968_v27 }
 0x187   : > { %v963_v34 = vrot.slane %v962_v36, 2  ;;  %v977_v39 = vrot.slane %v976_v29, 2  ;;  %v983_v40 = vmax.f32 %v981_v9, %v982_v30  ;;  %v938_v47 = vmax.f32 %v936_v19, %v937_v32 }
 0x188   : > { %v958_v41 = vrot.slane %v957_v23, 1  ;;  %v970_v45 = vrot.slane %v969_v37, 2  ;;  %v945_v49 = vmax.f32 %v943_v24, %v944_v33  ;;  %v952_v50 = vmax.f32 %v950_v25, %v951_v18 }
 0x189   : > { %v964_v44 = vmax.f32 %v962_v36, %v963_v34  ;;  %v978_v46 = vmax.f32 %v976_v29, %v977_v39  ;;  %v984_v43 = vrot.slane %v983_v40, 2  ;;  %v845_v51 = vrot.slane %v831_v3, %v2113_v48 }
 0x18a   : > { %v971_v53 = vmax.f32 %v969_v37, %v970_v45  ;;  %v959_v56 = vmax.f32 %v957_v23, %v958_v41  ;;  %v846_v38 = vcombine.high %v838_v42, %v838_v42  ;;  %v1044_v59 = vsel %vm931_vm7, %v838_v42, -inf }
 0x18b   : > { %v965_v52 = vrot.slane %v964_v44, 1  ;;  %v979_v54 = vrot.slane %v978_v46, 1  ;;  %v985_v55 = vmax.f32 %v983_v40, %v984_v43  ;;  %v1156_v28 = vsel %vm468_vm1, %v938_v47, -inf }
 0x18c   : > { %v972_v60 = vrot.slane %v971_v53, 1  ;;  %v1159_v35 = vsel %vm468_vm1, %v945_v49, -inf  ;;  %v1162_v62 = vsel %vm468_vm1, %v952_v50, -inf  ;;  %v847_v63 = vcombine.high %v845_v51, %v845_v51 }
 0x18d   : > { %v966_v31 = vmax.f32 %v964_v44, %v965_v52  ;;  %v980_v57 = vmax.f32 %v978_v46, %v979_v54  ;;  %v986_v61 = vrot.slane %v985_v55, 1  ;;  %v1165_v12 = vsel %vm468_vm1, %v959_v56, -inf }
 0x18e   : > { %v973_v4 = vmax.f32 %v971_v53, %v972_v60  ;;  %v1045_v16 = vrot.slane %v1044_v59, 4  ;;  %v1051_v17 = vsel %vm931_vm7, %v846_v38, -inf  ;;  %v1058_v19 = vsel %vm931_vm7, %v845_v51, -inf }
 0x18f   : > { %v987_v6 = vmax.f32 %v985_v55, %v986_v61  ;;  %v1157_v7 = vsel %vm468_vm1, %v966_v31, -inf  ;;  %v1163_v8 = vsel %vm468_vm1, %v980_v57, -inf  ;;  %v1065_v21 = vsel %vm931_vm7, %v847_v63, -inf }
 0x190   : > { %v1158_v13 = vmax.f32 %v1156_v28, %v1157_v7  ;;  %v1164_v14 = vmax.f32 %v1162_v62, %v1163_v8  ;;  %v1160_v5 = vsel %vm468_vm1, %v973_v4, -inf  ;;  %v1046_v25 = vmax.f32 %v1044_v59, %v1045_v16 }
 0x191   : > { %v1166_v1 = vsel %vm468_vm1, %v987_v6, -inf  ;;  %v1161_v58 = vmax.f32 %v1159_v35, %v1160_v5  ;;  %v1052_v26 = vrot.slane %v1051_v17, 4  ;;  %v1059_v3 = vrot.slane %v1058_v19, 4 }
 0x192   : > { %v1167_v0 = vmax.f32 %v1165_v12, %v1166_v1  ;;  %v1211_v20 = vadd.f32 %v2140_v10, %v1158_v13  ;;  %v1213_v2 = vadd.f32 %v2140_v10, %v1164_v14  ;;  %v1066_v32 = vrot.slane %v1065_v21, 4 }
 0x193   : > { %v1212_v22 = vadd.f32 %v2140_v10, %v1161_v58  ;;  %v1047_v37 = vrot.slane %v1046_v25, 2  ;;  %v1053_v39 = vmax.f32 %v1051_v17, %v1052_v26  ;;  %v1060_v44 = vmax.f32 %v1058_v19, %v1059_v3 }
 0x194   : > { %v1214_v11 = vadd.f32 %v2140_v10, %v1167_v0  ;;  %v1227_v9 = vmax.f32 %v1211_v20, 0.0  ;;  %v1229_v24 = vmax.f32 %v1213_v2, 0.0  ;;  %v1067_v46 = vmax.f32 %v1065_v21, %v1066_v32 }
 0x195   : > { %v1228_v36 = vmax.f32 %v1212_v22, 0.0  ;;  %v1048_v50 = vmax.f32 %v1046_v25, %v1047_v37  ;;  %v1054_v51 = vrot.slane %v1053_v39, 2  ;;  %v848_v52 = vcombine.high %v2123_v15, %v2123_v15 }
 0x196   : > { %v1230_v27 = vmax.f32 %v1214_v11, 0.0  ;;  %v1243_v29 = vpack.c.bf16 %v1227_v9, %v1227_v9  ;;  %v1245_v30 = vpack.c.bf16 %v1229_v24, %v1229_v24  ;;  %v1061_v55 = vrot.slane %v1060_v44, 2 }
 0x197   : > { %v1244_v33 = vpack.c.bf16 %v1228_v36, %v1228_v36  ;;  %v855_v56 = vrot.slane %v2123_v15, %v2113_v48  ;;  %v1068_v31 = vrot.slane %v1067_v46, 2  ;;  %v862_v60 = vrot.slane %v848_v52, %v2113_v48 }
 0x198   : > { %v1246_v18 = vpack.c.bf16 %v1230_v27, %v1230_v27  ;;  %v1281_v23 = vrot.slane %v1243_v29, %v2113_v48  ;;  %v1295_v34 = vrot.slane %v1245_v30, %v2113_v48  ;;  %v1055_v62 = vmax.f32 %v1053_v39, %v1054_v51 }
 0x199   : > { %v1288_v40 = vrot.slane %v1244_v33, %v2113_v48  ;;  %v863_v28 = vcombine.high %v855_v56, %v855_v56  ;;  %v1072_v35 = vsel %vm931_vm7, %v855_v56, -inf  ;;  %v864_v63 = vcombine.high %v862_v60, %v862_v60 }
 0x19a   : > { %v1302_v41 = vrot.slane %v1246_v18, %v2113_v48  ;;  %v1407_v42 = vrot.slane %v1295_v34, %v2113_v48  ;;  %v1393_v45 = vrot.slane %v1281_v23, %v2113_v48  ;;  %v1073_v4 = vrot.slane %v1072_v35, 4 }
 0x19b   : > { %v1400_v43 = vrot.slane %v1288_v40, %v2113_v48  ;;  %v1086_v6 = vsel %vm931_vm7, %v862_v60, -inf  ;;  %v1062_v8 = vmax.f32 %v1060_v44, %v1061_v55  ;;  %v1079_v15 = vsel %vm931_vm7, %v863_v28, -inf }
 0x19c   : > { %v1414_v47 = vrot.slane %v1302_v41, %v2113_v48  ;;  %v1501_v49 = vunpack.c.l.b16 %v1407_v42  ;;  %v1499_v38 = vunpack.c.l.b16 %v1393_v45  ;;  %v1087_v12 = vrot.slane %v1086_v6, 4 }
 0x19d   : > { %v1500_v53 = vunpack.c.l.b16 %v1400_v43  ;;  %v1074_v14 = vmax.f32 %v1072_v35, %v1073_v4  ;;  %v1080_v16 = vrot.slane %v1079_v15, 4  ;;  %v1093_v5 = vsel %vm931_vm7, %v864_v63, -inf }
 0x19e   : > { %v1502_v54 = vunpack.c.l.b16 %v1414_v47  ;;  %v1518_v59 = vrot.slane %v1501_v49, 6  ;;  %v1069_v17 = vmax.f32 %v1067_v46, %v1068_v31  ;;  %v1088_v19 = vmax.f32 %v1086_v6, %v1087_v12 }
 0x19f   : > { %v1515_v57 = vrot.slane %v1500_v53, 7  ;;  %v1094_v58 = vrot.slane %v1093_v5, 4  ;;  %v1049_v20 = vrot.slane %v1048_v50, 1  ;;  %v1075_v2 = vrot.slane %v1074_v14, 2 }
 0x1a0   : > { %v1521_v61 = vrot.slane %v1502_v54, 5  ;;  %v1081_v21 = vmax.f32 %v1079_v15, %v1080_v16  ;;  %v1063_v22 = vrot.slane %v1062_v8, 1  ;;  %v1089_v11 = vrot.slane %v1088_v19, 2 }
 0x1a1   : > { %v1517_v7 = vsel %vm1516_vm8, %v1515_v57, %v1499_v38  ;;  %v1095_v9 = vmax.f32 %v1093_v5, %v1094_v58  ;;  %v1056_v25 = vrot.slane %v1055_v62, 1  ;;  %v1076_v26 = vmax.f32 %v1074_v14, %v1075_v2 }
 0x1a2   : > { %v1520_v13 = vsel %vm1519_vm9, %v1518_v59, %v1517_v7  ;;  %v1082_v3 = vrot.slane %v1081_v21, 2  ;;  %v1070_v36 = vrot.slane %v1069_v17, 1  ;;  %v1090_v27 = vmax.f32 %v1088_v19, %v1089_v11 }
 0x1a3   : > { %v1523_v1 = vsel %vm1522_vm10, %v1521_v61, %v1520_v13  ;;  %v1096_v29 = vrot.slane %v1095_v9, 2  ;;  %v1050_v30 = vmax.f32 %v1048_v50, %v1049_v20  ;;  %v1077_v32 = vrot.slane %v1076_v26, 1 }
 0x1a4   : > { %v1542_v0 = vpack.c.b16 %v1523_v1, %v1523_v1  ;;  %v1083_v33 = vmax.f32 %v1081_v21, %v1082_v3  ;;  %v1064_v18 = vmax.f32 %v1062_v8, %v1063_v22  ;;  %v1091_v23 = vrot.slane %v1090_v27, 1 }
 0x1a5   : > { %v1097_v34 = vmax.f32 %v1095_v9, %v1096_v29  ;;  %v1057_v37 = vmax.f32 %v1055_v62, %v1056_v25  ;;  %v1078_v39 = vmax.f32 %v1076_v26, %v1077_v32  ;;  %v1071_v41 = vmax.f32 %v1069_v17, %v1070_v36 }
 0x1a6   : > { %v1552_v24 = vrot.slane %v1542_v0, %v2113_v48  ;;  %v1084_v40 = vrot.slane %v1083_v33, 1  ;;  %v1092_v42 = vmax.f32 %v1090_v27, %v1091_v23  ;;  %v1180_v45 = vsel %vm468_vm1, %v1050_v30, -inf }
 0x1a7   : > { %v1098_v44 = vrot.slane %v1097_v34, 1  ;;  %v1181_v43 = vsel %vm468_vm1, %v1078_v39, -inf  ;;  %v1186_v47 = vsel %vm468_vm1, %v1064_v18, -inf  ;;  %v1183_v52 = vsel %vm468_vm1, %v1057_v37, -inf }
 0x1a8   : > { %1578 = vst.msk [vmem:[%s2176_s23] sm:$0x3] %vm931_vm7, %v1552_v24  ;;  %v1085_v46 = vmax.f32 %v1083_v33, %v1084_v40  ;;  %v1182_v50 = vmax.f32 %v1180_v45, %v1181_v43  ;;  %v1187_v51 = vsel %vm468_vm1, %v1092_v42, -inf  ;;  %v1189_v55 = vsel %vm468_vm1, %v1071_v41, -inf }
 0x1a9   : > { %v1099_v49 = vmax.f32 %v1097_v34, %v1098_v44  ;;  %v1188_v54 = vmax.f32 %v1186_v47, %v1187_v51 }
 0x1aa   : > { %v1184_v53 = vsel %vm468_vm1, %v1085_v46, -inf  ;;  %v1219_v59 = vadd.f32 %v2140_v10, %v1182_v50 }
 0x1ab   : > { %v1185_v56 = vmax.f32 %v1183_v52, %v1184_v53  ;;  %v1190_v38 = vsel %vm468_vm1, %v1099_v49, -inf  ;;  %v1221_v57 = vadd.f32 %v2140_v10, %v1188_v54 }
 0x1ac   : > { %v1191_v60 = vmax.f32 %v1189_v55, %v1190_v38  ;;  %v1235_v62 = vmax.f32 %v1219_v59, 0.0 }
 0x1ad   : > { %v1220_v35 = vadd.f32 %v2140_v10, %v1185_v56  ;;  %v1237_v6 = vmax.f32 %v1221_v57, 0.0 }
 0x1ae   : > { %v1222_v4 = vadd.f32 %v2140_v10, %v1191_v60  ;;  %v1251_v12 = vpack.c.bf16 %v1235_v62, %v1235_v62 }
 0x1af   : > { %v1236_v15 = vmax.f32 %v1220_v35, 0.0  ;;  %v1253_v1 = vpack.c.bf16 %v1237_v6, %v1237_v6 }
 0x1b0   : > { %v732_v31 = vpop.f32.mrf.mxu0  ;;  %v1238_v5 = vmax.f32 %v1222_v4, 0.0  ;;  %v1337_v0 = vrot.slane %v1251_v12, %v2113_v48 }
 0x1b1   : > { %v797_v61 = vcombine.high %v732_v31, %v732_v31  ;;  %v804_v28 = vrot.slane %v732_v31, %v2113_v48  ;;  %v1252_v58 = vpack.c.bf16 %v1236_v15, %v1236_v15  ;;  %v1351_v9 = vrot.slane %v1253_v1, %v2113_v48 }
 0x1b2   : > { %v734_v63 = vpop.f32.mrf.mxu0  ;;  %v1254_v11 = vpack.c.bf16 %v1238_v5, %v1238_v5  ;;  %v1449_v18 = vrot.slane %v1337_v0, %v2113_v48 }
 0x1b3   : > { %v811_v7 = vrot.slane %v797_v61, %v2113_v48  ;;  %v812_v8 = vcombine.high %v804_v28, %v804_v28  ;;  %v988_v13 = vsel %vm931_vm7, %v804_v28, -inf  ;;  %v1344_v26 = vrot.slane %v1252_v58, %v2113_v48 }
 0x1b4   : > { %v735_v14 = vpop.f32.mrf.mxu0  ;;  %v2196_v16 = vpop.f32.mrf.mxu1  ;;  %v989_v19 = vrot.slane %v988_v13, 4  ;;  %v1358_v29 = vrot.slane %v1254_v11, %v2113_v48  ;;  %v1463_v30 = vrot.slane %v1351_v9, %v2113_v48  ;;  %v1507_v52 = vunpack.c.l.b16 %v1449_v18 }
 0x1b5   : > { %v813_v17 = vcombine.high %v811_v7, %v811_v7  ;;  %v995_v20 = vsel %vm931_vm7, %v812_v8, -inf  ;;  %v1002_v2 = vsel %vm931_vm7, %v811_v7, -inf  ;;  %v1456_v23 = vrot.slane %v1344_v26, %v2113_v48 }
 0x1b6   : > { %v737_v21 = vpop.f32.mrf.mxu0  ;;  %v750_v22 = vpop.f32.mrf.mxu1  ;;  %v990_v24 = vmax.f32 %v988_v13, %v989_v19  ;;  %v996_v25 = vrot.slane %v995_v20, 4  ;;  %v1003_v3 = vrot.slane %v1002_v2, 4  ;;  %v1470_v40 = vrot.slane %v1358_v29, %v2113_v48 }
 0x1b7   : > { %v1009_v36 = vsel %vm931_vm7, %v813_v17, -inf  ;;  %v1509_v41 = vunpack.c.l.b16 %v1463_v30  ;;  %v1508_v45 = vunpack.c.l.b16 %v1456_v23  ;;  %v814_v47 = vcombine.high %v735_v14, %v735_v14 }
 0x1b8   : > { %v2204_v27 = vpop.f32.mrf.mxu1  ;;  %v991_v32 = vrot.slane %v990_v24, 2  ;;  %v997_v33 = vmax.f32 %v995_v20, %v996_v25  ;;  %v1004_v34 = vmax.f32 %v1002_v2, %v1003_v3  ;;  %v1010_v37 = vrot.slane %v1009_v36, 4 }
 0x1b9   : > { %v1510_v49 = vunpack.c.l.b16 %v1470_v40  ;;  %v1532_v50 = vrot.slane %v1509_v41, 6  ;;  %v1530_v53 = vrot.slane %v1508_v45, 7  ;;  %v821_v55 = vrot.slane %v735_v14, %v2113_v48 }
 0x1ba   : > { %v753_v39 = vpop.f32.mrf.mxu1  ;;  %v992_v42 = vmax.f32 %v990_v24, %v991_v32  ;;  %v998_v44 = vrot.slane %v997_v33, 2  ;;  %v1005_v46 = vrot.slane %v1004_v34, 2  ;;  %v1011_v43 = vmax.f32 %v1009_v36, %v1010_v37 }
 0x1bb   : > { %v1534_v56 = vrot.slane %v1510_v49, 5  ;;  %v828_v59 = vrot.slane %v814_v47, %v2113_v48  ;;  %v1531_v31 = vsel %vm1516_vm8, %v1530_v53, %v1507_v52  ;;  %v829_v61 = vcombine.high %v821_v55, %v821_v55 }
 0x1bc   : > { %v999_v51 = vmax.f32 %v997_v33, %v998_v44  ;;  %v993_v54 = vrot.slane %v992_v42, 1  ;;  %v1006_v38 = vmax.f32 %v1004_v34, %v1005_v46  ;;  %v1012_v57 = vrot.slane %v1011_v43, 2 }
 0x1bd   : > { %v1533_v28 = vsel %vm1519_vm9, %v1532_v50, %v1531_v31  ;;  %v830_v35 = vcombine.high %v828_v59, %v828_v59  ;;  %v1016_v4 = vsel %vm931_vm7, %v821_v55, -inf  ;;  %v1023_v15 = vsel %vm931_vm7, %v829_v61, -inf }
 0x1be   : > { %v1000_v60 = vrot.slane %v999_v51, 1  ;;  %v1535_v62 = vsel %vm1522_vm10, %v1534_v56, %v1533_v28  ;;  %v994_v63 = vmax.f32 %v992_v42, %v993_v54  ;;  %v1007_v7 = vrot.slane %v1006_v38, 1 }
 0x1bf   : > { %v1544_v6 = vpack.c.b16 %v1535_v62, %v1535_v62  ;;  %v1017_v8 = vrot.slane %v1016_v4, 4  ;;  %v1013_v13 = vmax.f32 %v1011_v43, %v1012_v57  ;;  %v1024_v14 = vrot.slane %v1023_v15, 4 }
 0x1c0   : > { %v1001_v12 = vmax.f32 %v999_v51, %v1000_v60  ;;  %v1030_v5 = vsel %vm931_vm7, %v828_v59, -inf  ;;  %v1037_v58 = vsel %vm931_vm7, %v830_v35, -inf  ;;  %v1168_v0 = vsel %vm468_vm1, %v994_v63, -inf }
 0x1c1   : > { %v1566_v1 = vrot.slane %v1544_v6, %v2113_v48  ;;  %v1018_v17 = vmax.f32 %v1016_v4, %v1017_v8  ;;  %v1031_v19 = vrot.slane %v1030_v5, 4  ;;  %v1025_v20 = vmax.f32 %v1023_v15, %v1024_v14 }
 0x1c2   : > { %v1038_v2 = vrot.slane %v1037_v58, 4  ;;  %v865_v21 = vcombine.high %v2196_v16, %v2196_v16  ;;  %v1008_v22 = vmax.f32 %v1006_v38, %v1007_v7  ;;  %v872_v24 = vrot.slane %v2196_v16, %v2113_v48 }
 0x1c3   : > { %1580 = vst.msk [vmem:[%s2176_s23 + $0x4] sm:$0x3] %vm931_vm7, %v1566_v1  ;;  %v1019_v11 = vrot.slane %v1018_v17, 2  ;;  %v1032_v9 = vmax.f32 %v1030_v5, %v1031_v19  ;;  %v1014_v25 = vrot.slane %v1013_v13, 1  ;;  %v1026_v26 = vrot.slane %v1025_v20, 2 }
 0x1c4   : > { %v1039_v3 = vmax.f32 %v1037_v58, %v1038_v2  ;;  %v879_v36 = vrot.slane %v865_v21, %v2113_v48  ;;  %v880_v32 = vcombine.high %v872_v24, %v872_v24  ;;  %v1100_v33 = vsel %vm931_vm7, %v872_v24, -inf }
 0x1c5   : > { %v1020_v29 = vmax.f32 %v1018_v17, %v1019_v11  ;;  %v1033_v30 = vrot.slane %v1032_v9, 2  ;;  %v1027_v18 = vmax.f32 %v1025_v20, %v1026_v26  ;;  %v1101_v37 = vrot.slane %v1100_v33, 4 }
 0x1c6   : > { %v1040_v23 = vrot.slane %v1039_v3, 2  ;;  %v881_v34 = vcombine.high %v879_v36, %v879_v36  ;;  %v1107_v41 = vsel %vm931_vm7, %v880_v32, -inf  ;;  %v1114_v16 = vsel %vm931_vm7, %v879_v36, -inf }
 0x1c7   : > { %v1021_v39 = vrot.slane %v1020_v29, 1  ;;  %v1034_v40 = vmax.f32 %v1032_v9, %v1033_v30  ;;  %v1015_v42 = vmax.f32 %v1013_v13, %v1014_v25  ;;  %v1028_v44 = vrot.slane %v1027_v18, 1 }
 0x1c8   : > { %v1041_v45 = vmax.f32 %v1039_v3, %v1040_v23  ;;  %v1102_v46 = vmax.f32 %v1100_v33, %v1101_v37  ;;  %v1108_v49 = vrot.slane %v1107_v41, 4  ;;  %v1121_v50 = vsel %vm931_vm7, %v881_v34, -inf }
 0x1c9   : > { %v1022_v43 = vmax.f32 %v1020_v29, %v1021_v39  ;;  %v1035_v47 = vrot.slane %v1034_v40, 1  ;;  %v1171_v51 = vsel %vm468_vm1, %v1001_v12, -inf  ;;  %v1029_v52 = vmax.f32 %v1027_v18, %v1028_v44 }
 0x1ca   : > { %v1042_v53 = vrot.slane %v1041_v45, 1  ;;  %v1115_v54 = vrot.slane %v1114_v16, 4  ;;  %v1174_v55 = vsel %vm468_vm1, %v1008_v22, -inf  ;;  %v1103_v59 = vrot.slane %v1102_v46, 2 }
 0x1cb   : > { %v1036_v56 = vmax.f32 %v1034_v40, %v1035_v47  ;;  %v1169_v38 = vsel %vm468_vm1, %v1022_v43, -inf  ;;  %v1172_v57 = vsel %vm468_vm1, %v1029_v52, -inf  ;;  %v1122_v61 = vrot.slane %v1121_v50, 4 }
 0x1cc   : > { %v1043_v31 = vmax.f32 %v1041_v45, %v1042_v53  ;;  %v1170_v60 = vmax.f32 %v1168_v0, %v1169_v38  ;;  %v1177_v28 = vsel %vm468_vm1, %v1015_v42, -inf  ;;  %v1173_v35 = vmax.f32 %v1171_v51, %v1172_v57 }
 0x1cd   : > { %v1175_v62 = vsel %vm468_vm1, %v1036_v56, -inf  ;;  %v1109_v63 = vmax.f32 %v1107_v41, %v1108_v49  ;;  %v1116_v8 = vmax.f32 %v1114_v16, %v1115_v54  ;;  %v1104_v13 = vmax.f32 %v1102_v46, %v1103_v59 }
 0x1ce   : > { %v1176_v4 = vmax.f32 %v1174_v55, %v1175_v62  ;;  %v1178_v6 = vsel %vm468_vm1, %v1043_v31, -inf  ;;  %v1215_v7 = vadd.f32 %v2140_v10, %v1170_v60  ;;  %v1216_v12 = vadd.f32 %v2140_v10, %v1173_v35 }
 0x1cf   : > { %v1179_v15 = vmax.f32 %v1177_v28, %v1178_v6  ;;  %v1123_v1 = vmax.f32 %v1121_v50, %v1122_v61  ;;  %v882_v17 = vcombine.high %v2204_v27, %v2204_v27  ;;  %v1110_v0 = vrot.slane %v1109_v63, 2 }
 0x1d0   : > { %v1217_v14 = vadd.f32 %v2140_v10, %v1176_v4  ;;  %v1231_v5 = vmax.f32 %v1215_v7, 0.0  ;;  %v1232_v58 = vmax.f32 %v1216_v12, 0.0  ;;  %v1117_v21 = vrot.slane %v1116_v8, 2 }
 0x1d1   : > { %v1218_v19 = vadd.f32 %v2140_v10, %v1179_v15  ;;  %v889_v22 = vrot.slane %v2204_v27, %v2113_v48  ;;  %v1105_v24 = vrot.slane %v1104_v13, 1  ;;  %v1124_v3 = vrot.slane %v1123_v1, 2 }
 0x1d2   : > { %v1233_v20 = vmax.f32 %v1217_v14, 0.0  ;;  %v1247_v2 = vpack.c.bf16 %v1231_v5, %v1231_v5  ;;  %v1248_v9 = vpack.c.bf16 %v1232_v58, %v1232_v58  ;;  %v896_v36 = vrot.slane %v882_v17, %v2113_v48 }
 0x1d3   : > { %v1234_v11 = vmax.f32 %v1218_v19, 0.0  ;;  %v1111_v32 = vmax.f32 %v1109_v63, %v1110_v0  ;;  %v1118_v23 = vmax.f32 %v1116_v8, %v1117_v21  ;;  %v897_v34 = vcombine.high %v889_v22, %v889_v22 }
 0x1d4   : > { %v1249_v25 = vpack.c.bf16 %v1233_v20, %v1233_v20  ;;  %v1309_v26 = vrot.slane %v1247_v2, %v2113_v48  ;;  %v1316_v30 = vrot.slane %v1248_v9, %v2113_v48  ;;  %v898_v39 = vcombine.high %v896_v36, %v896_v36 }
 0x1d5   : > { %v1250_v29 = vpack.c.bf16 %v1234_v11, %v1234_v11  ;;  %v1128_v40 = vsel %vm931_vm7, %v889_v22, -inf  ;;  %v1106_v16 = vmax.f32 %v1104_v13, %v1105_v24  ;;  %v1125_v42 = vmax.f32 %v1123_v1, %v1124_v3 }
 0x1d6   : > { %v1323_v33 = vrot.slane %v1249_v25, %v2113_v48  ;;  %v1421_v18 = vrot.slane %v1309_v26, %v2113_v48  ;;  %v1428_v37 = vrot.slane %v1316_v30, %v2113_v48  ;;  %v1129_v44 = vrot.slane %v1128_v40, 4 }
 0x1d7   : > { %v1330_v27 = vrot.slane %v1250_v29, %v2113_v48  ;;  %v1135_v43 = vsel %vm931_vm7, %v897_v34, -inf  ;;  %v1142_v47 = vsel %vm931_vm7, %v896_v36, -inf  ;;  %v1149_v56 = vsel %vm931_vm7, %v898_v39, -inf }
 0x1d8   : > { %v1435_v41 = vrot.slane %v1323_v33, %v2113_v48  ;;  %v1504_v46 = vunpack.c.l.b16 %v1428_v37  ;;  %v1503_v49 = vunpack.c.l.b16 %v1421_v18  ;;  %v1130_v51 = vmax.f32 %v1128_v40, %v1129_v44 }
 0x1d9   : > { %v1442_v45 = vrot.slane %v1330_v27, %v2113_v48  ;;  %v1136_v52 = vrot.slane %v1135_v43, 4  ;;  %v1143_v55 = vrot.slane %v1142_v47, 4  ;;  %v1150_v60 = vrot.slane %v1149_v56, 4 }
 0x1da   : > { %v1505_v50 = vunpack.c.l.b16 %v1435_v41  ;;  %v1524_v54 = vrot.slane %v1504_v46, 7  ;;  %v1131_v59 = vrot.slane %v1130_v51, 2  ;;  %v1112_v28 = vrot.slane %v1111_v32, 1 }
 0x1db   : > { %v1506_v53 = vunpack.c.l.b16 %v1442_v45  ;;  %v1137_v31 = vmax.f32 %v1135_v43, %v1136_v52  ;;  %v1144_v35 = vmax.f32 %v1142_v47, %v1143_v55  ;;  %v1151_v6 = vmax.f32 %v1149_v56, %v1150_v60 }
 0x1dc   : > { %v1526_v38 = vrot.slane %v1505_v50, 6  ;;  %v1525_v57 = vsel %vm1516_vm8, %v1524_v54, %v1503_v49  ;;  %v1132_v63 = vmax.f32 %v1130_v51, %v1131_v59  ;;  %v1119_v8 = vrot.slane %v1118_v23, 1 }
 0x1dd   : > { %v1528_v61 = vrot.slane %v1506_v53, 5  ;;  %v1138_v4 = vrot.slane %v1137_v31, 2  ;;  %v1126_v15 = vrot.slane %v1125_v42, 1  ;;  %v1145_v12 = vrot.slane %v1144_v35, 2 }
 0x1de   : > { %v1527_v62 = vsel %vm1519_vm9, %v1526_v38, %v1525_v57  ;;  %v1133_v14 = vrot.slane %v1132_v63, 1  ;;  %v1152_v1 = vrot.slane %v1151_v6, 2  ;;  %v1113_v17 = vmax.f32 %v1111_v32, %v1112_v28 }
 0x1df   : > { %v1529_v7 = vsel %vm1522_vm10, %v1528_v61, %v1527_v62  ;;  %v1139_v5 = vmax.f32 %v1137_v31, %v1138_v4  ;;  %v1146_v19 = vmax.f32 %v1144_v35, %v1145_v12  ;;  %v1120_v21 = vmax.f32 %v1118_v23, %v1119_v8 }
 0x1e0   : > { %v1543_v13 = vpack.c.b16 %v1529_v7, %v1529_v7  ;;  %v1134_v0 = vmax.f32 %v1132_v63, %v1133_v14  ;;  %v1153_v2 = vmax.f32 %v1151_v6, %v1152_v1  ;;  %v1192_v22 = vsel %vm468_vm1, %v1106_v16, -inf }
 0x1e1   : > { %v1140_v20 = vrot.slane %v1139_v5, 1  ;;  %v1147_v11 = vrot.slane %v1146_v19, 1  ;;  %v1127_v9 = vmax.f32 %v1125_v42, %v1126_v15  ;;  %v1195_v29 = vsel %vm468_vm1, %v1113_v17, -inf }
 0x1e2   : > { %v1559_v58 = vrot.slane %v1543_v13, %v2113_v48  ;;  %v1154_v25 = vrot.slane %v1153_v2, 1  ;;  %v1193_v26 = vsel %vm468_vm1, %v1134_v0, -inf  ;;  %v1198_v33 = vsel %vm468_vm1, %v1120_v21, -inf }
 0x1e3   : > { %v1141_v24 = vmax.f32 %v1139_v5, %v1140_v20  ;;  %v1148_v3 = vmax.f32 %v1146_v19, %v1147_v11  ;;  %v1194_v36 = vmax.f32 %v1192_v22, %v1193_v26  ;;  %v1201_v27 = vsel %vm468_vm1, %v1127_v9, -inf }
 0x1e4   : > { %1579 = vst.msk [vmem:[%s2176_s23 + $0x2] sm:$0x3] %vm931_vm7, %v1559_v58  ;;  %v1155_v30 = vmax.f32 %v1153_v2, %v1154_v25 }
 0x1e5   : > { %v1196_v32 = vsel %vm468_vm1, %v1141_v24, -inf  ;;  %v1199_v23 = vsel %vm468_vm1, %v1148_v3, -inf  ;;  %v1223_v34 = vadd.f32 %v2140_v10, %v1194_v36 }
 0x1e6   : > { %v1197_v18 = vmax.f32 %v1195_v29, %v1196_v32  ;;  %v1200_v37 = vmax.f32 %v1198_v33, %v1199_v23  ;;  %v1202_v39 = vsel %vm468_vm1, %v1155_v30, -inf }
 0x1e7   : > { %v1203_v40 = vmax.f32 %v1201_v27, %v1202_v39  ;;  %v1239_v16 = vmax.f32 %v1223_v34, 0.0 }
 0x1e8   : > { %v1224_v41 = vadd.f32 %v2140_v10, %v1197_v18  ;;  %v1225_v42 = vadd.f32 %v2140_v10, %v1200_v37 }
 0x1e9   : > { %v1226_v44 = vadd.f32 %v2140_v10, %v1203_v40  ;;  %v1255_v46 = vpack.c.bf16 %v1239_v16, %v1239_v16 }
 0x1ea   : > { %v1240_v45 = vmax.f32 %v1224_v41, 0.0  ;;  %v1241_v43 = vmax.f32 %v1225_v42, 0.0 }
 0x1eb   : > { %v1242_v47 = vmax.f32 %v1226_v44, 0.0  ;;  %v1365_v50 = vrot.slane %v1255_v46, %v2113_v48 }
 0x1ec   : > { %v1256_v49 = vpack.c.bf16 %v1240_v45, %v1240_v45  ;;  %v1257_v51 = vpack.c.bf16 %v1241_v43, %v1241_v43 }
 0x1ed   : > { %v1258_v52 = vpack.c.bf16 %v1242_v47, %v1242_v47  ;;  %v1477_v56 = vrot.slane %v1365_v50, %v2113_v48 }
 0x1ee   : > { %v1372_v53 = vrot.slane %v1256_v49, %v2113_v48  ;;  %v1379_v54 = vrot.slane %v1257_v51, %v2113_v48 }
 0x1ef   : > { %v1386_v55 = vrot.slane %v1258_v52, %v2113_v48  ;;  %v1511_v57 = vunpack.c.l.b16 %v1477_v56 }
 0x1f0   : > { %v1484_v10 = vrot.slane %v1372_v53, %v2113_v48  ;;  %v1491_v38 = vrot.slane %v1379_v54, %v2113_v48 }
 0x1f1   : > { %v1498_v59 = vrot.slane %v1386_v55, %v2113_v48 }
 0x1f2   : > { %v1512_v31 = vunpack.c.l.b16 %v1484_v10  ;;  %v1513_v60 = vunpack.c.l.b16 %v1491_v38 }
 0x1f3   : > { %v1514_v61 = vunpack.c.l.b16 %v1498_v59 }
 0x1f4   : > { %v1536_v28 = vrot.slane %v1512_v31, 7  ;;  %v1538_v35 = vrot.slane %v1513_v60, 6 }
 0x1f5   : > { %v1540_v63 = vrot.slane %v1514_v61, 5 }
 0x1f6   : > { %v1537_v62 = vsel %vm1516_vm8, %v1536_v28, %v1511_v57 }
 0x1f7   : > { %v1539_v4 = vsel %vm1519_vm9, %v1538_v35, %v1537_v62 }
 0x1f8   : > { %v1541_v6 = vsel %vm1522_vm10, %v1540_v63, %v1539_v4 }
 0x1f9   : > { %v1545_v7 = vpack.c.b16 %v1541_v6, %v1541_v6 }
 0x1fb   : > { %v1573_v8 = vrot.slane %v1545_v7, %v2113_v48 }
 0x1fd   : > { %1581 = vst.msk [vmem:[%s2176_s23 + $0x6] sm:$0x3] %vm931_vm7, %v1573_v8 }
 0x1fe PF: > { %s13_s12 = sadd.s32 1, %s1759_s12  }
 0x1ff   : > { %p10_p4 = scmp.ge.s32.totalorder %s13_s12, 4  }
 0x201   :  { %12 = sbr.rel (!%p10_p4) target bundleno = 1 (0x1), region = 62 }

// kernel: qnetwork_forward.3
= control target key start
LH: loop header
LB: loop body
LE: loop exit
PB: predicated region body
PF: predicated region fallthrough
CT: control target
= control target key end

     0   :  { %s4176_s12 = smov 0   ;;  %s5611_s0 = inlined_call_operand.vmem [shape: bf16[2,18,18,3], index: 0, kind: input, shape index: {}]   ;;  %s5612_s1 = inlined_call_operand.vmem [shape: bf16[27,16], index: 1, kind: input, shape index: {}]   ;;  %s5613_s2 = inlined_call_operand.vmem [shape: f32[1,16], index: 2, kind: input, shape index: {}]   ;;  %s5614_s3 = inlined_call_operand.vmem [shape: bf16[2,8,8,16], index: 3, kind: output, shape index: {}]  }
   0x1 LB: > { %s3826_s13 = sadd.s32 4294967295, %s4144_s12   ;;  %p3830_p0 = scmp.ge.s32.totalorder %s4144_s12, 1  ;;  %s4144_s12 = sphi %s4176_s12, %s13_s12  }
   0x2   : > { %p137_p1 = scmp.lt.s32.totalorder %s4144_s12, 3 }
   0x4   : > { %p138_p2 = pnand %p3830_p0, %p137_p1 }
   0x5   : > { %p161_p3 = scmp.lt.s32.totalorder (!%p138_p2), %s3826_s13, 1  ;;  %s4146_s18 = smov (!%p138_p2), 9  }
   0x6   : > { %141 = sbr.rel (%p138_p2) target bundleno = 805 (0x325), region = 32  ;;  %s4147_s19 = smov (!%p138_p2), 6  }
   0x7   : > { %s4148_s20 = smov (!%p138_p2), 3   ;;  %s4149_s21 = smov (!%p138_p2), 12  }
   0x8   : > { %s4150_s22 = smov (!%p138_p2), 15   ;;  %s4151_s23 = smov (!%p138_p2), 18  }
   0x9   : > { %s4153_s26 = smov (!%p138_p2), 21   ;;  %s4154_s29 = smov (!%p138_p2), 24  }
   0xb   : > { %s5616_s13 = smov (!%p161_p3, %s3826_s13), 1  ;;  %vm579_vm0 = vcmask 1046528   ;;  %vm354_vm1 = vsmask.f32 7424  ;;  %vm1210_vm2 = vcmask 1044480   ;;  %vm1211_vm3 = vcmask 1045504  }
   0xc   : > { %s4078_s14 = smul.u32 216, %s5616_s13  ;;  %vm898_vm4 = vcmask 23552   ;;  %vm931_vm5 = vcmask 48128   ;;  %vm997_vm6 = vcmask 97280   ;;  %vm964_vm7 = vcmask 72704   ;;  %s3955_s5 = sshll.u32 %s5616_s13, 5 }
   0xd   : > { %vm1030_vm8 = vcmask 121856   ;;  %vm1063_vm9 = vcmask 146432   ;;  %vm1096_vm10 = vcmask 171008   ;;  %vm1129_vm11 = vcmask 195584   ;;  %s5036_s8 = scalar_lea.vmem %s5614_s3, %s3955_s5 }
   0xe   : > { %s4190_s17 = scalar_lea.vmem %s5611_s0, %s4078_s14  ;;  %vm1177_vm12 = vcmask 220160   ;;  %vm2082_vm13 = vcmask 123904   ;;  %vm2979_vm14 = vcmask 130048   ;;  %vm3628_vm15 = vcmask 1041409  }
   0xf   : > { %v4193_v0 = vld [vmem:[%s4190_s17 + $0x6c] sm:$0xff]   ;;  %v4203_v2 = vld [vmem:[%s4190_s17 + $0x60] sm:$0xff]   ;;  %v4100_v3 = vld [vmem:[%s4190_s17 + $0x68] ss:$0 sps:$4 sm:$0x11]  }
  0x10   : > { %v4196_v1 = vld [vmem:[%s4190_s17 + $0xc] sm:$0xff]   ;;  %681 = vrot.lane.b32.xlu1 %v4193_v0, %s4146_s18  ;;  %v4207_v4 = vld [vmem:[%s4190_s17] sm:$0xff]   ;;  %v607_v5 = vrot.slane %v4193_v0, 1  ;;  %v604_v6 = vrot.slane %v4203_v2, 1  ;;  %v605_v7 = vrot.slane %v4100_v3, 1  ;;  %v464_v26 = vshrl.u32 %v4193_v0, 16 }
  0x11   : > { %665 = vrot.lane.b32.xlu0 %v4196_v1, %s4146_s18  ;;  %v4102_v8 = vld [vmem:[%s4190_s17 + $0x8] ss:$0 sps:$4 sm:$0x11]   ;;  %v583_v9 = vrot.slane %v4196_v1, 1  ;;  %v580_v10 = vrot.slane %v4207_v4, 1  ;;  %v368_v16 = vshrl.u32 %v4196_v1, 16 }
  0x12   : > { %v4103_v11 = vld [vmem:[%s4190_s17 + $0x74] ss:$0 sps:$4 sm:$0x11]   ;;  %v4216_v12 = vsel %vm579_vm0, %v604_v6, %v605_v7  ;;  %v581_v13 = vrot.slane %v4102_v8, 1  ;;  %v370_v17 = vshll.u32 %v4196_v1, 16  ;;  %v356_v18 = vshrl.u32 %v4207_v4, 16 }
  0x13   : > { %v4104_v14 = vld [vmem:[%s4190_s17 + $0x14] ss:$0 sps:$4 sm:$0x11]   ;;  %v608_v15 = vrot.slane %v4103_v11, 1  ;;  %v358_v22 = vshll.u32 %v4207_v4, 16  ;;  %v363_v25 = vshll.u32 %v4102_v8, 16 }
  0x14   : > { %644 = vrot.lane.b32.xlu1 %v4216_v12, %s4147_s19  ;;  %v582_v19 = vsel %vm579_vm0, %v580_v10, %v581_v13  ;;  %v584_v20 = vrot.slane %v4104_v14, 1  ;;  %v375_v21 = vshll.u32 %v4104_v14, 16  ;;  %v372_v24 = vrot.slane %v370_v17, 1  ;;  %v4238_v39 = vld [vmem:[%s4190_s17 + $0x78] sm:$0xff]   ;;  %v4284_v10 = vld [vmem:[%s4190_s17 + $0x84] sm:$0xff]  }
  0x15   : > { %628 = vrot.lane.b32.xlu0 %v582_v19, %s4147_s19  ;;  %v4228_v23 = vsel %vm579_vm0, %v607_v5, %v608_v15  ;;  %v360_v29 = vrot.slane %v358_v22, 1  ;;  %v466_v30 = vshll.u32 %v4193_v0, 16  ;;  %v365_v32 = vrot.slane %v363_v25, 1  ;;  %v4244_v46 = vld [vmem:[%s4190_s17 + $0x18] sm:$0xff]   ;;  %v4291_v13 = vld [vmem:[%s4190_s17 + $0x24] sm:$0xff]  }
  0x16   : > { %v585_v27 = vsel %vm579_vm0, %v583_v9, %v584_v20  ;;  %v377_v28 = vrot.slane %v375_v21, 1  ;;  %v373_v31 = vor.u32 %v372_v24, %v368_v16  ;;  %v471_v33 = vshll.u32 %v4103_v11, 16  ;;  %v4107_v47 = vld [vmem:[%s4190_s17 + $0x80] ss:$0 sps:$4 sm:$0x11]  }
  0x17   : > { %v452_v34 = vshrl.u32 %v4203_v2, 16  ;;  %v361_v35 = vor.u32 %v360_v29, %v356_v18  ;;  %v468_v36 = vrot.slane %v466_v30, 1  ;;  %v454_v37 = vshll.u32 %v4203_v2, 16  ;;  %v4108_v52 = vld [vmem:[%s4190_s17 + $0x20] ss:$0 sps:$4 sm:$0x11]  }
  0x18   : > { %646 = vrot.lane.b32.xlu1 %v4228_v23, %s4147_s19  ;;  %v459_v38 = vshll.u32 %v4100_v3, 16  ;;  %v378_v40 = vsel %vm354_vm1, %v373_v31, %v377_v28  ;;  %v473_v41 = vrot.slane %v471_v33, 1  ;;  %v478_v50 = vshll.u32 %v4238_v39, 16  ;;  %v4111_v15 = vld [vmem:[%s4190_s17 + $0x8c] ss:$0 sps:$4 sm:$0x11]  }
  0x19   : > { %630 = vrot.lane.b32.xlu0 %v585_v27, %s4147_s19  ;;  %v366_v42 = vsel %vm354_vm1, %v361_v35, %v365_v32  ;;  %v469_v43 = vor.u32 %v468_v36, %v464_v26  ;;  %v456_v44 = vrot.slane %v454_v37, 1  ;;  %v382_v53 = vshll.u32 %v4244_v46, 16  ;;  %v4112_v18 = vld [vmem:[%s4190_s17 + $0x2c] ss:$0 sps:$4 sm:$0x11]   ;;  %v4128_v35 = vld [vmem:[%s5612_s1] sm:$0xff]  }
  0x1a   : > { %v461_v45 = vrot.slane %v459_v38, 1  ;;  %v476_v54 = vshrl.u32 %v4238_v39, 16  ;;  %v480_v55 = vrot.slane %v478_v50, 1  ;;  %v483_v56 = vshll.u32 %v4107_v47, 16  ;;  %v4125_v22 = vld [vmem:[%s5612_s1 + $0x8] sm:$0x3f]  }
  0x1b   : > { %v4249_v48 = vsel %vm354_vm1, %v469_v43, %v473_v41  ;;  %v457_v49 = vor.u32 %v456_v44, %v452_v34  ;;  %v380_v57 = vshrl.u32 %v4244_v46, 16  ;;  %v384_v58 = vrot.slane %v382_v53, 1 }
  0x1c   : > { %549 = vrot.lane.b32.xlu1 %v378_v40, %s4148_s20  ;;  %v387_v59 = vshll.u32 %v4108_v52, 16  ;;  %v481_v60 = vor.u32 %v480_v55, %v476_v54  ;;  %v485_v61 = vrot.slane %v483_v56, 1  ;;  %v610_v6 = vrot.slane %v4238_v39, 1 }
  0x1d   : > { %547 = vrot.lane.b32.xlu0 %v366_v42, %s4148_s20  ;;  %v4254_v51 = vsel %vm354_vm1, %v457_v49, %v461_v45  ;;  %v385_v62 = vor.u32 %v384_v58, %v380_v57  ;;  %v611_v7 = vrot.slane %v4107_v47, 1  ;;  %v586_v8 = vrot.slane %v4244_v46, 1  ;;  %v4340_v45 = vld [vmem:[%s4190_s17 + $0x90] sm:$0xff]   ;;  %v4115_v49 = vld [vmem:[%s4190_s17 + $0x98] ss:$0 sps:$4 sm:$0x11]  }
  0x1e   : > { %v389_v63 = vrot.slane %v387_v59, 1  ;;  %v4271_v3 = vsel %vm354_vm1, %v481_v60, %v485_v61  ;;  %v587_v9 = vrot.slane %v4108_v52, 1  ;;  %v490_v16 = vshll.u32 %v4284_v10, 16  ;;  %v4344_v47 = vld [vmem:[%s4190_s17 + $0x30] sm:$0xff]  }
  0x1f   : > { %v612_v11 = vsel %vm579_vm0, %v610_v6, %v611_v7  ;;  %v488_v17 = vshrl.u32 %v4284_v10, 16  ;;  %v394_v19 = vshll.u32 %v4291_v13, 16  ;;  %v495_v21 = vshll.u32 %v4111_v15, 16  ;;  %v4116_v52 = vld [vmem:[%s4190_s17 + $0x38] ss:$0 sps:$4 sm:$0x11]  }
  0x20   : > { %565 = vrot.lane.b32.xlu1 %v4249_v48, %s4148_s20  ;;  %v4275_v5 = vsel %vm354_vm1, %v385_v62, %v389_v63  ;;  %v588_v14 = vsel %vm579_vm0, %v586_v8, %v587_v9  ;;  %v492_v20 = vrot.slane %v490_v16, 1  ;;  %v4152_v24 = vmov 65535   ;;  %v4378_v16 = vld [vmem:[%s4190_s17 + $0x3c] sm:$0xff]  }
  0x21   : > { %563 = vrot.lane.b32.xlu0 %v4254_v51, %s4148_s20  ;;  %v1212_v25 = vsel %vm1210_vm2, 4294967295, %v4152_v24  ;;  %v392_v26 = vshrl.u32 %v4291_v13, 16  ;;  %v399_v28 = vshll.u32 %v4112_v18, 16  ;;  %v497_v32 = vrot.slane %v495_v21, 1 }
  0x22   : > { %v1213_v29 = vsel %vm1211_vm3, %v1212_v25, 0  ;;  %v493_v31 = vor.u32 %v492_v20, %v488_v17  ;;  %v613_v38 = vrot.slane %v4284_v10, 1  ;;  %v589_v41 = vrot.slane %v4291_v13, 1  ;;  %v4119_v17 = vld [vmem:[%s4190_s17 + $0xa4] ss:$0 sps:$4 sm:$0x11]  }
  0x23   : > { %v1215_v30 = vand.u32 %v4125_v22, %v1213_v29  ;;  %v401_v34 = vrot.slane %v399_v28, 1  ;;  %v590_v42 = vrot.slane %v4112_v18, 1  ;;  %v502_v50 = vshll.u32 %v4340_v45, 16 }
  0x24   : > { %683 = vrot.lane.b32.xlu1 %v4238_v39, %s4146_s18  ;;  %v498_v36 = vsel %vm354_vm1, %v493_v31, %v497_v32  ;;  %v406_v53 = vshll.u32 %v4344_v47, 16  ;;  %v500_v54 = vshrl.u32 %v4340_v45, 16  ;;  %v507_v56 = vshll.u32 %v4115_v49, 16 }
  0x25   : > { %667 = vrot.lane.b32.xlu0 %v4244_v46, %s4146_s18  ;;  %4038 = vmatprep.subr.bf16.mxu0 %v1215_v30  ;;  %v591_v44 = vsel %vm579_vm0, %v589_v41, %v590_v42  ;;  %v504_v55 = vrot.slane %v502_v50, 1  ;;  %v404_v57 = vshrl.u32 %v4344_v47, 16  ;;  %v411_v59 = vshll.u32 %v4116_v52, 16 }
  0x26   : > { %4074 = vmatprep.subr.bf16.mxu1 %v1215_v30  ;;  %4039 = vmatpush3.bf16.msra.mxu0 %v1215_v30  ;;  %v408_v58 = vrot.slane %v406_v53, 1  ;;  %v509_v61 = vrot.slane %v507_v56, 1  ;;  %v616_v6 = vrot.slane %v4340_v45, 1  ;;  %v617_v7 = vrot.slane %v4115_v49, 1 }
  0x27   : > { %4076 = vmatpush3.bf16.msra.mxu1 %v1215_v30  ;;  %4040 = vmatprep.subr.bf16.mxu0 %v4128_v35  ;;  %v505_v60 = vor.u32 %v504_v55, %v500_v54  ;;  %v413_v63 = vrot.slane %v411_v59, 1  ;;  %v592_v8 = vrot.slane %v4344_v47, 1  ;;  %v593_v9 = vrot.slane %v4116_v52, 1 }
  0x28   : > { %728 = vrot.lane.b32.xlu1 %v4249_v48, %s4149_s21  ;;  %4075 = vmatprep.subr.bf16.mxu1 %v4128_v35  ;;  %v409_v62 = vor.u32 %v408_v58, %v404_v57  ;;  %v418_v20 = vshll.u32 %v4378_v16, 16  ;;  %v519_v24 = vshll.u32 %v4119_v17, 16  ;;  %v416_v25 = vshrl.u32 %v4378_v16, 16  ;;  %v4439_v58 = vld [vmem:[%s4190_s17 + $0xa8] sm:$0xff]  }
  0x29   : > { %712 = vrot.lane.b32.xlu0 %v378_v40, %s4149_s21  ;;  %v614_v40 = vrot.slane %v4111_v15, 1  ;;  %v594_v15 = vsel %vm579_vm0, %v592_v8, %v593_v9  ;;  %v595_v42 = vrot.slane %v4378_v16, 1  ;;  %v524_v8 = vshrl.u32 %v4439_v58, 16 }
  0x2a   : > { %4041 = vmatpush3.bf16.msra.mxu0 %v4128_v35  ;;  %v521_v29 = vrot.slane %v519_v24, 1  ;;  %vm3637_vm2 = vcmask 1044484   ;;  %vm3640_vm3 = vcmask 1045509  }
  0x2b   : > { %4077 = vmatpush3.bf16.msra.mxu1 %v4128_v35  ;;  %v615_v43 = vsel %vm579_vm0, %v613_v38, %v614_v40  ;;  %v620_v40 = vrot.slane %v4119_v17, 1 }
  0x2c   : > { %730 = vrot.lane.b32.xlu1 %v4271_v3, %s4149_s21 }
  0x2d   : > { %714 = vrot.lane.b32.xlu0 %v4275_v5, %s4149_s21 }
  0x30   : > { %763 = vrot.lane.b32.xlu1 %v4228_v23, %s4150_s22 }
  0x31   : > { %747 = vrot.lane.b32.xlu0 %v585_v27, %s4150_s22  ;;  %v396_v27 = vrot.slane %v394_v19, 1  ;;  %v4120_v19 = vld [vmem:[%s4190_s17 + $0x44] ss:$0 sps:$4 sm:$0x11]  }
  0x33   : > { %v397_v33 = vor.u32 %v396_v27, %v392_v26  ;;  %v420_v26 = vrot.slane %v418_v20, 1  ;;  %v423_v27 = vshll.u32 %v4120_v19, 16 }
  0x34   : > { %765 = vrot.lane.b32.xlu1 %v612_v11, %s4150_s22 }
  0x35   : > { %749 = vrot.lane.b32.xlu0 %v588_v14, %s4150_s22  ;;  %v402_v37 = vsel %vm354_vm1, %v397_v33, %v401_v34  ;;  %v421_v30 = vor.u32 %v420_v26, %v416_v25  ;;  %v425_v31 = vrot.slane %v423_v27, 1 }
  0x37   : > { %v426_v35 = vsel %vm354_vm1, %v421_v30, %v425_v31 }
  0x38   : > { %800 = vrot.lane.b32.xlu1 %v4238_v39, %s4151_s23 }
  0x39   : > { %784 = vrot.lane.b32.xlu0 %v4244_v46, %s4151_s23 }
  0x3c   : > { %802 = vrot.lane.b32.xlu1 %v4284_v10, %s4151_s23 }
  0x3d   : > { %786 = vrot.lane.b32.xlu0 %v4291_v13, %s4151_s23 }
  0x40   : > { %847 = vrot.lane.b32.xlu1 %v4271_v3, %s4153_s26 }
  0x41   : > { %831 = vrot.lane.b32.xlu0 %v4275_v5, %s4153_s26 }
  0x44   : > { %849 = vrot.lane.b32.xlu1 %v498_v36, %s4153_s26 }
  0x45   : > { %833 = vrot.lane.b32.xlu0 %v402_v37, %s4153_s26 }
  0x48   : > { %882 = vrot.lane.b32.xlu1 %v612_v11, %s4154_s29 }
  0x49   : > { %866 = vrot.lane.b32.xlu0 %v588_v14, %s4154_s29 }
  0x4c   : > { %567 = vrot.lane.b32.xlu1 %v4271_v3, %s4148_s20  ;;  %v510_v3 = vsel %vm354_vm1, %v505_v60, %v509_v61  ;;  %v4445_v60 = vld [vmem:[%s4190_s17 + $0x48] sm:$0xff]  }
  0x4d   : > { %551 = vrot.lane.b32.xlu0 %v4275_v5, %s4148_s20  ;;  %v414_v5 = vsel %vm354_vm1, %v409_v62, %v413_v63  ;;  %v4123_v62 = vld [vmem:[%s4190_s17 + $0xb0] ss:$0 sps:$4 sm:$0x11]   ;;  %v526_v63 = vshll.u32 %v4439_v58, 16  ;;  %v428_v17 = vshrl.u32 %v4445_v60, 16 }
  0x4f   : > { %v528_v9 = vrot.slane %v526_v63, 1 }
  0x50   : > { %884 = vrot.lane.b32.xlu1 %v615_v43, %s4154_s29 }
  0x51   : > { %868 = vrot.lane.b32.xlu0 %v591_v44, %s4154_s29 }
  0x54   : > { %569 = vrot.lane.b32.xlu1 %v498_v36, %s4148_s20 }
  0x55   : > { %553 = vrot.lane.b32.xlu0 %v402_v37, %s4148_s20 }
  0x58   : > { %648 = vrot.lane.b32.xlu1 %v612_v11, %s4147_s19  ;;  %v618_v11 = vsel %vm579_vm0, %v616_v6, %v617_v7  ;;  %v430_v6 = vshll.u32 %v4445_v60, 16 }
  0x59   : > { %632 = vrot.lane.b32.xlu0 %v588_v14, %s4147_s19  ;;  %v4373_v14 = vld [vmem:[%s4190_s17 + $0x9c] sm:$0xff]  }
  0x5a   : > { %v514_v18 = vshll.u32 %v4373_v14, 16  ;;  %v512_v21 = vshrl.u32 %v4373_v14, 16  ;;  %v619_v38 = vrot.slane %v4373_v14, 1 }
  0x5c   : > { %650 = vrot.lane.b32.xlu1 %v615_v43, %s4147_s19  ;;  %v516_v22 = vrot.slane %v514_v18, 1  ;;  %v621_v49 = vsel %vm579_vm0, %v619_v38, %v620_v40  ;;  %v432_v18 = vrot.slane %v430_v6, 1  ;;  %v622_v38 = vrot.slane %v4439_v58, 1  ;;  %v4501_v6 = vld [vmem:[%s4190_s17 + $0xb4] sm:$0xff]  }
  0x5d   : > { %634 = vrot.lane.b32.xlu0 %v591_v44, %s4147_s19  ;;  %v623_v40 = vrot.slane %v4123_v62, 1 }
  0x5e   : > { %v517_v28 = vor.u32 %v516_v22, %v512_v21  ;;  %v529_v21 = vor.u32 %v528_v9, %v524_v8  ;;  %v433_v25 = vor.u32 %v432_v18, %v428_v17 }
  0x60   : > { %685 = vrot.lane.b32.xlu1 %v4284_v10, %s4146_s18  ;;  %v522_v33 = vsel %vm354_vm1, %v517_v28, %v521_v29 }
  0x61   : > { %669 = vrot.lane.b32.xlu0 %v4291_v13, %s4146_s18 }
  0x64   : > { %687 = vrot.lane.b32.xlu1 %v4340_v45, %s4146_s18 }
  0x65   : > { %671 = vrot.lane.b32.xlu0 %v4344_v47, %s4146_s18 }
  0x68   : > { %732 = vrot.lane.b32.xlu1 %v498_v36, %s4149_s21 }
  0x69   : > { %716 = vrot.lane.b32.xlu0 %v402_v37, %s4149_s21 }
  0x6c   : > { %734 = vrot.lane.b32.xlu1 %v510_v3, %s4149_s21 }
  0x6d   : > { %718 = vrot.lane.b32.xlu0 %v414_v5, %s4149_s21 }
  0x70   : > { %767 = vrot.lane.b32.xlu1 %v615_v43, %s4150_s22  ;;  %v596_v43 = vrot.slane %v4120_v19, 1 }
  0x71   : > { %751 = vrot.lane.b32.xlu0 %v591_v44, %s4150_s22 }
  0x72   : > { %v4424_v52 = vsel %vm579_vm0, %v595_v42, %v596_v43 }
  0x74   : > { %769 = vrot.lane.b32.xlu1 %v618_v11, %s4150_s22 }
  0x75   : > { %753 = vrot.lane.b32.xlu0 %v594_v15, %s4150_s22 }
  0x78   : > { %804 = vrot.lane.b32.xlu1 %v4340_v45, %s4151_s23 }
  0x79   : > { %788 = vrot.lane.b32.xlu0 %v4344_v47, %s4151_s23 }
  0x7c   : > { %806 = vrot.lane.b32.xlu1 %v4373_v14, %s4151_s23 }
  0x7d   : > { %790 = vrot.lane.b32.xlu0 %v4378_v16, %s4151_s23 }
  0x80   : > { %851 = vrot.lane.b32.xlu1 %v510_v3, %s4153_s26 }
  0x81   : > { %835 = vrot.lane.b32.xlu0 %v414_v5, %s4153_s26 }
  0x82   : > { %v4397_v32 = vpop.permute.xlu1 %681 }
  0x83   : > { %v4401_v34 = vpop.permute.xlu0 %665 }
  0x84   : > { %853 = vrot.lane.b32.xlu1 %v522_v33, %s4153_s26 }
  0x85   : > { %837 = vrot.lane.b32.xlu0 %v426_v35, %s4153_s26 }
  0x86   : > { %v4406_v36 = vpop.permute.xlu1 %644 }
  0x87   : > { %v4408_v37 = vpop.permute.xlu0 %628 }
  0x88   : > { %886 = vrot.lane.b32.xlu1 %v618_v11, %s4154_s29 }
  0x89   : > { %870 = vrot.lane.b32.xlu0 %v594_v15, %s4154_s29 }
  0x8a   : > { %v4413_v41 = vpop.permute.xlu1 %646 }
  0x8b   : > { %v4416_v44 = vpop.permute.xlu0 %630 }
  0x8c   : > { %571 = vrot.lane.b32.xlu1 %v510_v3, %s4148_s20 }
  0x8d   : > { %555 = vrot.lane.b32.xlu0 %v414_v5, %s4148_s20  ;;  %v4124_v5 = vld [vmem:[%s4190_s17 + $0x50] ss:$0 sps:$4 sm:$0x11]  }
  0x8e   : > { %v4421_v50 = vpop.permute.xlu1 %549  ;;  %v435_v19 = vshll.u32 %v4124_v5, 16  ;;  %v599_v42 = vrot.slane %v4124_v5, 1 }
  0x8f   : > { %v548_v53 = vpop.permute.xlu0 %547 }
  0x90   : > { %888 = vrot.lane.b32.xlu1 %v621_v49, %s4154_s29  ;;  %v437_v26 = vrot.slane %v435_v19, 1  ;;  %v900_v8 = vsel %vm898_vm4, %v4207_v4, %v548_v53 }
  0x91   : > { %872 = vrot.lane.b32.xlu0 %v4424_v52, %s4154_s29  ;;  %v933_v4 = vsel %vm931_vm5, %v900_v8, %v4408_v37  ;;  %v4530_v37 = vld [vmem:[%s4190_s17 + $0x5c] ss:$0 sps:$4 sm:$0x11]  }
  0x92   : > { %v4429_v54 = vpop.permute.xlu1 %565  ;;  %v4482_v30 = vsel %vm354_vm1, %v433_v25, %v437_v26  ;;  %v536_v25 = vshrl.u32 %v4501_v6, 16 }
  0x93   : > { %v564_v55 = vpop.permute.xlu0 %563 }
  0x94   : > { %573 = vrot.lane.b32.xlu1 %v522_v33, %s4148_s20  ;;  %v916_v43 = vsel %vm898_vm4, %v4203_v2, %v564_v55 }
  0x95   : > { %557 = vrot.lane.b32.xlu0 %v426_v35, %s4148_s20  ;;  %v949_v55 = vsel %vm931_vm5, %v916_v43, %v4406_v36  ;;  %v538_v36 = vshll.u32 %v4501_v6, 16 }
  0x96   : > { %v4433_v56 = vpop.permute.xlu1 %683  ;;  %v982_v53 = vsel %vm964_vm7, %v949_v55, %v4397_v32  ;;  %v447_v55 = vshll.u32 %v4530_v37, 16 }
  0x97   : > { %v4435_v57 = vpop.permute.xlu0 %667 }
  0x98   : > { %652 = vrot.lane.b32.xlu1 %v618_v11, %s4147_s19  ;;  %v531_v11 = vshll.u32 %v4123_v62, 16  ;;  %v4498_v62 = vsel %vm579_vm0, %v622_v38, %v623_v40  ;;  %v540_v38 = vrot.slane %v538_v36, 1 }
  0x99   : > { %636 = vrot.lane.b32.xlu0 %v594_v15, %s4147_s19 }
  0x9a   : > { %v4442_v59 = vpop.permute.xlu1 %728  ;;  %v533_v22 = vrot.slane %v531_v11, 1 }
  0x9b   : > { %v4447_v61 = vpop.permute.xlu0 %712  ;;  %v1015_v18 = vsel %vm997_vm6, %v982_v53, %v4442_v59 }
  0x9c   : > { %654 = vrot.lane.b32.xlu1 %v621_v49, %s4147_s19  ;;  %v4478_v28 = vsel %vm354_vm1, %v529_v21, %v533_v22  ;;  %v966_v21 = vsel %vm964_vm7, %v933_v4, %v4401_v34  ;;  %v918_v34 = vsel %vm898_vm4, %v4193_v0, %v4429_v54  ;;  %v902_v0 = vsel %vm898_vm4, %v4196_v1, %v4421_v50 }
  0x9d   : > { %638 = vrot.lane.b32.xlu0 %v4424_v52, %s4147_s19  ;;  %v999_v59 = vsel %vm997_vm6, %v966_v21, %v4447_v61  ;;  %v541_v4 = vor.u32 %v540_v38, %v536_v25  ;;  %v935_v50 = vsel %vm931_vm5, %v902_v0, %v4416_v44 }
  0x9e   : > { %v4454_v3 = vpop.permute.xlu1 %730 }
  0x9f   : > { %v4458_v7 = vpop.permute.xlu0 %714 }
  0xa0   : > { %689 = vrot.lane.b32.xlu1 %v4373_v14, %s4146_s18 }
  0xa1   : > { %673 = vrot.lane.b32.xlu0 %v4378_v16, %s4146_s18 }
  0xa2   : > { %v764_v15 = vpop.permute.xlu1 %763 }
  0xa3   : > { %v4466_v20 = vpop.permute.xlu0 %747  ;;  %v1048_v22 = vsel %vm1030_vm8, %v1015_v18, %v764_v15  ;;  %v449_v18 = vrot.slane %v447_v55, 1  ;;  %v4131_v55 = vld [vmem:[%s4190_s17 + $0xc0] sm:$0xff]  }
  0xa4   : > { %691 = vrot.lane.b32.xlu1 %v4439_v58, %s4146_s18  ;;  %v1032_v15 = vsel %vm1030_vm8, %v999_v59, %v4466_v20 }
  0xa5   : > { %675 = vrot.lane.b32.xlu0 %v4445_v60, %s4146_s18 }
  0xa6   : > { %v4472_v24 = vpop.permute.xlu1 %765 }
  0xa7   : > { %v4474_v27 = vpop.permute.xlu0 %749 }
  0xa8   : > { %736 = vrot.lane.b32.xlu1 %v522_v33, %s4149_s21 }
  0xa9   : > { %720 = vrot.lane.b32.xlu0 %v426_v35, %s4149_s21  ;;  %v598_v35 = vrot.slane %v4445_v60, 1 }
  0xaa   : > { %v801_v29 = vpop.permute.xlu1 %800 }
  0xab   : > { %v785_v31 = vpop.permute.xlu0 %784  ;;  %v4510_v9 = vsel %vm579_vm0, %v598_v35, %v599_v42  ;;  %v1081_v26 = vsel %vm1063_vm9, %v1048_v22, %v801_v29 }
  0xac   : > { %738 = vrot.lane.b32.xlu1 %v4478_v28, %s4149_s21  ;;  %v1065_v29 = vsel %vm1063_vm9, %v1032_v15, %v785_v31  ;;  %v951_v31 = vsel %vm931_vm5, %v918_v34, %v4413_v41 }
  0xad   : > { %722 = vrot.lane.b32.xlu0 %v4482_v30, %s4149_s21  ;;  %v984_v53 = vsel %vm964_vm7, %v951_v31, %v4433_v56  ;;  %v703_v31 = vshll.u32 %v4131_v55, 16 }
  0xae   : > { %v4489_v33 = vpop.permute.xlu1 %802  ;;  %v1017_v41 = vsel %vm997_vm6, %v984_v53, %v4454_v3 }
  0xaf   : > { %v4494_v63 = vpop.permute.xlu0 %786  ;;  %v1050_v56 = vsel %vm1030_vm8, %v1017_v41, %v4472_v24 }
  0xb0   : > { %771 = vrot.lane.b32.xlu1 %v621_v49, %s4150_s22  ;;  %v4513_v49 = vld [vmem:[%s4190_s17 + $0x54] sm:$0xff]   ;;  %v1083_v44 = vsel %vm1063_vm9, %v1050_v56, %v4489_v33 }
  0xb1   : > { %755 = vrot.lane.b32.xlu0 %v4424_v52, %s4150_s22  ;;  %v4520_v52 = vld [vmem:[%s4190_s17 + $0xbc] ss:$0 sps:$4 sm:$0x11]   ;;  %v442_v19 = vshll.u32 %v4513_v49, 16  ;;  %v440_v61 = vshrl.u32 %v4513_v49, 16  ;;  %v601_v15 = vrot.slane %v4513_v49, 1 }
  0xb2   : > { %v848_v5 = vpop.permute.xlu1 %847  ;;  %v543_v40 = vshll.u32 %v4520_v52, 16 }
  0xb3   : > { %v832_v11 = vpop.permute.xlu0 %831  ;;  %v1114_v35 = vsel %vm1096_vm10, %v1081_v26, %v848_v5  ;;  %v444_v8 = vrot.slane %v442_v19, 1  ;;  %v968_v19 = vsel %vm964_vm7, %v935_v50, %v4435_v57 }
  0xb4   : > { %773 = vrot.lane.b32.xlu1 %v4498_v62, %s4150_s22  ;;  %v1098_v54 = vsel %vm1096_vm10, %v1065_v29, %v832_v11  ;;  %v545_v36 = vrot.slane %v543_v40, 1  ;;  %v1001_v22 = vsel %vm997_vm6, %v968_v19, %v4458_v7  ;;  %v626_v40 = vrot.slane %v4520_v52, 1 }
  0xb5   : > { %757 = vrot.lane.b32.xlu0 %v4510_v9, %s4150_s22  ;;  %v445_v11 = vor.u32 %v444_v8, %v440_v61  ;;  %v1034_v25 = vsel %vm1030_vm8, %v1001_v22, %v4474_v27 }
  0xb6   : > { %v850_v17 = vpop.permute.xlu1 %849  ;;  %v546_v3 = vsel %vm354_vm1, %v541_v4, %v545_v36  ;;  %v1067_v59 = vsel %vm1063_vm9, %v1034_v25, %v4494_v63  ;;  %v705_v36 = vrot.slane %v703_v31, 1  ;;  %v744_v25 = vrot.slane %v4131_v55, 1 }
  0xb7   : > { %v834_v32 = vpop.permute.xlu0 %833  ;;  %v1116_v57 = vsel %vm1096_vm10, %v1083_v44, %v850_v17  ;;  %v450_v7 = vsel %vm354_vm1, %v445_v11, %v449_v18 }
  0xb8   : > { %808 = vrot.lane.b32.xlu1 %v4439_v58, %s4151_s23  ;;  %v1100_v33 = vsel %vm1096_vm10, %v1067_v59, %v834_v32  ;;  %v625_v32 = vrot.slane %v4501_v6, 1 }
  0xb9   : > { %792 = vrot.lane.b32.xlu0 %v4445_v60, %s4151_s23 }
  0xba   : > { %v883_v42 = vpop.permute.xlu1 %882  ;;  %v627_v61 = vsel %vm579_vm0, %v625_v32, %v626_v40  ;;  %v4680_v32 = vld [vmem:[%s4190_s17 + $0xd4] ss:$0 sps:$4 sm:$0x11]  }
  0xbb   : > { %v1147_v43 = vsel %vm1129_vm11, %v1114_v35, %v883_v42  ;;  %v867_v20 = vpop.permute.xlu0 %866  ;;  %v602_v35 = vrot.slane %v4530_v37, 1 }
  0xbc   : > { %810 = vrot.lane.b32.xlu1 %v4501_v6, %s4151_s23  ;;  %4058 = vmatprep.mubr.msk.bf16.mxu1 %vm1177_vm12, %v1147_v43  ;;  %v1131_v5 = vsel %vm1129_vm11, %v1098_v54, %v867_v20  ;;  %v4132_v20 = vld [vmem:[%s4190_s17 + $0xc8] ss:$0 sps:$4 sm:$0x11]  }
  0xbd   : > { %794 = vrot.lane.b32.xlu0 %v4513_v49, %s4151_s23  ;;  %4042 = vmatprep.mubr.msk.bf16.mxu0 %vm1177_vm12, %v1131_v5  ;;  %v603_v29 = vsel %vm579_vm0, %v601_v15, %v602_v35  ;;  %v708_v53 = vshll.u32 %v4132_v20, 16 }
  0xbe   : > { %v4570_v1 = vpop.permute.xlu1 %567 }
  0xbf   : > { %v4580_v21 = vpop.permute.xlu0 %551  ;;  %v710_v11 = vrot.slane %v708_v53, 1 }
  0xc0   : > { %855 = vrot.lane.b32.xlu1 %v4478_v28, %s4153_s26  ;;  %v904_v15 = vsel %vm898_vm4, %v4244_v46, %v4580_v21 }
  0xc1   : > { %839 = vrot.lane.b32.xlu0 %v4482_v30, %s4153_s26 }
  0xc2   : > { %v885_v24 = vpop.permute.xlu1 %884 }
  0xc3   : > { %v1149_v26 = vsel %vm1129_vm11, %v1116_v57, %v885_v24  ;;  %v869_v38 = vpop.permute.xlu0 %868  ;;  %v745_v57 = vrot.slane %v4132_v20, 1 }
  0xc4   : > { %857 = vrot.lane.b32.xlu1 %v546_v3, %s4153_s26  ;;  %4059 = vmatmul.mubr.msk.bf16.vlgmr.msra.gmra.mxu1 %vm1177_vm12, %v1149_v26  ;;  %v1133_v27 = vsel %vm1129_vm11, %v1100_v33, %v869_v38  ;;  %v4670_v26 = vld [vmem:[%s4190_s17 + $0xcc] sm:$0xff]   ;;  %v920_v33 = vsel %vm898_vm4, %v4238_v39, %v4570_v1 }
  0xc5   : > { %841 = vrot.lane.b32.xlu0 %v450_v7, %s4153_s26  ;;  %4043 = vmatmul.mubr.msk.bf16.vlgmr.msra.gmra.mxu0 %vm1177_vm12, %v1133_v27  ;;  %v822_v40 = vshll.u32 %v4670_v26, 16  ;;  %v820_v46 = vshrl.u32 %v4670_v26, 16 }
  0xc6   : > { %v4604_v17 = vpop.permute.xlu1 %569 }
  0xc7   : > { %v4606_v63 = vpop.permute.xlu0 %553  ;;  %v824_v31 = vrot.slane %v822_v40, 1 }
  0xc8   : > { %890 = vrot.lane.b32.xlu1 %v4498_v62, %s4154_s29 }
  0xc9   : > { %874 = vrot.lane.b32.xlu0 %v4510_v9, %s4154_s29 }
  0xca   : > { %v649_v34 = vpop.permute.xlu1 %648 }
  0xcb   : > { %v4616_v42 = vpop.permute.xlu0 %632  ;;  %v953_v27 = vsel %vm931_vm5, %v920_v33, %v649_v34 }
  0xcc   : > { %575 = vrot.lane.b32.xlu1 %v4478_v28, %s4148_s20  ;;  %v937_v1 = vsel %vm931_vm5, %v904_v15, %v4616_v42 }
  0xcd   : > { %559 = vrot.lane.b32.xlu0 %v4482_v30, %s4148_s20 }
  0xce   : > { %v4623_v52 = vpop.permute.xlu1 %650 }
  0xcf   : > { %v4626_v43 = vpop.permute.xlu0 %634 }
  0xd0   : > { %892 = vrot.lane.b32.xlu1 %v627_v61, %s4154_s29 }
  0xd1   : > { %876 = vrot.lane.b32.xlu0 %v603_v29, %s4154_s29 }
  0xd2   : > { %v686_v37 = vpop.permute.xlu1 %685 }
  0xd3   : > { %v670_v8 = vpop.permute.xlu0 %669  ;;  %v986_v35 = vsel %vm964_vm7, %v953_v27, %v686_v37  ;;  %v864_v27 = vrot.slane %v4680_v32, 1 }
  0xd4   : > { %577 = vrot.lane.b32.xlu1 %v546_v3, %s4148_s20  ;;  %v970_v34 = vsel %vm964_vm7, %v937_v1, %v670_v8 }
  0xd5   : > { %561 = vrot.lane.b32.xlu0 %v450_v7, %s4148_s20 }
  0xd6   : > { %v4632_v28 = vpop.permute.xlu1 %687 }
  0xd7   : > { %v4634_v30 = vpop.permute.xlu0 %671 }
  0xd8   : > { %656 = vrot.lane.b32.xlu1 %v4498_v62, %s4147_s19  ;;  %v701_v62 = vshrl.u32 %v4131_v55, 16 }
  0xd9   : > { %640 = vrot.lane.b32.xlu0 %v4510_v9, %s4147_s19 }
  0xda   : > { %v733_v0 = vpop.permute.xlu1 %732  ;;  %v706_v41 = vor.u32 %v705_v36, %v701_v62  ;;  %v827_v62 = vshll.u32 %v4680_v32, 16 }
  0xdb   : > { %v717_v54 = vpop.permute.xlu0 %716 }
  0xdc   : > { %658 = vrot.lane.b32.xlu1 %v627_v61, %s4147_s19  ;;  %v711_v56 = vsel %vm354_vm1, %v706_v41, %v710_v11  ;;  %v1003_v21 = vsel %vm997_vm6, %v970_v34, %v717_v54  ;;  %v922_v54 = vsel %vm898_vm4, %v4284_v10, %v4604_v17  ;;  %v825_v41 = vor.u32 %v824_v31, %v820_v46  ;;  %v4135_v17 = vld [vmem:[%s4190_s17 + $0x6c] sm:$0xff]  }
  0xdd   : > { %642 = vrot.lane.b32.xlu0 %v603_v29, %s4147_s19  ;;  %v829_v11 = vrot.slane %v827_v62, 1 }
  0xde   : > { %v4644_v5 = vpop.permute.xlu1 %734 }
  0xdf   : > { %v4646_v4 = vpop.permute.xlu0 %718  ;;  %v830_v33 = vsel %vm354_vm1, %v825_v41, %v829_v11  ;;  %vm3634_vm1 = vcmask 1043459  }
  0xe0   : > { %693 = vrot.lane.b32.xlu1 %v4501_v6, %s4146_s18 }
  0xe1   : > { %677 = vrot.lane.b32.xlu0 %v4513_v49, %s4146_s18 }
  0xe2   : > { %v768_v9 = vpop.permute.xlu1 %767 }
  0xe3   : > { %v752_v50 = vpop.permute.xlu0 %751 }
  0xe4   : > { %695 = vrot.lane.b32.xlu1 %v4131_v55, %s4146_s18  ;;  %v1036_v42 = vsel %vm1030_vm8, %v1003_v21, %v752_v50 }
  0xe5   : > { %679 = vrot.lane.b32.xlu0 %v4203_v2, %s4146_s18 }
  0xe6   : > { %v4655_v18 = vpop.permute.xlu1 %769 }
  0xe7   : > { %v4657_v19 = vpop.permute.xlu0 %753 }
  0xe8   : > { %740 = vrot.lane.b32.xlu1 %v546_v3, %s4149_s21  ;;  %v4667_v3 = vsel %vm579_vm0, %v744_v25, %v745_v57 }
  0xe9   : > { %724 = vrot.lane.b32.xlu0 %v450_v7, %s4149_s21 }
  0xea   : > { %v805_v22 = vpop.permute.xlu1 %804 }
  0xeb   : > { %v789_v44 = vpop.permute.xlu0 %788 }
  0xec   : > { %742 = vrot.lane.b32.xlu1 %v711_v56, %s4149_s21 }
  0xed   : > { %726 = vrot.lane.b32.xlu0 %v4254_v51, %s4149_s21 }
  0xee   : > { %v807_v24 = vpop.permute.xlu1 %806 }
  0xef   : > { %v791_v59 = vpop.permute.xlu0 %790 }
  0xf0   : > { %775 = vrot.lane.b32.xlu1 %v627_v61, %s4150_s22  ;;  %v1019_v61 = vsel %vm997_vm6, %v986_v35, %v733_v0 }
  0xf1   : > { %759 = vrot.lane.b32.xlu0 %v603_v29, %s4150_s22  ;;  %v1052_v29 = vsel %vm1030_vm8, %v1019_v61, %v768_v9 }
  0xf2   : > { %v852_v7 = vpop.permute.xlu1 %851  ;;  %v1085_v37 = vsel %vm1063_vm9, %v1052_v29, %v805_v22  ;;  %v906_v22 = vsel %vm898_vm4, %v4291_v13, %v4606_v63 }
  0xf3   : > { %v836_v38 = vpop.permute.xlu0 %835  ;;  %v1118_v0 = vsel %vm1096_vm10, %v1085_v37, %v852_v7 }
  0xf4   : > { %777 = vrot.lane.b32.xlu1 %v4667_v3, %s4150_s22 }
  0xf5   : > { %761 = vrot.lane.b32.xlu0 %v4216_v12, %s4150_s22 }
  0xf6   : > { %v854_v39 = vpop.permute.xlu1 %853 }
  0xf7   : > { %v838_v20 = vpop.permute.xlu0 %837 }
  0xf8   : > { %812 = vrot.lane.b32.xlu1 %v4131_v55, %s4151_s23  ;;  %v1069_v55 = vsel %vm1063_vm9, %v1036_v42, %v789_v44 }
  0xf9   : > { %796 = vrot.lane.b32.xlu0 %v4203_v2, %s4151_s23  ;;  %v1102_v53 = vsel %vm1096_vm10, %v1069_v55, %v836_v38  ;;  %v955_v2 = vsel %vm931_vm5, %v922_v54, %v4623_v52  ;;  %v939_v52 = vsel %vm931_vm5, %v906_v22, %v4626_v43 }
  0xfa   : > { %v887_v8 = vpop.permute.xlu1 %886  ;;  %v988_v10 = vsel %vm964_vm7, %v955_v2, %v4632_v28  ;;  %v972_v57 = vsel %vm964_vm7, %v939_v52, %v4634_v30 }
  0xfb   : > { %v1151_v36 = vsel %vm1129_vm11, %v1118_v0, %v887_v8  ;;  %v871_v9 = vpop.permute.xlu0 %870  ;;  %v1021_v25 = vsel %vm997_vm6, %v988_v10, %v4644_v5  ;;  %v1005_v28 = vsel %vm997_vm6, %v972_v57, %v4646_v4 }
  0xfc   : > { %814 = vrot.lane.b32.xlu1 %v4670_v26, %s4151_s23  ;;  %4062 = vmatprep.mubr.msk.bf16.mxu1 %vm1177_vm12, %v1151_v36  ;;  %v1135_v50 = vsel %vm1129_vm11, %v1102_v53, %v871_v9  ;;  %v1054_v13 = vsel %vm1030_vm8, %v1021_v25, %v4655_v18  ;;  %v1038_v43 = vsel %vm1030_vm8, %v1005_v28, %v4657_v19  ;;  %v863_v19 = vrot.slane %v4670_v26, 1 }
  0xfd   : > { %798 = vrot.lane.b32.xlu0 %v4135_v17, %s4151_s23  ;;  %4046 = vmatprep.mubr.msk.bf16.mxu0 %vm1177_vm12, %v1135_v50  ;;  %v1087_v7 = vsel %vm1063_vm9, %v1054_v13, %v807_v24  ;;  %v1071_v18 = vsel %vm1063_vm9, %v1038_v43, %v791_v59 }
  0xfe   : > { %v572_v44 = vpop.permute.xlu1 %571  ;;  %v1120_v5 = vsel %vm1096_vm10, %v1087_v7, %v854_v39  ;;  %v1104_v38 = vsel %vm1096_vm10, %v1071_v18, %v838_v20  ;;  %v865_v40 = vsel %vm579_vm0, %v863_v19, %v864_v27  ;;  %vm3631_vm0 = vcmask 1042434  }
  0xff   : > { %v556_v63 = vpop.permute.xlu0 %555 }
 0x100   : > { %859 = vrot.lane.b32.xlu1 %v711_v56, %s4153_s26  ;;  %v908_v54 = vsel %vm898_vm4, %v4344_v47, %v556_v63 }
 0x101   : > { %843 = vrot.lane.b32.xlu0 %v4254_v51, %s4153_s26 }
 0x102   : > { %v889_v30 = vpop.permute.xlu1 %888 }
 0x103   : > { %v1153_v56 = vsel %vm1129_vm11, %v1120_v5, %v889_v30  ;;  %v873_v4 = vpop.permute.xlu0 %872 }
 0x104   : > { %861 = vrot.lane.b32.xlu1 %v830_v33, %s4153_s26  ;;  %4063 = vmatmul.mubr.msk.bf16.gmra.mxu1 %vm1177_vm12, %v1153_v56  ;;  %v1137_v24 = vsel %vm1129_vm11, %v1104_v38, %v873_v4 }
 0x105   : > { %845 = vrot.lane.b32.xlu0 %v4249_v48, %s4153_s26  ;;  %4047 = vmatmul.mubr.msk.bf16.gmra.mxu0 %vm1177_vm12, %v1137_v24 }
 0x106   : > { %v574_v51 = vpop.permute.xlu1 %573 }
 0x107   : > { %v558_v59 = vpop.permute.xlu0 %557  ;;  %v926_v57 = vsel %vm898_vm4, %v4373_v14, %v574_v51 }
 0x108   : > { %894 = vrot.lane.b32.xlu1 %v4667_v3, %s4154_s29  ;;  %v910_v33 = vsel %vm898_vm4, %v4378_v16, %v558_v59 }
 0x109   : > { %878 = vrot.lane.b32.xlu0 %v4216_v12, %s4154_s29 }
 0x10a   : > { %v653_v15 = vpop.permute.xlu1 %652 }
 0x10b   : > { %v637_v35 = vpop.permute.xlu0 %636 }
 0x10c   : > { %896 = vrot.lane.b32.xlu1 %v865_v40, %s4154_s29  ;;  %v941_v2 = vsel %vm931_vm5, %v908_v54, %v637_v35 }
 0x10d   : > { %880 = vrot.lane.b32.xlu0 %v4228_v23, %s4154_s29  ;;  %v924_v23 = vsel %vm898_vm4, %v4340_v45, %v572_v44 }
 0x10e   : > { %v655_v48 = vpop.permute.xlu1 %654  ;;  %v957_v36 = vsel %vm931_vm5, %v924_v23, %v653_v15 }
 0x10f   : > { %v639_v26 = vpop.permute.xlu0 %638  ;;  %v959_v28 = vsel %vm931_vm5, %v926_v57, %v655_v48 }
 0x110   : > { %v943_v30 = vsel %vm931_vm5, %v910_v33, %v639_v26 }
 0x112   : > { %v690_v32 = vpop.permute.xlu1 %689 }
 0x113   : > { %v674_v39 = vpop.permute.xlu0 %673  ;;  %v990_v53 = vsel %vm964_vm7, %v957_v36, %v690_v32 }
 0x114   : > { %v974_v41 = vsel %vm964_vm7, %v941_v2, %v674_v39 }
 0x116   : > { %v692_v1 = vpop.permute.xlu1 %691 }
 0x117   : > { %v676_v61 = vpop.permute.xlu0 %675  ;;  %v992_v43 = vsel %vm964_vm7, %v959_v28, %v692_v1 }
 0x118   : > { %v976_v18 = vsel %vm964_vm7, %v943_v30, %v676_v61 }
 0x11a   : > { %v737_v34 = vpop.permute.xlu1 %736 }
 0x11b   : > { %v721_v3 = vpop.permute.xlu0 %720  ;;  %v1023_v50 = vsel %vm997_vm6, %v990_v53, %v737_v34 }
 0x11c   : > { %v1007_v45 = vsel %vm997_vm6, %v974_v41, %v721_v3 }
 0x11e   : > { %v739_v29 = vpop.permute.xlu1 %738 }
 0x11f   : > { %v723_v20 = vpop.permute.xlu0 %722  ;;  %v1025_v14 = vsel %vm997_vm6, %v992_v43, %v739_v29 }
 0x120   : > { %v1009_v4 = vsel %vm997_vm6, %v976_v18, %v723_v20 }
 0x122   : > { %v772_v46 = vpop.permute.xlu1 %771 }
 0x123   : > { %v756_v21 = vpop.permute.xlu0 %755  ;;  %v1056_v11 = vsel %vm1030_vm8, %v1023_v50, %v772_v46 }
 0x124   : > { %v1040_v17 = vsel %vm1030_vm8, %v1007_v45, %v756_v21 }
 0x126   : > { %v774_v12 = vpop.permute.xlu1 %773 }
 0x127   : > { %v758_v37 = vpop.permute.xlu0 %757  ;;  %v1058_v56 = vsel %vm1030_vm8, %v1025_v14, %v774_v12 }
 0x128   : > { %v1042_v16 = vsel %vm1030_vm8, %v1009_v4, %v758_v37 }
 0x12a   : > { %v809_v31 = vpop.permute.xlu1 %808 }
 0x12b   : > { %v793_v62 = vpop.permute.xlu0 %792  ;;  %v1089_v10 = vsel %vm1063_vm9, %v1056_v11, %v809_v31 }
 0x12c   : > { %v1073_v52 = vsel %vm1063_vm9, %v1040_v17, %v793_v62 }
 0x12e   : > { %v811_v42 = vpop.permute.xlu1 %810 }
 0x12f   : > { %v795_v0 = vpop.permute.xlu0 %794  ;;  %v1091_v24 = vsel %vm1063_vm9, %v1058_v56, %v811_v42 }
 0x130   : > { %v1075_v51 = vsel %vm1063_vm9, %v1042_v16, %v795_v0 }
 0x132   : > { %v856_v8 = vpop.permute.xlu1 %855 }
 0x133   : > { %v840_v55 = vpop.permute.xlu0 %839  ;;  %v1122_v47 = vsel %vm1096_vm10, %v1089_v10, %v856_v8 }
 0x134   : > { %v1106_v13 = vsel %vm1096_vm10, %v1073_v52, %v840_v55 }
 0x136   : > { %v858_v9 = vpop.permute.xlu1 %857 }
 0x137   : > { %v842_v22 = vpop.permute.xlu0 %841  ;;  %v1124_v19 = vsel %vm1096_vm10, %v1091_v24, %v858_v9 }
 0x138   : > { %v1108_v40 = vsel %vm1096_vm10, %v1075_v51, %v842_v22 }
 0x13a   : > { %v891_v44 = vpop.permute.xlu1 %890 }
 0x13b   : > { %v1155_v25 = vsel %vm1129_vm11, %v1122_v47, %v891_v44  ;;  %v875_v63 = vpop.permute.xlu0 %874  ;;  %v4155_v44 = vmov 1983009808  }
 0x13c   : > { %4066 = vmatprep.mubr.msk.bf16.mxu1 %vm1177_vm12, %v1155_v25  ;;  %v1139_v7 = vsel %vm1129_vm11, %v1106_v13, %v875_v63  ;;  %v1412_v52 = vunpack.c.l.s4 %v4155_v44  ;;  %v1414_v13 = vlaneseq }
 0x13d   : > { %4050 = vmatprep.mubr.msk.bf16.mxu0 %vm1177_vm12, %v1139_v7 }
 0x13e   : > { %v576_v5 = vpop.permute.xlu1 %575  ;;  %v1413_v4 = vunpack.c.0.s8 %v1412_v52 }
 0x13f   : > { %v560_v38 = vpop.permute.xlu0 %559  ;;  %v928_v53 = vsel %vm898_vm4, %v4439_v58, %v576_v5 }
 0x140   : > { %v912_v50 = vsel %vm898_vm4, %v4445_v60, %v560_v38 }
 0x142   : > { %v893_v27 = vpop.permute.xlu1 %892 }
 0x143   : > { %v1157_v59 = vsel %vm1129_vm11, %v1124_v19, %v893_v27  ;;  %v877_v15 = vpop.permute.xlu0 %876  ;;  %v1415_v27 = vshrl.u32 %v1414_v13, 7 }
 0x144   : > { %4067 = vmatmul.mubr.msk.bf16.gmra.mxu1 %vm1177_vm12, %v1157_v59  ;;  %v1141_v35 = vsel %vm1129_vm11, %v1108_v40, %v877_v15 }
 0x145   : > { %4051 = vmatmul.mubr.msk.bf16.gmra.mxu0 %vm1177_vm12, %v1141_v35 }
 0x146   : > { %v578_v48 = vpop.permute.xlu1 %577 }
 0x147   : > { %v562_v26 = vpop.permute.xlu0 %561  ;;  %v930_v10 = vsel %vm898_vm4, %v4501_v6, %v578_v48 }
 0x148   : > { %v914_v63 = vsel %vm898_vm4, %v4513_v49, %v562_v26  ;;  %vm3643_vm4 = vcmask 1046534  }
 0x14a   : > { %v657_v32 = vpop.permute.xlu1 %656 }
 0x14b   : > { %v641_v39 = vpop.permute.xlu0 %640  ;;  %v961_v2 = vsel %vm931_vm5, %v928_v53, %v657_v32 }
 0x14c   : > { %v945_v22 = vsel %vm931_vm5, %v912_v50, %v641_v39  ;;  %v4839_v39 = vsub.s32 %v1413_v4, %v1415_v27 }
 0x14e   : > { %v659_v1 = vpop.permute.xlu1 %658 }
 0x14f   : > { %v643_v61 = vpop.permute.xlu0 %642  ;;  %v963_v25 = vsel %vm931_vm5, %v930_v10, %v659_v1 }
 0x150   : > { %v947_v43 = vsel %vm931_vm5, %v914_v63, %v643_v61  ;;  %vm3646_vm5 = vcmask 1047559  }
 0x152   : > { %v694_v34 = vpop.permute.xlu1 %693 }
 0x153   : > { %v678_v3 = vpop.permute.xlu0 %677  ;;  %v994_v41 = vsel %vm964_vm7, %v961_v2, %v694_v34 }
 0x154   : > { %v978_v17 = vsel %vm964_vm7, %v945_v22, %v678_v3 }
 0x156   : > { %v696_v29 = vpop.permute.xlu1 %695 }
 0x157   : > { %v680_v20 = vpop.permute.xlu0 %679  ;;  %v996_v28 = vsel %vm964_vm7, %v963_v25, %v696_v29 }
 0x158   : > { %v980_v18 = vsel %vm964_vm7, %v947_v43, %v680_v20 }
 0x15a   : > { %v741_v46 = vpop.permute.xlu1 %740 }
 0x15b   : > { %v725_v21 = vpop.permute.xlu0 %724  ;;  %v1027_v45 = vsel %vm997_vm6, %v994_v41, %v741_v46 }
 0x15c   : > { %v1011_v60 = vsel %vm997_vm6, %v978_v17, %v725_v21 }
 0x15e   : > { %v743_v12 = vpop.permute.xlu1 %742 }
 0x15f   : > { %v727_v37 = vpop.permute.xlu0 %726  ;;  %v1029_v5 = vsel %vm997_vm6, %v996_v28, %v743_v12 }
 0x160   : > { %v1013_v24 = vsel %vm997_vm6, %v980_v18, %v727_v37  ;;  %vm3762_vm6 = vcmask 125952  }
 0x162   : > { %v776_v31 = vpop.permute.xlu1 %775 }
 0x163   : > { %v760_v62 = vpop.permute.xlu0 %759  ;;  %v1060_v58 = vsel %vm1030_vm8, %v1027_v45, %v776_v31 }
 0x164   : > { %v1044_v6 = vsel %vm1030_vm8, %v1011_v60, %v760_v62 }
 0x166   : > { %v778_v42 = vpop.permute.xlu1 %777 }
 0x167   : > { %v762_v0 = vpop.permute.xlu0 %761  ;;  %v1062_v56 = vsel %vm1030_vm8, %v1029_v5, %v778_v42 }
 0x168   : > { %v1046_v51 = vsel %vm1030_vm8, %v1013_v24, %v762_v0 }
 0x16a   : > { %v813_v8 = vpop.permute.xlu1 %812 }
 0x16b   : > { %v797_v23 = vpop.permute.xlu0 %796  ;;  %v1093_v57 = vsel %vm1063_vm9, %v1060_v58, %v813_v8 }
 0x16c   : > { %v1077_v30 = vsel %vm1063_vm9, %v1044_v6, %v797_v23 }
 0x16e   : > { %v815_v55 = vpop.permute.xlu1 %814 }
 0x16f   : > { %v799_v36 = vpop.permute.xlu0 %798  ;;  %v1095_v16 = vsel %vm1063_vm9, %v1062_v56, %v815_v55 }
 0x170   : > { %v1079_v15 = vsel %vm1063_vm9, %v1046_v51, %v799_v36 }
 0x172   : > { %v860_v54 = vpop.permute.xlu1 %859 }
 0x173   : > { %v844_v9 = vpop.permute.xlu0 %843  ;;  %v1126_v7 = vsel %vm1096_vm10, %v1093_v57, %v860_v54 }
 0x174   : > { %v1110_v49 = vsel %vm1096_vm10, %v1077_v30, %v844_v9 }
 0x176   : > { %v862_v11 = vpop.permute.xlu1 %861 }
 0x177   : > { %v846_v47 = vpop.permute.xlu0 %845  ;;  %v1128_v59 = vsel %vm1096_vm10, %v1095_v16, %v862_v11 }
 0x178   : > { %v1112_v48 = vsel %vm1096_vm10, %v1079_v15, %v846_v47 }
 0x17a   : > { %v895_v33 = vpop.permute.xlu1 %894 }
 0x17b   : > { %v1159_v14 = vsel %vm1129_vm11, %v1126_v7, %v895_v33  ;;  %v879_v38 = vpop.permute.xlu0 %878 }
 0x17c   : > { %4070 = vmatprep.mubr.msk.bf16.mxu1 %vm1177_vm12, %v1159_v14  ;;  %v1143_v19 = vsel %vm1129_vm11, %v1110_v49, %v879_v38 }
 0x17d   : > { %4054 = vmatprep.mubr.msk.bf16.mxu0 %vm1177_vm12, %v1143_v19 }
 0x17e   : > { %v897_v40 = vpop.permute.xlu1 %896 }
 0x17f   : > { %v1161_v35 = vsel %vm1129_vm11, %v1128_v59, %v897_v40  ;;  %v881_v26 = vpop.permute.xlu0 %880 }
 0x180   : > { %4071 = vmatmul.mubr.msk.bf16.gmra.mxu1 %vm1177_vm12, %v1161_v35  ;;  %v1145_v32 = vsel %vm1129_vm11, %v1112_v48, %v881_v26 }
 0x181   : > { %4055 = vmatmul.mubr.msk.bf16.gmra.mxu0 %vm1177_vm12, %v1145_v32 }
 0x184   : > { %v4060_v1 = vpop.f32.mrf.mxu1 }
 0x185   : > { %v1716_v61 = vcombine.high %v4060_v1, %v4060_v1  ;;  %v1723_v34 = vrot.slane %v4060_v1, %v4839_v39  ;;  %v4044_v3 = vpop.f32.mrf.mxu0 }
 0x186   : > { %v4843_v29 = vpop.f32.mrf.mxu1  ;;  %v1444_v20 = vcombine.high %v4044_v3, %v4044_v3  ;;  %v1451_v46 = vrot.slane %v4044_v3, %v4839_v39 }
 0x187   : > { %v1730_v21 = vrot.slane %v1716_v61, %v4839_v39  ;;  %v1731_v12 = vcombine.high %v1723_v34, %v1723_v34  ;;  %v2587_v37 = vsel %vm2082_vm13, %v1723_v34, -inf  ;;  %v1682_v31 = vcombine.high %v4843_v29, %v4843_v29  ;;  %v1251_v61 = vpop.f32.mrf.mxu0 }
 0x188   : > { %v4852_v62 = vrot.slane %v4843_v29, %v4839_v39  ;;  %v1458_v42 = vrot.slane %v1444_v20, %v4839_v39  ;;  %v1459_v0 = vcombine.high %v1451_v46, %v1451_v46  ;;  %v2139_v8 = vsel %vm2082_vm13, %v1451_v46, -inf }
 0x189   : > { %v1732_v23 = vcombine.high %v1730_v21, %v1730_v21  ;;  %v2140_v55 = vrot.slane %v2139_v8, 4  ;;  %v2588_v36 = vrot.slane %v2587_v37, 4  ;;  %v2594_v54 = vsel %vm2082_vm13, %v1731_v12, -inf }
 0x18a   : > { %v2601_v53 = vsel %vm2082_vm13, %v1730_v21, -inf  ;;  %v1460_v9 = vcombine.high %v1458_v42, %v1458_v42  ;;  %v2146_v2 = vsel %vm2082_vm13, %v1459_v0, -inf  ;;  %v2153_v50 = vsel %vm2082_vm13, %v1458_v42, -inf }
 0x18b   : > { %v2595_v41 = vrot.slane %v2594_v54, 4  ;;  %v2141_v11 = vmax.f32 %v2139_v8, %v2140_v55  ;;  %v2147_v22 = vrot.slane %v2146_v2, 4  ;;  %v2154_v45 = vrot.slane %v2153_v50, 4 }
 0x18c   : > { %v2589_v10 = vmax.f32 %v2587_v37, %v2588_v36  ;;  %v2160_v17 = vsel %vm2082_vm13, %v1460_v9, -inf  ;;  %v2602_v47 = vrot.slane %v2601_v53, 4  ;;  %v2608_v44 = vsel %vm2082_vm13, %v1732_v23, -inf }
 0x18d   : > { %v2596_v58 = vmax.f32 %v2594_v54, %v2595_v41  ;;  %v2142_v52 = vrot.slane %v2141_v11, 2  ;;  %v2148_v25 = vmax.f32 %v2146_v2, %v2147_v22  ;;  %v2155_v60 = vmax.f32 %v2153_v50, %v2154_v45 }
 0x18e   : > { %v2161_v57 = vrot.slane %v2160_v17, 4  ;;  %v2590_v13 = vrot.slane %v2589_v10, 2  ;;  %v2603_v28 = vmax.f32 %v2601_v53, %v2602_v47  ;;  %v2609_v6 = vrot.slane %v2608_v44, 4 }
 0x18f   : > { %v2597_v63 = vrot.slane %v2596_v58, 2  ;;  %v2143_v7 = vmax.f32 %v2141_v11, %v2142_v52  ;;  %v2149_v33 = vrot.slane %v2148_v25, 2  ;;  %v2156_v43 = vrot.slane %v2155_v60, 2 }
 0x190   : > { %v2162_v5 = vmax.f32 %v2160_v17, %v2161_v57  ;;  %v2591_v30 = vmax.f32 %v2589_v10, %v2590_v13  ;;  %v2604_v18 = vrot.slane %v2603_v28, 2  ;;  %v2610_v56 = vmax.f32 %v2608_v44, %v2609_v6 }
 0x191   : > { %v2598_v14 = vmax.f32 %v2596_v58, %v2597_v63  ;;  %v2144_v49 = vrot.slane %v2143_v7, 1  ;;  %v2150_v38 = vmax.f32 %v2148_v25, %v2149_v33  ;;  %v2157_v4 = vmax.f32 %v2155_v60, %v2156_v43 }
 0x192   : > { %v2163_v24 = vrot.slane %v2162_v5, 2  ;;  %v2592_v16 = vrot.slane %v2591_v30, 1  ;;  %v2605_v27 = vmax.f32 %v2603_v28, %v2604_v18  ;;  %v2611_v51 = vrot.slane %v2610_v56, 2 }
 0x193   : > { %v2599_v19 = vrot.slane %v2598_v14, 1  ;;  %v2145_v59 = vmax.f32 %v2143_v7, %v2144_v49  ;;  %v2151_v40 = vrot.slane %v2150_v38, 1  ;;  %v2158_v15 = vrot.slane %v2157_v4, 1 }
 0x194   : > { %v2164_v35 = vmax.f32 %v2162_v5, %v2163_v24  ;;  %v2593_v48 = vmax.f32 %v2591_v30, %v2592_v16  ;;  %v2606_v32 = vrot.slane %v2605_v27, 1  ;;  %v2612_v1 = vmax.f32 %v2610_v56, %v2611_v51 }
 0x195   : > { %v2600_v26 = vmax.f32 %v2598_v14, %v2599_v19  ;;  %v2152_v34 = vmax.f32 %v2150_v38, %v2151_v40  ;;  %v2159_v3 = vmax.f32 %v2157_v4, %v2158_v15  ;;  %v4863_v46 = vsel %vm2979_vm14, %v2145_v59, -inf }
 0x196   : > { %v2165_v20 = vrot.slane %v2164_v35, 1  ;;  %v2607_v21 = vmax.f32 %v2605_v27, %v2606_v32  ;;  %v2613_v12 = vrot.slane %v2612_v1, 1  ;;  %v4866_v37 = vsel %vm2979_vm14, %v2593_v48, -inf }
 0x197   : > { %v4869_v42 = vsel %vm2979_vm14, %v2600_v26, -inf  ;;  %v4872_v8 = vsel %vm2979_vm14, %v2152_v34, -inf  ;;  %v4875_v23 = vsel %vm2979_vm14, %v2159_v3, -inf  ;;  %v1410_v55 = vcombine.high %v1251_v61, %v1251_v61 }
 0x198   : > { %v2166_v0 = vmax.f32 %v2164_v35, %v2165_v20  ;;  %v2614_v36 = vmax.f32 %v2612_v1, %v2613_v12  ;;  %v4878_v54 = vsel %vm2979_vm14, %v2607_v21, -inf  ;;  %v1417_v53 = vrot.slane %v1251_v61, %v4839_v39 }
 0x199   : > { %v1696_v9 = vrot.slane %v1682_v31, %v4839_v39  ;;  %v1424_v50 = vrot.slane %v1410_v55, %v4839_v39  ;;  %v1697_v41 = vcombine.high %v4852_v62, %v4852_v62  ;;  %v2531_v11 = vsel %vm2082_vm13, %v4852_v62, -inf }
 0x19a   : > { %v4886_v2 = vsel %vm2979_vm14, %v2166_v0, -inf  ;;  %v4894_v22 = vsel %vm2979_vm14, %v2614_v36, -inf  ;;  %v1425_v45 = vcombine.high %v1417_v53, %v1417_v53  ;;  %v2083_v10 = vsel %vm2082_vm13, %v1417_v53, -inf }
 0x19b   : > { %v1698_v17 = vcombine.high %v1696_v9, %v1696_v9  ;;  %v1426_v29 = vcombine.high %v1424_v50, %v1424_v50  ;;  %v2084_v31 = vrot.slane %v2083_v10, 4  ;;  %v2097_v58 = vsel %vm2082_vm13, %v1424_v50, -inf }
 0x19c   : > { %v2532_v47 = vrot.slane %v2531_v11, 4  ;;  %v2090_v44 = vsel %vm2082_vm13, %v1425_v45, -inf  ;;  %v2098_v52 = vrot.slane %v2097_v58, 4  ;;  %v2538_v25 = vsel %vm2082_vm13, %v1697_v41, -inf  ;;  %v4907_v41 = vld [vmem:[%s5613_s2] ss:$0 sm:$0xff] }
 0x19d   : > { %v2545_v60 = vsel %vm2082_vm13, %v1696_v9, -inf  ;;  %v2085_v62 = vmax.f32 %v2083_v10, %v2084_v31  ;;  %v2091_v57 = vrot.slane %v2090_v44, 4  ;;  %v2104_v13 = vsel %vm2082_vm13, %v1426_v29, -inf }
 0x19e   : > { %v2533_v63 = vmax.f32 %v2531_v11, %v2532_v47  ;;  %v2099_v28 = vmax.f32 %v2097_v58, %v2098_v52  ;;  %v2105_v6 = vrot.slane %v2104_v13, 4  ;;  %v2539_v7 = vrot.slane %v2538_v25, 4 }
 0x19f   : > { %v2546_v33 = vrot.slane %v2545_v60, 4  ;;  %v2086_v43 = vrot.slane %v2085_v62, 2  ;;  %v2092_v5 = vmax.f32 %v2090_v44, %v2091_v57  ;;  %v2552_v14 = vsel %vm2082_vm13, %v1698_v17, -inf }
 0x1a0   : > { %v2534_v30 = vrot.slane %v2533_v63, 2  ;;  %v2100_v18 = vrot.slane %v2099_v28, 2  ;;  %v2106_v56 = vmax.f32 %v2104_v13, %v2105_v6  ;;  %v2540_v49 = vmax.f32 %v2538_v25, %v2539_v7 }
 0x1a1   : > { %v2547_v38 = vmax.f32 %v2545_v60, %v2546_v33  ;;  %v2087_v4 = vmax.f32 %v2085_v62, %v2086_v43  ;;  %v2093_v24 = vrot.slane %v2092_v5, 2  ;;  %v2553_v19 = vrot.slane %v2552_v14, 4 }
 0x1a2   : > { %v2535_v16 = vmax.f32 %v2533_v63, %v2534_v30  ;;  %v2101_v27 = vmax.f32 %v2099_v28, %v2100_v18  ;;  %v2107_v51 = vrot.slane %v2106_v56, 2  ;;  %v2541_v59 = vrot.slane %v2540_v49, 2 }
 0x1a3   : > { %v2548_v40 = vrot.slane %v2547_v38, 2  ;;  %v2088_v15 = vrot.slane %v2087_v4, 1  ;;  %v2094_v35 = vmax.f32 %v2092_v5, %v2093_v24  ;;  %v2554_v26 = vmax.f32 %v2552_v14, %v2553_v19 }
 0x1a4   : > { %v2536_v48 = vrot.slane %v2535_v16, 1  ;;  %v2102_v32 = vrot.slane %v2101_v27, 1  ;;  %v2108_v1 = vmax.f32 %v2106_v56, %v2107_v51  ;;  %v2542_v61 = vmax.f32 %v2540_v49, %v2541_v59 }
 0x1a5   : > { %v2549_v34 = vmax.f32 %v2547_v38, %v2548_v40  ;;  %v2089_v3 = vmax.f32 %v2087_v4, %v2088_v15  ;;  %v2095_v20 = vrot.slane %v2094_v35, 1  ;;  %v2555_v12 = vrot.slane %v2554_v26, 2  ;;  %v4045_v4 = vpop.f32.mrf.mxu0 }
 0x1a6   : > { %v2537_v21 = vmax.f32 %v2535_v16, %v2536_v48  ;;  %v2103_v0 = vmax.f32 %v2101_v27, %v2102_v32  ;;  %v2109_v55 = vrot.slane %v2108_v1, 1  ;;  %v2543_v36 = vrot.slane %v2542_v61, 1 }
 0x1a7   : > { %v2550_v53 = vrot.slane %v2549_v34, 1  ;;  %v2096_v9 = vmax.f32 %v2094_v35, %v2095_v20  ;;  %v2980_v50 = vsel %vm2979_vm14, %v2089_v3, -inf  ;;  %v2556_v11 = vmax.f32 %v2554_v26, %v2555_v12 }
 0x1a8   : > { %v3076_v45 = vsel %vm2979_vm14, %v2537_v21, -inf  ;;  %v2110_v10 = vmax.f32 %v2108_v1, %v2109_v55  ;;  %v2982_v17 = vmax.f32 %v2980_v50, %v4863_v46  ;;  %v2986_v29 = vsel %vm2979_vm14, %v2103_v0, -inf }
 0x1a9   : > { %v2544_v31 = vmax.f32 %v2542_v61, %v2543_v36  ;;  %v2983_v58 = vsel %vm2979_vm14, %v2096_v9, -inf  ;;  %v2988_v47 = vmax.f32 %v2986_v29, %v4875_v23  ;;  %v2551_v44 = vmax.f32 %v2549_v34, %v2550_v53 }
 0x1aa   : > { %v2557_v52 = vrot.slane %v2556_v11, 1  ;;  %v2985_v25 = vmax.f32 %v2983_v58, %v4872_v8  ;;  %v2989_v60 = vsel %vm2979_vm14, %v2110_v10, -inf  ;;  %v3179_v62 = vadd.f32 %v4907_v41, %v2982_v17 }
 0x1ab   : > { %v3078_v57 = vmax.f32 %v3076_v45, %v4866_v37  ;;  %v2991_v13 = vmax.f32 %v2989_v60, %v4886_v2  ;;  %v3181_v46 = vadd.f32 %v4907_v41, %v2988_v47  ;;  %v3079_v28 = vsel %vm2979_vm14, %v2544_v31, -inf  ;;  %v4061_v31 = vpop.f32.mrf.mxu1 }
 0x1ac   : > { %v2558_v63 = vmax.f32 %v2556_v11, %v2557_v52  ;;  %v3180_v23 = vadd.f32 %v4907_v41, %v2985_v25  ;;  %v3243_v6 = vmax.f32 %v3179_v62, 0.0  ;;  %v3081_v8 = vmax.f32 %v3079_v28, %v4869_v42  ;;  %v1254_v25 = vpop.f32.mrf.mxu0 }
 0x1ad   : > { %v3082_v7 = vsel %vm2979_vm14, %v2551_v44, -inf  ;;  %v3182_v33 = vadd.f32 %v4907_v41, %v2991_v13  ;;  %v3245_v43 = vmax.f32 %v3181_v46, 0.0  ;;  %v3211_v18 = vadd.f32 %v4907_v41, %v3078_v57 }
 0x1ae   : > { %v3084_v37 = vmax.f32 %v3082_v7, %v4878_v54  ;;  %v3085_v2 = vsel %vm2979_vm14, %v2558_v63, -inf  ;;  %v3244_v5 = vmax.f32 %v3180_v23, 0.0  ;;  %v3956_v30 = vpack.c.bf16 %v3243_v6, %v3243_v6 }
 0x1af   : > { %v3087_v14 = vmax.f32 %v3085_v2, %v4894_v22  ;;  %v3246_v56 = vmax.f32 %v3182_v33, 0.0  ;;  %v3958_v49 = vpack.c.bf16 %v3245_v43, %v3245_v43  ;;  %v3212_v38 = vadd.f32 %v4907_v41, %v3081_v8 }
 0x1b0   : > { %v3213_v42 = vadd.f32 %v4907_v41, %v3084_v37  ;;  %v3957_v24 = vpack.c.bf16 %v3244_v5, %v3244_v5  ;;  %v3563_v16 = vunpack.c.l.b16 %v3956_v30  ;;  %v3275_v54 = vmax.f32 %v3211_v18, 0.0 }
 0x1b1   : > { %v3214_v19 = vadd.f32 %v4907_v41, %v3087_v14  ;;  %v3959_v27 = vpack.c.bf16 %v3246_v56, %v3246_v56  ;;  %v3565_v51 = vunpack.c.l.b16 %v3958_v49  ;;  %v3276_v59 = vmax.f32 %v3212_v38, 0.0 }
 0x1b2   : > { %v3277_v40 = vmax.f32 %v3213_v42, 0.0  ;;  %v3564_v15 = vunpack.c.l.b16 %v3957_v24  ;;  %v3988_v35 = vpack.c.bf16 %v3275_v54, %v3275_v54  ;;  %v1461_v48 = vcombine.high %v4045_v4, %v4045_v4 }
 0x1b3   : > { %v3278_v22 = vmax.f32 %v3214_v19, 0.0  ;;  %v3566_v26 = vunpack.c.l.b16 %v3959_v27  ;;  %v3630_v32 = vrot.slane %v3565_v51, 6  ;;  %v3989_v1 = vpack.c.bf16 %v3276_v59, %v3276_v59 }
 0x1b4   : > { %v3990_v61 = vpack.c.bf16 %v3277_v40, %v3277_v40  ;;  %v3627_v34 = vrot.slane %v3564_v15, 7  ;;  %v3595_v20 = vunpack.c.l.b16 %v3988_v35  ;;  %v1468_v21 = vrot.slane %v4045_v4, %v4839_v39 }
 0x1b5   : > { %v3991_v3 = vpack.c.bf16 %v3278_v22, %v3278_v22  ;;  %v4933_v12 = vrot.slane %v3566_v26, 5  ;;  %v3596_v0 = vunpack.c.l.b16 %v3989_v1  ;;  %v1475_v36 = vrot.slane %v1461_v48, %v4839_v39 }
 0x1b6   : > { %v3597_v55 = vunpack.c.l.b16 %v3990_v61  ;;  %v3629_v53 = vsel %vm3628_vm15, %v3627_v34, %v3563_v16  ;;  %v1476_v50 = vcombine.high %v1468_v21, %v1468_v21  ;;  %v2167_v11 = vsel %vm2082_vm13, %v1468_v21, -inf }
 0x1b7   : > { %v3598_v9 = vunpack.c.l.b16 %v3991_v3  ;;  %v4939_v45 = vsel %vm3631_vm0, %v3630_v32, %v3629_v53  ;;  %v3690_v10 = vrot.slane %v3596_v0, 7  ;;  %v1477_v29 = vcombine.high %v1475_v36, %v1475_v36 }
 0x1b8   : > { %v3692_v17 = vrot.slane %v3597_v55, 6  ;;  %v2168_v47 = vrot.slane %v2167_v11, 4  ;;  %v2174_v44 = vsel %vm2082_vm13, %v1476_v50, -inf  ;;  %v2181_v52 = vsel %vm2082_vm13, %v1475_v36, -inf }
 0x1b9   : > { %v4941_v58 = vrot.slane %v3598_v9, 5  ;;  %v3691_v60 = vsel %vm3628_vm15, %v3690_v10, %v3595_v20  ;;  %v2175_v62 = vrot.slane %v2174_v44, 4  ;;  %v2182_v57 = vrot.slane %v2181_v52, 4 }
 0x1ba   : > { %v2188_v13 = vsel %vm2082_vm13, %v1477_v29, -inf  ;;  %v4948_v46 = vsel %vm3631_vm0, %v3692_v17, %v3691_v60  ;;  %v2169_v63 = vmax.f32 %v2167_v11, %v2168_v47  ;;  %v1733_v23 = vcombine.high %v4061_v31, %v4061_v31 }
 0x1bb   : > { %v2189_v28 = vrot.slane %v2188_v13, 4  ;;  %v2176_v6 = vmax.f32 %v2174_v44, %v2175_v62  ;;  %v2183_v8 = vmax.f32 %v2181_v52, %v2182_v57  ;;  %v1740_v7 = vrot.slane %v4061_v31, %v4839_v39 }
 0x1bc   : > { %v1427_v33 = vcombine.high %v1254_v25, %v1254_v25  ;;  %v2170_v43 = vrot.slane %v2169_v63, 2  ;;  %v1747_v2 = vrot.slane %v1733_v23, %v4839_v39  ;;  %v1434_v5 = vrot.slane %v1254_v25, %v4839_v39 }
 0x1bd   : > { %v2190_v37 = vmax.f32 %v2188_v13, %v2189_v28  ;;  %v2177_v30 = vrot.slane %v2176_v6, 2  ;;  %v2184_v14 = vrot.slane %v2183_v8, 2  ;;  %v1748_v18 = vcombine.high %v1740_v7, %v1740_v7 }
 0x1be   : > { %v2615_v56 = vsel %vm2082_vm13, %v1740_v7, -inf  ;;  %v2171_v49 = vmax.f32 %v2169_v63, %v2170_v43  ;;  %v1749_v42 = vcombine.high %v1747_v2, %v1747_v2  ;;  %v2629_v54 = vsel %vm2082_vm13, %v1747_v2, -inf }
 0x1bf   : > { %v2191_v38 = vrot.slane %v2190_v37, 2  ;;  %v2616_v4 = vrot.slane %v2615_v56, 4  ;;  %v2178_v24 = vmax.f32 %v2176_v6, %v2177_v30  ;;  %v2185_v16 = vmax.f32 %v2183_v8, %v2184_v14 }
 0x1c0   : > { %v2622_v19 = vsel %vm2082_vm13, %v1748_v18, -inf  ;;  %v2172_v27 = vrot.slane %v2171_v49, 1  ;;  %v2630_v35 = vrot.slane %v2629_v54, 4  ;;  %v2636_v48 = vsel %vm2082_vm13, %v1749_v42, -inf  ;;  %v1318_v18 = vpop.f32.mrf.mxu1 }
 0x1c1   : > { %v2192_v51 = vmax.f32 %v2190_v37, %v2191_v38  ;;  %v2617_v59 = vmax.f32 %v2615_v56, %v2616_v4  ;;  %v2623_v40 = vrot.slane %v2622_v19, 4  ;;  %v2179_v15 = vrot.slane %v2178_v24, 1 }
 0x1c2   : > { %v2186_v22 = vrot.slane %v2185_v16, 1  ;;  %v2173_v26 = vmax.f32 %v2171_v49, %v2172_v27  ;;  %v2631_v20 = vmax.f32 %v2629_v54, %v2630_v35  ;;  %v2637_v21 = vrot.slane %v2636_v48, 4 }
 0x1c3   : > { %v2193_v32 = vrot.slane %v2192_v51, 1  ;;  %v2618_v1 = vrot.slane %v2617_v59, 2  ;;  %v2624_v61 = vmax.f32 %v2622_v19, %v2623_v40  ;;  %v2180_v34 = vmax.f32 %v2178_v24, %v2179_v15 }
 0x1c4   : > { %v2187_v3 = vmax.f32 %v2185_v16, %v2186_v22  ;;  %v4958_v55 = vsel %vm2979_vm14, %v2173_v26, -inf  ;;  %v2632_v11 = vrot.slane %v2631_v20, 2  ;;  %v2638_v10 = vmax.f32 %v2636_v48, %v2637_v21 }
 0x1c5   : > { %v2194_v0 = vmax.f32 %v2192_v51, %v2193_v32  ;;  %v2619_v36 = vmax.f32 %v2617_v59, %v2618_v1  ;;  %v2625_v53 = vrot.slane %v2624_v61, 2  ;;  %v4961_v9 = vsel %vm2979_vm14, %v2180_v34, -inf  ;;  %v4988_v40 = vpop.f32.mrf.mxu0 }
 0x1c6   : > { %v4964_v50 = vsel %vm2979_vm14, %v2187_v3, -inf  ;;  %v1441_v47 = vrot.slane %v1427_v33, %v4839_v39  ;;  %v2633_v44 = vmax.f32 %v2631_v20, %v2632_v11  ;;  %v2639_v52 = vrot.slane %v2638_v10, 2 }
 0x1c7   : > { %v4967_v17 = vsel %vm2979_vm14, %v2194_v0, -inf  ;;  %v2620_v29 = vrot.slane %v2619_v36, 1  ;;  %v2626_v31 = vmax.f32 %v2624_v61, %v2625_v53  ;;  %v1442_v25 = vcombine.high %v1434_v5, %v1434_v5 }
 0x1c8   : > { %v2111_v60 = vsel %vm2082_vm13, %v1434_v5, -inf  ;;  %v1443_v13 = vcombine.high %v1441_v47, %v1441_v47  ;;  %v2634_v28 = vrot.slane %v2633_v44, 1  ;;  %v2640_v23 = vmax.f32 %v2638_v10, %v2639_v52 }
 0x1c9   : > { %v2621_v62 = vmax.f32 %v2619_v36, %v2620_v29  ;;  %v2627_v57 = vrot.slane %v2626_v31, 1  ;;  %v2112_v63 = vrot.slane %v2111_v60, 4  ;;  %v2118_v6 = vsel %vm2082_vm13, %v1442_v25, -inf }
 0x1ca   : > { %v2125_v8 = vsel %vm2082_vm13, %v1441_v47, -inf  ;;  %v2119_v37 = vrot.slane %v2118_v6, 4  ;;  %v2635_v2 = vmax.f32 %v2633_v44, %v2634_v28  ;;  %v2641_v30 = vrot.slane %v2640_v23, 1 }
 0x1cb   : > { %v2628_v7 = vmax.f32 %v2626_v31, %v2627_v57  ;;  %v4974_v43 = vsel %vm2979_vm14, %v2621_v62, -inf  ;;  %v2113_v33 = vmax.f32 %v2111_v60, %v2112_v63  ;;  %v2126_v14 = vrot.slane %v2125_v8, 4 }
 0x1cc   : > { %v2132_v5 = vsel %vm2082_vm13, %v1443_v13, -inf  ;;  %v2120_v38 = vmax.f32 %v2118_v6, %v2119_v37  ;;  %v2642_v4 = vmax.f32 %v2640_v23, %v2641_v30  ;;  %v4981_v24 = vsel %vm2979_vm14, %v2635_v2, -inf }
 0x1cd   : > { %v4978_v56 = vsel %vm2979_vm14, %v2628_v7, -inf  ;;  %v2114_v49 = vrot.slane %v2113_v33, 2  ;;  %v2133_v42 = vrot.slane %v2132_v5, 4  ;;  %v2127_v16 = vmax.f32 %v2125_v8, %v2126_v14 }
 0x1ce   : > { %v4986_v19 = vsel %vm3634_vm1, %v4933_v12, %v4939_v45  ;;  %v2121_v27 = vrot.slane %v2120_v38, 2  ;;  %v1699_v59 = vcombine.high %v1318_v18, %v1318_v18  ;;  %v4991_v15 = vsel %vm2979_vm14, %v2642_v4, -inf }
 0x1cf   : > { %v2115_v54 = vmax.f32 %v2113_v33, %v2114_v49  ;;  %v2134_v51 = vmax.f32 %v2132_v5, %v2133_v42  ;;  %v2128_v22 = vrot.slane %v2127_v16, 2  ;;  %v1706_v35 = vrot.slane %v1318_v18, %v4839_v39 }
 0x1d0   : > { %v4997_v48 = vsel %vm3634_vm1, %v4941_v58, %v4948_v46  ;;  %v2122_v12 = vmax.f32 %v2120_v38, %v2121_v27  ;;  %v1713_v32 = vrot.slane %v1699_v59, %v4839_v39  ;;  %v1512_v3 = vcombine.high %v4988_v40, %v4988_v40 }
 0x1d1   : > { %v2116_v26 = vrot.slane %v2115_v54, 1  ;;  %v2135_v45 = vrot.slane %v2134_v51, 2  ;;  %v2129_v1 = vmax.f32 %v2127_v16, %v2128_v22  ;;  %v1714_v61 = vcombine.high %v1706_v35, %v1706_v35 }
 0x1d2   : > { %v2559_v34 = vsel %vm2082_vm13, %v1706_v35, -inf  ;;  %v2123_v21 = vrot.slane %v2122_v12, 1  ;;  %v1715_v36 = vcombine.high %v1713_v32, %v1713_v32  ;;  %v2573_v46 = vsel %vm2082_vm13, %v1713_v32, -inf }
 0x1d3   : > { %v2117_v20 = vmax.f32 %v2115_v54, %v2116_v26  ;;  %v2136_v0 = vmax.f32 %v2134_v51, %v2135_v45  ;;  %v2130_v53 = vrot.slane %v2129_v1, 1  ;;  %v2560_v11 = vrot.slane %v2559_v34, 4 }
 0x1d4   : > { %v2566_v58 = vsel %vm2082_vm13, %v1714_v61, -inf  ;;  %v2124_v10 = vmax.f32 %v2122_v12, %v2123_v21  ;;  %v2574_v60 = vrot.slane %v2573_v46, 4  ;;  %v2580_v63 = vsel %vm2082_vm13, %v1715_v36, -inf }
 0x1d5   : > { %v2137_v29 = vrot.slane %v2136_v0, 1  ;;  %v2992_v31 = vsel %vm2979_vm14, %v2117_v20, -inf  ;;  %v2567_v47 = vrot.slane %v2566_v58, 4  ;;  %v2131_v44 = vmax.f32 %v2129_v1, %v2130_v53 }
 0x1d6   : > { %v2994_v52 = vmax.f32 %v2992_v31, %v4958_v55  ;;  %v2561_v25 = vmax.f32 %v2559_v34, %v2560_v11  ;;  %v2995_v57 = vsel %vm2979_vm14, %v2124_v10, -inf  ;;  %v2575_v37 = vmax.f32 %v2573_v46, %v2574_v60 }
 0x1d7   : > { %v2138_v62 = vmax.f32 %v2136_v0, %v2137_v29  ;;  %v2568_v13 = vmax.f32 %v2566_v58, %v2567_v47  ;;  %v2997_v28 = vmax.f32 %v2995_v57, %v4961_v9  ;;  %v2998_v23 = vsel %vm2979_vm14, %v2131_v44, -inf }
 0x1d8   : > { %v3183_v6 = vadd.f32 %v4907_v41, %v2994_v52  ;;  %v2562_v8 = vrot.slane %v2561_v25, 2  ;;  %v3000_v7 = vmax.f32 %v2998_v23, %v4964_v50  ;;  %v2576_v49 = vrot.slane %v2575_v37, 2 }
 0x1d9   : > { %v3001_v55 = vsel %vm2979_vm14, %v2138_v62, -inf  ;;  %v2569_v33 = vrot.slane %v2568_v13, 2  ;;  %v3184_v30 = vadd.f32 %v4907_v41, %v2997_v28  ;;  %v2581_v38 = vrot.slane %v2580_v63, 4 }
 0x1da   : > { %v3003_v2 = vmax.f32 %v3001_v55, %v4967_v17  ;;  %v3247_v14 = vmax.f32 %v3183_v6, 0.0  ;;  %v2563_v5 = vmax.f32 %v2561_v25, %v2562_v8  ;;  %v3185_v9 = vadd.f32 %v4907_v41, %v3000_v7 }
 0x1db   : > { %v2570_v18 = vmax.f32 %v2568_v13, %v2569_v33  ;;  %v3248_v42 = vmax.f32 %v3184_v30, 0.0  ;;  %v2577_v51 = vmax.f32 %v2575_v37, %v2576_v49  ;;  %v2582_v17 = vmax.f32 %v2580_v63, %v2581_v38 }
 0x1dc   : > { %v3186_v50 = vadd.f32 %v4907_v41, %v3003_v2  ;;  %v3960_v4 = vpack.c.bf16 %v3247_v14, %v3247_v14  ;;  %v2564_v16 = vrot.slane %v2563_v5, 1  ;;  %v3249_v54 = vmax.f32 %v3185_v9, 0.0 }
 0x1dd   : > { %v2571_v27 = vrot.slane %v2570_v18, 1  ;;  %v3961_v22 = vpack.c.bf16 %v3248_v42, %v3248_v42  ;;  %v2578_v32 = vrot.slane %v2577_v51, 1  ;;  %v2583_v1 = vrot.slane %v2582_v17, 2 }
 0x1de   : > { %v3250_v59 = vmax.f32 %v3186_v50, 0.0  ;;  %v3567_v35 = vunpack.c.l.b16 %v3960_v4  ;;  %v2565_v26 = vmax.f32 %v2563_v5, %v2564_v16  ;;  %v3962_v12 = vpack.c.bf16 %v3249_v54, %v3249_v54 }
 0x1df   : > { %v2572_v45 = vmax.f32 %v2570_v18, %v2571_v27  ;;  %v3568_v34 = vunpack.c.l.b16 %v3961_v22  ;;  %v2579_v36 = vmax.f32 %v2577_v51, %v2578_v32  ;;  %v2584_v53 = vmax.f32 %v2582_v17, %v2583_v1 }
 0x1e0   : > { %v3963_v61 = vpack.c.bf16 %v3250_v59, %v3250_v59  ;;  %v3636_v20 = vrot.slane %v3567_v35, 4  ;;  %v3088_v21 = vsel %vm2979_vm14, %v2565_v26, -inf  ;;  %v3569_v0 = vunpack.c.l.b16 %v3962_v12  ;;  %v4064_v26 = vpop.f32.mrf.mxu1 }
 0x1e1   : > { %v3090_v11 = vmax.f32 %v3088_v21, %v4974_v43  ;;  %v3639_v10 = vrot.slane %v3568_v34, 3  ;;  %v3091_v29 = vsel %vm2979_vm14, %v2572_v45, -inf  ;;  %v2585_v47 = vrot.slane %v2584_v53, 1 }
 0x1e2   : > { %v3570_v58 = vunpack.c.l.b16 %v3963_v61  ;;  %v3638_v46 = vsel %vm3637_vm2, %v3636_v20, %v4986_v19  ;;  %v3642_v31 = vrot.slane %v3569_v0, 2  ;;  %v3093_v44 = vmax.f32 %v3091_v29, %v4978_v56  ;;  %v1267_v0 = vpop.f32.mrf.mxu0 }
 0x1e3   : > { %v3094_v52 = vsel %vm2979_vm14, %v2579_v36, -inf  ;;  %v3641_v25 = vsel %vm3640_vm3, %v3639_v10, %v3638_v46  ;;  %v3215_v43 = vadd.f32 %v4907_v41, %v3090_v11  ;;  %v2586_v19 = vmax.f32 %v2584_v53, %v2585_v47 }
 0x1e4   : > { %v3645_v60 = vrot.slane %v3570_v58, 1  ;;  %v3096_v62 = vmax.f32 %v3094_v52, %v4981_v24  ;;  %v3644_v57 = vsel %vm3643_vm4, %v3642_v31, %v3641_v25  ;;  %v3216_v13 = vadd.f32 %v4907_v41, %v3093_v44 }
 0x1e5   : > { %v1519_v63 = vrot.slane %v4988_v40, %v4839_v39  ;;  %v3279_v28 = vmax.f32 %v3215_v43, 0.0  ;;  %v1526_v23 = vrot.slane %v1512_v3, %v4839_v39  ;;  %v3097_v8 = vsel %vm2979_vm14, %v2586_v19, -inf }
 0x1e6   : > { %v3647_v56 = vsel %vm3646_vm5, %v3645_v60, %v3644_v57  ;;  %v3217_v24 = vadd.f32 %v4907_v41, %v3096_v62  ;;  %v3280_v7 = vmax.f32 %v3216_v13, 0.0  ;;  %v3099_v33 = vmax.f32 %v3097_v8, %v4991_v15 }
 0x1e7   : > { %v3746_v6 = vpack.c.b16 %v3647_v56, %v3647_v56  ;;  %v1527_v55 = vcombine.high %v1519_v63, %v1519_v63  ;;  %v3992_v2 = vpack.c.bf16 %v3279_v28, %v3279_v28  ;;  %v1528_v30 = vcombine.high %v1526_v23, %v1526_v23 }
 0x1e8   : > { %v3281_v37 = vmax.f32 %v3217_v24, 0.0  ;;  %v3993_v14 = vpack.c.bf16 %v3280_v7, %v3280_v7  ;;  %v2251_v5 = vsel %vm2082_vm13, %v1519_v63, -inf  ;;  %v2265_v40 = vsel %vm2082_vm13, %v1526_v23, -inf }
 0x1e9   : > { %3763 = vst.msk [vmem:[%s5036_s8] sm:$0xf] %vm3762_vm6, %v3746_v6  ;;  %v2258_v9 = vsel %vm2082_vm13, %v1527_v55, -inf  ;;  %v3218_v3 = vadd.f32 %v4907_v41, %v3099_v33  ;;  %v3599_v49 = vunpack.c.l.b16 %v3992_v2  ;;  %v2252_v38 = vrot.slane %v2251_v5, 4 }
 0x1ea   : > { %v3994_v18 = vpack.c.bf16 %v3281_v37, %v3281_v37  ;;  %v3600_v50 = vunpack.c.l.b16 %v3993_v14  ;;  %v2259_v42 = vrot.slane %v2258_v9, 4  ;;  %v2266_v15 = vrot.slane %v2265_v40, 4 }
 0x1eb   : > { %v2272_v4 = vsel %vm2082_vm13, %v1528_v30, -inf  ;;  %v3282_v16 = vmax.f32 %v3218_v3, 0.0  ;;  %v3696_v27 = vrot.slane %v3599_v49, 4  ;;  %v2253_v51 = vmax.f32 %v2251_v5, %v2252_v38 }
 0x1ec   : > { %v3601_v54 = vunpack.c.l.b16 %v3994_v18  ;;  %v3698_v17 = vrot.slane %v3600_v50, 3  ;;  %v2260_v59 = vmax.f32 %v2258_v9, %v2259_v42  ;;  %v2267_v22 = vmax.f32 %v2265_v40, %v2266_v15 }
 0x1ed   : > { %v2273_v35 = vrot.slane %v2272_v4, 4  ;;  %v3995_v12 = vpack.c.bf16 %v3282_v16, %v3282_v16  ;;  %v3697_v45 = vsel %vm3637_vm2, %v3696_v27, %v4997_v48  ;;  %v2254_v1 = vrot.slane %v2253_v51, 2 }
 0x1ee   : > { %v3700_v32 = vrot.slane %v3601_v54, 2  ;;  %v3699_v61 = vsel %vm3640_vm3, %v3698_v17, %v3697_v45  ;;  %v2261_v34 = vrot.slane %v2260_v59, 2  ;;  %v2268_v20 = vrot.slane %v2267_v22, 2 }
 0x1ef   : > { %v2274_v21 = vmax.f32 %v2272_v4, %v2273_v35  ;;  %v3602_v36 = vunpack.c.l.b16 %v3995_v12  ;;  %v2255_v11 = vmax.f32 %v2253_v51, %v2254_v1  ;;  %v1784_v58 = vcombine.high %v4064_v26, %v4064_v26 }
 0x1f0   : > { %v3701_v53 = vsel %vm3643_vm4, %v3700_v32, %v3699_v61  ;;  %v2262_v46 = vmax.f32 %v2260_v59, %v2261_v34  ;;  %v2269_v10 = vmax.f32 %v2267_v22, %v2268_v20  ;;  %v1791_v31 = vrot.slane %v4064_v26, %v4839_v39 }
 0x1f1   : > { %v2275_v29 = vrot.slane %v2274_v21, 2  ;;  %v3702_v47 = vrot.slane %v3602_v36, 1  ;;  %v2256_v48 = vrot.slane %v2255_v11, 1  ;;  %v1798_v44 = vrot.slane %v1784_v58, %v4839_v39 }
 0x1f2   : > { %v1478_v52 = vcombine.high %v1267_v0, %v1267_v0  ;;  %v2263_v25 = vrot.slane %v2262_v46, 1  ;;  %v2270_v60 = vrot.slane %v2269_v10, 1  ;;  %v1799_v43 = vcombine.high %v1791_v31, %v1791_v31 }
 0x1f3   : > { %v2276_v62 = vmax.f32 %v2274_v21, %v2275_v29  ;;  %v3703_v57 = vsel %vm3646_vm5, %v3702_v47, %v3701_v53  ;;  %v2257_v19 = vmax.f32 %v2255_v11, %v2256_v48  ;;  %v1800_v13 = vcombine.high %v1798_v44, %v1798_v44 }
 0x1f4   : > { %v2699_v63 = vsel %vm2082_vm13, %v1791_v31, -inf  ;;  %v3750_v56 = vpack.c.b16 %v3703_v57, %v3703_v57  ;;  %v2264_v24 = vmax.f32 %v2262_v46, %v2263_v25  ;;  %v2271_v28 = vmax.f32 %v2269_v10, %v2270_v60 }
 0x1f5   : > { %v2277_v23 = vrot.slane %v2276_v62, 1  ;;  %v5062_v6 = vsel %vm2979_vm14, %v2257_v19, -inf  ;;  %v2700_v8 = vrot.slane %v2699_v63, 4  ;;  %v2706_v7 = vsel %vm2082_vm13, %v1799_v43, -inf }
 0x1f6   : > { %v2713_v55 = vsel %vm2082_vm13, %v1798_v44, -inf  ;;  %3767 = vst.msk [vmem:[%s5036_s8 + $0x10] sm:$0xf] %vm3762_vm6, %v3750_v56  ;;  %v5069_v37 = vsel %vm2979_vm14, %v2264_v24, -inf  ;;  %v5072_v2 = vsel %vm2979_vm14, %v2271_v28, -inf  ;;  %v2707_v30 = vrot.slane %v2706_v7, 4  ;;  %v1331_v44 = vpop.f32.mrf.mxu1 }
 0x1f7   : > { %v2278_v33 = vmax.f32 %v2276_v62, %v2277_v23  ;;  %v2701_v14 = vmax.f32 %v2699_v63, %v2700_v8  ;;  %v2714_v5 = vrot.slane %v2713_v55, 4  ;;  %v2720_v9 = vsel %vm2082_vm13, %v1800_v13, -inf  ;;  %v5090_v63 = vpop.f32.mrf.mxu0 }
 0x1f8   : > { %v1485_v40 = vrot.slane %v1267_v0, %v4839_v39  ;;  %v2708_v18 = vmax.f32 %v2706_v7, %v2707_v30  ;;  %v2721_v49 = vrot.slane %v2720_v9, 4  ;;  %v1492_v38 = vrot.slane %v1478_v52, %v4839_v39 }
 0x1f9   : > { %v5077_v3 = vsel %vm2979_vm14, %v2278_v33, -inf  ;;  %v2702_v50 = vrot.slane %v2701_v14, 2  ;;  %v2715_v42 = vmax.f32 %v2713_v55, %v2714_v5  ;;  %v1750_v23 = vcombine.high %v1331_v44, %v1331_v44 }
 0x1fa   : > { %v1493_v15 = vcombine.high %v1485_v40, %v1485_v40  ;;  %v2195_v4 = vsel %vm2082_vm13, %v1485_v40, -inf  ;;  %v2709_v16 = vrot.slane %v2708_v18, 2  ;;  %v2722_v54 = vmax.f32 %v2720_v9, %v2721_v49 }
 0x1fb   : > { %v1494_v27 = vcombine.high %v1492_v38, %v1492_v38  ;;  %v2196_v51 = vrot.slane %v2195_v4, 4  ;;  %v2703_v17 = vmax.f32 %v2701_v14, %v2702_v50  ;;  %v2716_v59 = vrot.slane %v2715_v42, 2 }
 0x1fc   : > { %v2202_v22 = vsel %vm2082_vm13, %v1493_v15, -inf  ;;  %v2209_v35 = vsel %vm2082_vm13, %v1492_v38, -inf  ;;  %v2710_v26 = vmax.f32 %v2708_v18, %v2709_v16  ;;  %v2723_v12 = vrot.slane %v2722_v54, 2 }
 0x1fd   : > { %v2197_v45 = vmax.f32 %v2195_v4, %v2196_v51  ;;  %v2203_v32 = vrot.slane %v2202_v22, 4  ;;  %v2704_v1 = vrot.slane %v2703_v17, 1  ;;  %v2717_v61 = vmax.f32 %v2715_v42, %v2716_v59 }
 0x1fe   : > { %v2210_v34 = vrot.slane %v2209_v35, 4  ;;  %v2216_v20 = vsel %vm2082_vm13, %v1494_v27, -inf  ;;  %v2711_v21 = vrot.slane %v2710_v26, 1  ;;  %v2724_v0 = vmax.f32 %v2722_v54, %v2723_v12 }
 0x1ff   : > { %v2198_v36 = vrot.slane %v2197_v45, 2  ;;  %v2204_v53 = vmax.f32 %v2202_v22, %v2203_v32  ;;  %v2705_v11 = vmax.f32 %v2703_v17, %v2704_v1  ;;  %v2718_v58 = vrot.slane %v2717_v61, 1 }
 0x200   : > { %v2211_v46 = vmax.f32 %v2209_v35, %v2210_v34  ;;  %v2217_v10 = vrot.slane %v2216_v20, 4  ;;  %v2712_v29 = vmax.f32 %v2710_v26, %v2711_v21  ;;  %v2725_v31 = vrot.slane %v2724_v0, 1 }
 0x201   : > { %v2199_v47 = vmax.f32 %v2197_v45, %v2198_v36  ;;  %v2205_v48 = vrot.slane %v2204_v53, 2  ;;  %v2719_v52 = vmax.f32 %v2717_v61, %v2718_v58  ;;  %v5085_v25 = vsel %vm2979_vm14, %v2705_v11, -inf }
 0x202   : > { %v2212_v60 = vrot.slane %v2211_v46, 2  ;;  %v2218_v62 = vmax.f32 %v2216_v20, %v2217_v10  ;;  %v2726_v43 = vmax.f32 %v2724_v0, %v2725_v31  ;;  %v5088_v57 = vsel %vm2979_vm14, %v2712_v29, -inf }
 0x203   : > { %v2200_v19 = vrot.slane %v2199_v47, 1  ;;  %v2206_v13 = vmax.f32 %v2204_v53, %v2205_v48  ;;  %v5093_v56 = vsel %vm2979_vm14, %v2719_v52, -inf  ;;  %v1757_v33 = vrot.slane %v1331_v44, %v4839_v39 }
 0x204   : > { %v2213_v24 = vmax.f32 %v2211_v46, %v2212_v60  ;;  %v2219_v28 = vrot.slane %v2218_v62, 2  ;;  %v5096_v8 = vsel %vm2979_vm14, %v2726_v43, -inf  ;;  %v1764_v5 = vrot.slane %v1750_v23, %v4839_v39 }
 0x205   : > { %v2201_v7 = vmax.f32 %v2199_v47, %v2200_v19  ;;  %v2207_v55 = vrot.slane %v2206_v13, 1  ;;  %v1529_v9 = vcombine.high %v5090_v63, %v5090_v63  ;;  %v1765_v49 = vcombine.high %v1757_v33, %v1757_v33 }
 0x206   : > { %v2214_v30 = vrot.slane %v2213_v24, 1  ;;  %v2220_v14 = vmax.f32 %v2218_v62, %v2219_v28  ;;  %v2643_v38 = vsel %vm2082_vm13, %v1757_v33, -inf  ;;  %v1766_v4 = vcombine.high %v1764_v5, %v1764_v5 }
 0x207   : > { %v2208_v40 = vmax.f32 %v2206_v13, %v2207_v55  ;;  %v3004_v18 = vsel %vm2979_vm14, %v2201_v7, -inf  ;;  %v2644_v54 = vrot.slane %v2643_v38, 4  ;;  %v2650_v27 = vsel %vm2082_vm13, %v1765_v49, -inf }
 0x208   : > { %v2215_v50 = vmax.f32 %v2213_v24, %v2214_v30  ;;  %v2221_v42 = vrot.slane %v2220_v14, 1  ;;  %v3006_v15 = vmax.f32 %v3004_v18, %v5062_v6  ;;  %v2657_v51 = vsel %vm2082_vm13, %v1764_v5, -inf }
 0x209   : > { %v3007_v16 = vsel %vm2979_vm14, %v2208_v40, -inf  ;;  %v2645_v12 = vmax.f32 %v2643_v38, %v2644_v54  ;;  %v2651_v45 = vrot.slane %v2650_v27, 4  ;;  %v2658_v6 = vrot.slane %v2657_v51, 4 }
 0x20a   : > { %v2222_v17 = vmax.f32 %v2220_v14, %v2221_v42  ;;  %v3009_v59 = vmax.f32 %v3007_v16, %v5069_v37  ;;  %v3010_v22 = vsel %vm2979_vm14, %v2215_v50, -inf  ;;  %v3187_v35 = vadd.f32 %v4907_v41, %v3006_v15 }
 0x20b   : > { %v3012_v26 = vmax.f32 %v3010_v22, %v5072_v2  ;;  %v2664_v34 = vsel %vm2082_vm13, %v1766_v4, -inf  ;;  %v2646_v21 = vrot.slane %v2645_v12, 2  ;;  %v2652_v0 = vmax.f32 %v2650_v27, %v2651_v45 }
 0x20c   : > { %v3013_v32 = vsel %vm2979_vm14, %v2222_v17, -inf  ;;  %v3188_v1 = vadd.f32 %v4907_v41, %v3009_v59  ;;  %v3251_v61 = vmax.f32 %v3187_v35, 0.0  ;;  %v2659_v11 = vmax.f32 %v2657_v51, %v2658_v6 }
 0x20d   : > { %v3015_v20 = vmax.f32 %v3013_v32, %v5077_v3  ;;  %v3189_v37 = vadd.f32 %v4907_v41, %v3012_v26  ;;  %v2665_v2 = vrot.slane %v2664_v34, 4  ;;  %v2647_v10 = vmax.f32 %v2645_v12, %v2646_v21 }
 0x20e   : > { %v3252_v36 = vmax.f32 %v3188_v1, 0.0  ;;  %v3964_v53 = vpack.c.bf16 %v3251_v61, %v3251_v61  ;;  %v2653_v29 = vrot.slane %v2652_v0, 2  ;;  %v2660_v48 = vrot.slane %v2659_v11, 2 }
 0x20f   : > { %v3190_v58 = vadd.f32 %v4907_v41, %v3015_v20  ;;  %v3253_v46 = vmax.f32 %v3189_v37, 0.0  ;;  %v2666_v44 = vmax.f32 %v2664_v34, %v2665_v2  ;;  %v2648_v3 = vrot.slane %v2647_v10, 1  ;;  %v4065_v2 = vpop.f32.mrf.mxu1 }
 0x210   : > { %v3965_v31 = vpack.c.bf16 %v3252_v36, %v3252_v36  ;;  %v3571_v47 = vunpack.c.l.b16 %v3964_v53  ;;  %v2654_v62 = vmax.f32 %v2652_v0, %v2653_v29  ;;  %v2661_v19 = vmax.f32 %v2659_v11, %v2660_v48 }
 0x211   : > { %v3254_v52 = vmax.f32 %v3190_v58, 0.0  ;;  %v3966_v60 = vpack.c.bf16 %v3253_v46, %v3253_v46  ;;  %v2667_v13 = vrot.slane %v2666_v44, 2  ;;  %v1536_v24 = vrot.slane %v5090_v63, %v4839_v39 }
 0x212   : > { %v3572_v43 = vunpack.c.l.b16 %v3965_v31  ;;  %v2649_v7 = vmax.f32 %v2647_v10, %v2648_v3  ;;  %v2655_v55 = vrot.slane %v2654_v62, 1  ;;  %v2662_v30 = vrot.slane %v2661_v19, 1 }
 0x213   : > { %v3967_v28 = vpack.c.bf16 %v3254_v52, %v3254_v52  ;;  %v3573_v23 = vunpack.c.l.b16 %v3966_v60  ;;  %v2668_v14 = vmax.f32 %v2666_v44, %v2667_v13  ;;  %v1543_v5 = vrot.slane %v1529_v9, %v4839_v39 }
 0x214   : > { %v3648_v33 = vrot.slane %v3572_v43, 7  ;;  %v2656_v49 = vmax.f32 %v2654_v62, %v2655_v55  ;;  %v3100_v38 = vsel %vm2979_vm14, %v2649_v7, -inf  ;;  %v2663_v42 = vmax.f32 %v2661_v19, %v2662_v30 }
 0x215   : > { %v3574_v40 = vunpack.c.l.b16 %v3967_v28  ;;  %v3650_v18 = vrot.slane %v3573_v23, 6  ;;  %v2669_v15 = vrot.slane %v2668_v14, 1  ;;  %v3102_v63 = vmax.f32 %v3100_v38, %v5085_v25 }
 0x216   : > { %v3649_v50 = vsel %vm3628_vm15, %v3648_v33, %v3571_v47  ;;  %v3103_v54 = vsel %vm2979_vm14, %v2656_v49, -inf  ;;  %v1544_v27 = vcombine.high %v1536_v24, %v1536_v24  ;;  %v3106_v17 = vsel %vm2979_vm14, %v2663_v42, -inf }
 0x217   : > { %v5125_v4 = vsel %vm3631_vm0, %v3650_v18, %v3649_v50  ;;  %v5127_v16 = vrot.slane %v3574_v40, 5  ;;  %v2670_v9 = vmax.f32 %v2668_v14, %v2669_v15  ;;  %v3105_v51 = vmax.f32 %v3103_v54, %v5088_v57 }
 0x218   : > { %v3219_v59 = vadd.f32 %v4907_v41, %v3102_v63  ;;  %v3108_v22 = vmax.f32 %v3106_v17, %v5093_v56  ;;  %v1545_v35 = vcombine.high %v1543_v5, %v1543_v5  ;;  %v2279_v25 = vsel %vm2082_vm13, %v1536_v24, -inf }
 0x219   : > { %v2286_v26 = vsel %vm2082_vm13, %v1544_v27, -inf  ;;  %v3109_v12 = vsel %vm2979_vm14, %v2670_v9, -inf  ;;  %v3220_v45 = vadd.f32 %v4907_v41, %v3105_v51  ;;  %v2280_v32 = vrot.slane %v2279_v25, 4  ;;  %v1270_v9 = vpop.f32.mrf.mxu0 }
 0x21a   : > { %v3283_v6 = vmax.f32 %v3219_v59, 0.0  ;;  %v3111_v1 = vmax.f32 %v3109_v12, %v5096_v8  ;;  %v3221_v57 = vadd.f32 %v4907_v41, %v3108_v22  ;;  %v2287_v61 = vrot.slane %v2286_v26, 4 }
 0x21b   : > { %v2293_v34 = vsel %vm2082_vm13, %v1543_v5, -inf  ;;  %v3284_v20 = vmax.f32 %v3220_v45, 0.0  ;;  %v2281_v37 = vmax.f32 %v2279_v25, %v2280_v32  ;;  %v2300_v11 = vsel %vm2082_vm13, %v1545_v35, -inf }
 0x21c   : > { %v3996_v56 = vpack.c.bf16 %v3283_v6, %v3283_v6  ;;  %v2294_v21 = vrot.slane %v2293_v34, 4  ;;  %v3222_v0 = vadd.f32 %v4907_v41, %v3111_v1  ;;  %v3285_v36 = vmax.f32 %v3221_v57, 0.0 }
 0x21d   : > { %v2288_v53 = vmax.f32 %v2286_v26, %v2287_v61  ;;  %v3997_v58 = vpack.c.bf16 %v3284_v20, %v3284_v20  ;;  %v2282_v10 = vrot.slane %v2281_v37, 2  ;;  %v2301_v48 = vrot.slane %v2300_v11, 4 }
 0x21e   : > { %v3603_v46 = vunpack.c.l.b16 %v3996_v56  ;;  %v2295_v8 = vmax.f32 %v2293_v34, %v2294_v21  ;;  %v3286_v29 = vmax.f32 %v3222_v0, 0.0  ;;  %v3998_v31 = vpack.c.bf16 %v3285_v36, %v3285_v36 }
 0x21f   : > { %v2289_v47 = vrot.slane %v2288_v53, 2  ;;  %v3604_v44 = vunpack.c.l.b16 %v3997_v58  ;;  %v2283_v52 = vmax.f32 %v2281_v37, %v2282_v10  ;;  %v1801_v3 = vcombine.high %v4065_v2, %v4065_v2 }
 0x220   : > { %v2296_v60 = vrot.slane %v2295_v8, 2  ;;  %v3999_v62 = vpack.c.bf16 %v3286_v29, %v3286_v29  ;;  %v3605_v43 = vunpack.c.l.b16 %v3998_v31  ;;  %v2302_v19 = vmax.f32 %v2300_v11, %v2301_v48 }
 0x221   : > { %v2290_v41 = vmax.f32 %v2288_v53, %v2289_v47  ;;  %v3704_v13 = vrot.slane %v3604_v44, 7  ;;  %v2284_v24 = vrot.slane %v2283_v52, 1  ;;  %v1808_v23 = vrot.slane %v4065_v2, %v4839_v39 }
 0x222   : > { %v2297_v28 = vmax.f32 %v2295_v8, %v2296_v60  ;;  %v3606_v7 = vunpack.c.l.b16 %v3999_v62  ;;  %v3706_v55 = vrot.slane %v3605_v43, 6  ;;  %v2303_v30 = vrot.slane %v2302_v19, 2 }
 0x223   : > { %v2291_v33 = vrot.slane %v2290_v41, 1  ;;  %v3705_v14 = vsel %vm3628_vm15, %v3704_v13, %v3603_v46  ;;  %v2285_v5 = vmax.f32 %v2283_v52, %v2284_v24  ;;  %v1815_v18 = vrot.slane %v1801_v3, %v4839_v39 }
 0x224   : > { %v2298_v40 = vrot.slane %v2297_v28, 1  ;;  %v5147_v49 = vsel %vm3631_vm0, %v3706_v55, %v3705_v14  ;;  %v5149_v38 = vrot.slane %v3606_v7, 5  ;;  %v2304_v42 = vmax.f32 %v2302_v19, %v2303_v30 }
 0x225   : > { %v2292_v50 = vmax.f32 %v2290_v41, %v2291_v33  ;;  %v5152_v63 = vsel %vm2979_vm14, %v2285_v5, -inf  ;;  %v1816_v54 = vcombine.high %v1808_v23, %v1808_v23  ;;  %v1817_v27 = vcombine.high %v1815_v18, %v1815_v18 }
 0x226   : > { %v2299_v15 = vmax.f32 %v2297_v28, %v2298_v40  ;;  %v2305_v51 = vrot.slane %v2304_v42, 1  ;;  %v2727_v59 = vsel %vm2082_vm13, %v1808_v23, -inf  ;;  %v2741_v22 = vsel %vm2082_vm13, %v1815_v18, -inf  ;;  %v1334_v40 = vpop.f32.mrf.mxu1 }
 0x227   : > { %v5155_v17 = vsel %vm2979_vm14, %v2292_v50, -inf  ;;  %v2728_v25 = vrot.slane %v2727_v59, 4  ;;  %v2734_v26 = vsel %vm2082_vm13, %v1816_v54, -inf  ;;  %v2742_v12 = vrot.slane %v2741_v22, 4 }
 0x228   : > { %v5160_v35 = vsel %vm2979_vm14, %v2299_v15, -inf  ;;  %v2306_v45 = vmax.f32 %v2304_v42, %v2305_v51  ;;  %v2735_v6 = vrot.slane %v2734_v26, 4  ;;  %v2748_v32 = vsel %vm2082_vm13, %v1817_v27, -inf }
 0x229   : > { %v1495_v1 = vcombine.high %v1270_v9, %v1270_v9  ;;  %v2729_v57 = vmax.f32 %v2727_v59, %v2728_v25  ;;  %v2743_v61 = vmax.f32 %v2741_v22, %v2742_v12  ;;  %v2749_v34 = vrot.slane %v2748_v32, 4 }
 0x22a   : > { %v1502_v20 = vrot.slane %v1270_v9, %v4839_v39  ;;  %v5166_v56 = vsel %vm2979_vm14, %v2306_v45, -inf  ;;  %v2736_v37 = vmax.f32 %v2734_v26, %v2735_v6  ;;  %v5172_v0 = vsel %vm3634_vm1, %v5127_v16, %v5125_v4 }
 0x22b   : > { %v1509_v21 = vrot.slane %v1495_v1, %v4839_v39  ;;  %v2730_v36 = vrot.slane %v2729_v57, 2  ;;  %v2744_v53 = vrot.slane %v2743_v61, 2  ;;  %v2750_v11 = vmax.f32 %v2748_v32, %v2749_v34 }
 0x22c   : > { %v1510_v2 = vcombine.high %v1502_v20, %v1502_v20  ;;  %v2737_v58 = vrot.slane %v2736_v37, 2  ;;  %v2223_v10 = vsel %vm2082_vm13, %v1502_v20, -inf  ;;  %v1767_v25 = vcombine.high %v1334_v40, %v1334_v40 }
 0x22d   : > { %v1511_v46 = vcombine.high %v1509_v21, %v1509_v21  ;;  %v2237_v8 = vsel %vm2082_vm13, %v1509_v21, -inf  ;;  %v2731_v29 = vmax.f32 %v2729_v57, %v2730_v36  ;;  %v2745_v31 = vmax.f32 %v2743_v61, %v2744_v53 }
 0x22e   : > { %v2751_v47 = vrot.slane %v2750_v11, 2  ;;  %v2224_v48 = vrot.slane %v2223_v10, 4  ;;  %v2738_v44 = vmax.f32 %v2736_v37, %v2737_v58  ;;  %v2230_v52 = vsel %vm2082_vm13, %v1510_v2, -inf }
 0x22f   : > { %v2238_v60 = vrot.slane %v2237_v8, 4  ;;  %v2244_v4 = vsel %vm2082_vm13, %v1511_v46, -inf  ;;  %v2732_v16 = vrot.slane %v2731_v29, 1  ;;  %v2746_v3 = vrot.slane %v2745_v31, 1 }
 0x230   : > { %v2752_v62 = vmax.f32 %v2750_v11, %v2751_v47  ;;  %v2225_v43 = vmax.f32 %v2223_v10, %v2224_v48  ;;  %v2739_v41 = vrot.slane %v2738_v44, 1  ;;  %v2231_v19 = vrot.slane %v2230_v52, 4 }
 0x231   : > { %v2239_v13 = vmax.f32 %v2237_v8, %v2238_v60  ;;  %v2245_v24 = vrot.slane %v2244_v4, 4  ;;  %v2733_v28 = vmax.f32 %v2731_v29, %v2732_v16  ;;  %v2747_v23 = vmax.f32 %v2745_v31, %v2746_v3 }
 0x232   : > { %v2753_v7 = vrot.slane %v2752_v62, 1  ;;  %v2226_v55 = vrot.slane %v2225_v43, 2  ;;  %v2740_v33 = vmax.f32 %v2738_v44, %v2739_v41  ;;  %v2232_v30 = vmax.f32 %v2230_v52, %v2231_v19  ;;  %v5209_v52 = vld [vmem:[%s5613_s2] ss:$0 sm:$0xff] }
 0x233   : > { %v2240_v14 = vrot.slane %v2239_v13, 2  ;;  %v2246_v5 = vmax.f32 %v2244_v4, %v2245_v24  ;;  %v5179_v50 = vsel %vm2979_vm14, %v2733_v28, -inf  ;;  %v5182_v42 = vsel %vm2979_vm14, %v2747_v23, -inf }
 0x234   : > { %v2754_v18 = vmax.f32 %v2752_v62, %v2753_v7  ;;  %v2227_v15 = vmax.f32 %v2225_v43, %v2226_v55  ;;  %v5185_v54 = vsel %vm2979_vm14, %v2740_v33, -inf  ;;  %v2233_v27 = vrot.slane %v2232_v30, 2 }
 0x235   : > { %v2241_v9 = vmax.f32 %v2239_v13, %v2240_v14  ;;  %v2247_v51 = vrot.slane %v2246_v5, 2  ;;  %v1774_v26 = vrot.slane %v1334_v40, %v4839_v39  ;;  %v5194_v32 = vsel %vm3634_vm1, %v5149_v38, %v5147_v49 }
 0x236   : > { %v5188_v59 = vsel %vm2979_vm14, %v2754_v18, -inf  ;;  %v2228_v22 = vrot.slane %v2227_v15, 1  ;;  %v2234_v12 = vmax.f32 %v2232_v30, %v2233_v27  ;;  %v1781_v57 = vrot.slane %v1767_v25, %v4839_v39 }
 0x237   : > { %v2242_v45 = vrot.slane %v2241_v9, 1  ;;  %v2248_v6 = vmax.f32 %v2246_v5, %v2247_v51  ;;  %v1782_v61 = vcombine.high %v1774_v26, %v1774_v26  ;;  %v2671_v34 = vsel %vm2082_vm13, %v1774_v26, -inf }
 0x238   : > { %v2229_v1 = vmax.f32 %v2227_v15, %v2228_v22  ;;  %v2235_v20 = vrot.slane %v2234_v12, 1  ;;  %v2672_v36 = vrot.slane %v2671_v34, 4  ;;  %v1783_v11 = vcombine.high %v1781_v57, %v1781_v57 }
 0x239   : > { %v2243_v37 = vmax.f32 %v2241_v9, %v2242_v45  ;;  %v2249_v21 = vrot.slane %v2248_v6, 1  ;;  %v2678_v2 = vsel %vm2082_vm13, %v1782_v61, -inf  ;;  %v2685_v58 = vsel %vm2082_vm13, %v1781_v57, -inf }
 0x23a   : > { %v3016_v53 = vsel %vm2979_vm14, %v2229_v1, -inf  ;;  %v2236_v46 = vmax.f32 %v2234_v12, %v2235_v20  ;;  %v2673_v29 = vmax.f32 %v2671_v34, %v2672_v36  ;;  %v2679_v31 = vrot.slane %v2678_v2, 4  ;;  %v4052_v1 = vpop.f32.mrf.mxu0 }
 0x23b   : > { %v2250_v49 = vmax.f32 %v2248_v6, %v2249_v21  ;;  %v3018_v38 = vmax.f32 %v3016_v53, %v5152_v63  ;;  %v3022_v10 = vsel %vm2979_vm14, %v2243_v37, -inf  ;;  %v2686_v47 = vrot.slane %v2685_v58, 4 }
 0x23c   : > { %v3024_v8 = vmax.f32 %v3022_v10, %v5160_v35  ;;  %v3019_v48 = vsel %vm2979_vm14, %v2236_v46, -inf  ;;  %v2692_v63 = vsel %vm2082_vm13, %v1783_v11, -inf  ;;  %v2674_v3 = vrot.slane %v2673_v29, 2 }
 0x23d   : > { %v3025_v44 = vsel %vm2979_vm14, %v2250_v49, -inf  ;;  %v3191_v60 = vadd.f32 %v5209_v52, %v3018_v38  ;;  %v3021_v4 = vmax.f32 %v3019_v48, %v5155_v17  ;;  %v2680_v43 = vmax.f32 %v2678_v2, %v2679_v31 }
 0x23e   : > { %v3027_v35 = vmax.f32 %v3025_v44, %v5166_v56  ;;  %v3193_v16 = vadd.f32 %v5209_v52, %v3024_v8  ;;  %v2687_v41 = vmax.f32 %v2685_v58, %v2686_v47  ;;  %v2693_v19 = vrot.slane %v2692_v63, 4 }
 0x23f   : > { %v3255_v62 = vmax.f32 %v3191_v60, 0.0  ;;  %v3192_v13 = vadd.f32 %v5209_v52, %v3021_v4  ;;  %v2675_v23 = vmax.f32 %v2673_v29, %v2674_v3  ;;  %v2681_v55 = vrot.slane %v2680_v43, 2 }
 0x240   : > { %v3194_v24 = vadd.f32 %v5209_v52, %v3027_v35  ;;  %v3257_v28 = vmax.f32 %v3193_v16, 0.0  ;;  %v2688_v33 = vrot.slane %v2687_v41, 2  ;;  %v2694_v30 = vmax.f32 %v2692_v63, %v2693_v19 }
 0x241   : > { %v3968_v7 = vpack.c.bf16 %v3255_v62, %v3255_v62  ;;  %v3256_v17 = vmax.f32 %v3192_v13, 0.0  ;;  %v2676_v5 = vrot.slane %v2675_v23, 1  ;;  %v2682_v18 = vmax.f32 %v2680_v43, %v2681_v55 }
 0x242   : > { %v3258_v14 = vmax.f32 %v3194_v24, 0.0  ;;  %v3970_v56 = vpack.c.bf16 %v3257_v28, %v3257_v28  ;;  %v2689_v15 = vmax.f32 %v2687_v41, %v2688_v33  ;;  %v2695_v27 = vrot.slane %v2694_v30, 2 }
 0x243   : > { %v3575_v40 = vunpack.c.l.b16 %v3968_v7  ;;  %v3969_v9 = vpack.c.bf16 %v3256_v17, %v3256_v17  ;;  %v2677_v25 = vmax.f32 %v2675_v23, %v2676_v5  ;;  %v2683_v12 = vrot.slane %v2682_v18, 1 }
 0x244   : > { %v3971_v51 = vpack.c.bf16 %v3258_v14, %v3258_v14  ;;  %v3577_v22 = vunpack.c.l.b16 %v3970_v56  ;;  %v2690_v45 = vrot.slane %v2689_v15, 1  ;;  %v2696_v6 = vmax.f32 %v2694_v30, %v2695_v27 }
 0x245   : > { %v3654_v26 = vrot.slane %v3575_v40, 4  ;;  %v3576_v57 = vunpack.c.l.b16 %v3969_v9  ;;  %v3112_v20 = vsel %vm2979_vm14, %v2677_v25, -inf  ;;  %v2684_v21 = vmax.f32 %v2682_v18, %v2683_v12 }
 0x246   : > { %v3578_v61 = vunpack.c.l.b16 %v3971_v51  ;;  %v3658_v34 = vrot.slane %v3577_v22, 2  ;;  %v2691_v36 = vmax.f32 %v2689_v15, %v2690_v45  ;;  %v2697_v53 = vrot.slane %v2696_v6, 1 }
 0x247   : > { %v3655_v37 = vsel %vm3637_vm2, %v3654_v26, %v5172_v0  ;;  %v3656_v11 = vrot.slane %v3576_v57, 3  ;;  %v3114_v58 = vmax.f32 %v3112_v20, %v5179_v50  ;;  %v1580_v46 = vcombine.high %v4052_v1, %v4052_v1  ;;  %v4068_v26 = vpop.f32.mrf.mxu1 }
 0x248   : > { %v3660_v2 = vrot.slane %v3578_v61, 1  ;;  %v2698_v49 = vmax.f32 %v2696_v6, %v2697_v53  ;;  %v3115_v38 = vsel %vm2979_vm14, %v2684_v21, -inf  ;;  %v3118_v10 = vsel %vm2979_vm14, %v2691_v36, -inf }
 0x249   : > { %v1587_v8 = vrot.slane %v4052_v1, %v4839_v39  ;;  %v3657_v29 = vsel %vm3640_vm3, %v3656_v11, %v3655_v37  ;;  %v3117_v31 = vmax.f32 %v3115_v38, %v5185_v54  ;;  %v3120_v0 = vmax.f32 %v3118_v10, %v5182_v42 }
 0x24a   : > { %v3223_v47 = vadd.f32 %v5209_v52, %v3114_v58  ;;  %v3659_v48 = vsel %vm3643_vm4, %v3658_v34, %v3657_v29  ;;  %v3121_v50 = vsel %vm2979_vm14, %v2698_v49, -inf  ;;  %v1594_v44 = vrot.slane %v1580_v46, %v4839_v39 }
 0x24b   : > { %v1595_v60 = vcombine.high %v1587_v8, %v1587_v8  ;;  %v3661_v63 = vsel %vm3646_vm5, %v3660_v2, %v3659_v48  ;;  %v3123_v4 = vmax.f32 %v3121_v50, %v5188_v59  ;;  %v3224_v35 = vadd.f32 %v5209_v52, %v3117_v31 }
 0x24c   : > { %v3225_v54 = vadd.f32 %v5209_v52, %v3120_v0  ;;  %v3747_v16 = vpack.c.b16 %v3661_v63, %v3661_v63  ;;  %v3287_v42 = vmax.f32 %v3223_v47, 0.0  ;;  %v1596_v3 = vcombine.high %v1594_v44, %v1594_v44  ;;  %v1283_v47 = vpop.f32.mrf.mxu0 }
 0x24d   : > { %v2363_v62 = vsel %vm2082_vm13, %v1587_v8, -inf  ;;  %v3226_v43 = vadd.f32 %v5209_v52, %v3123_v4  ;;  %v3288_v41 = vmax.f32 %v3224_v35, 0.0  ;;  %v2370_v28 = vsel %vm2082_vm13, %v1595_v60, -inf }
 0x24e   : > { %v3289_v19 = vmax.f32 %v3225_v54, 0.0  ;;  %v2364_v13 = vrot.slane %v2363_v62, 4  ;;  %3764 = vst.msk [vmem:[%s5036_s8 + $0x4] sm:$0xf] %vm3762_vm6, %v3747_v16  ;;  %v4000_v24 = vpack.c.bf16 %v3287_v42, %v3287_v42  ;;  %v2377_v59 = vsel %vm2082_vm13, %v1594_v44, -inf }
 0x24f   : > { %v2384_v23 = vsel %vm2082_vm13, %v1596_v3, -inf  ;;  %v3290_v7 = vmax.f32 %v3226_v43, 0.0  ;;  %v4001_v55 = vpack.c.bf16 %v3288_v41, %v3288_v41  ;;  %v2371_v14 = vrot.slane %v2370_v28, 4  ;;  %v1347_v43 = vpop.f32.mrf.mxu1 }
 0x250   : > { %v4002_v33 = vpack.c.bf16 %v3289_v19, %v3289_v19  ;;  %v2365_v30 = vmax.f32 %v2363_v62, %v2364_v13  ;;  %v3607_v17 = vunpack.c.l.b16 %v4000_v24  ;;  %v2378_v56 = vrot.slane %v2377_v59, 4 }
 0x251   : > { %v2385_v5 = vrot.slane %v2384_v23, 4  ;;  %v4003_v40 = vpack.c.bf16 %v3290_v7, %v3290_v7  ;;  %v3608_v18 = vunpack.c.l.b16 %v4001_v55  ;;  %v2372_v51 = vmax.f32 %v2370_v28, %v2371_v14 }
 0x252   : > { %v3609_v15 = vunpack.c.l.b16 %v4002_v33  ;;  %v2366_v27 = vrot.slane %v2365_v30, 2  ;;  %v3710_v9 = vrot.slane %v3607_v17, 4  ;;  %v2379_v22 = vmax.f32 %v2377_v59, %v2378_v56 }
 0x253   : > { %v2386_v25 = vmax.f32 %v2384_v23, %v2385_v5  ;;  %v3610_v12 = vunpack.c.l.b16 %v4003_v40  ;;  %v3712_v45 = vrot.slane %v3608_v18, 3  ;;  %v2373_v61 = vrot.slane %v2372_v51, 2 }
 0x254   : > { %v3714_v6 = vrot.slane %v3609_v15, 2  ;;  %v2367_v1 = vmax.f32 %v2365_v30, %v2366_v27  ;;  %v3711_v57 = vsel %vm3637_vm2, %v3710_v9, %v5194_v32  ;;  %v2380_v34 = vrot.slane %v2379_v22, 2 }
 0x255   : > { %v2387_v20 = vrot.slane %v2386_v25, 2  ;;  %v3713_v37 = vsel %vm3640_vm3, %v3712_v45, %v3711_v57  ;;  %v3716_v21 = vrot.slane %v3610_v12, 1  ;;  %v1852_v53 = vcombine.high %v4068_v26, %v4068_v26 }
 0x256   : > { %v2368_v36 = vrot.slane %v2367_v1, 1  ;;  %v3715_v11 = vsel %vm3643_vm4, %v3714_v6, %v3713_v37  ;;  %v2374_v2 = vmax.f32 %v2372_v51, %v2373_v61  ;;  %v2381_v58 = vmax.f32 %v2379_v22, %v2380_v34 }
 0x257   : > { %v2388_v46 = vmax.f32 %v2386_v25, %v2387_v20  ;;  %v3717_v49 = vsel %vm3646_vm5, %v3716_v21, %v3715_v11  ;;  %v1859_v10 = vrot.slane %v4068_v26, %v4839_v39  ;;  %v1866_v32 = vrot.slane %v1852_v53, %v4839_v39 }
 0x258   : > { %v2369_v38 = vmax.f32 %v2367_v1, %v2368_v36  ;;  %v3751_v8 = vpack.c.b16 %v3717_v49, %v3717_v49  ;;  %v2375_v29 = vrot.slane %v2374_v2, 1  ;;  %v2382_v31 = vrot.slane %v2381_v58, 1 }
 0x259   : > { %v2389_v0 = vrot.slane %v2388_v46, 1  ;;  %v1867_v50 = vcombine.high %v1859_v10, %v1859_v10  ;;  %v1868_v44 = vcombine.high %v1866_v32, %v1866_v32  ;;  %v2811_v60 = vsel %vm2082_vm13, %v1859_v10, -inf }
 0x25a   : > { %v5251_v48 = vsel %vm2979_vm14, %v2369_v38, -inf  ;;  %3768 = vst.msk [vmem:[%s5036_s8 + $0x14] sm:$0xf] %vm3762_vm6, %v3751_v8  ;;  %v2376_v63 = vmax.f32 %v2374_v2, %v2375_v29  ;;  %v2383_v4 = vmax.f32 %v2381_v58, %v2382_v31  ;;  %v2812_v54 = vrot.slane %v2811_v60, 4 }
 0x25b   : > { %v2390_v35 = vmax.f32 %v2388_v46, %v2389_v0  ;;  %v2818_v16 = vsel %vm2082_vm13, %v1867_v50, -inf  ;;  %v2825_v42 = vsel %vm2082_vm13, %v1866_v32, -inf  ;;  %v2832_v3 = vsel %vm2082_vm13, %v1868_v44, -inf }
 0x25c   : > { %v1546_v62 = vcombine.high %v1283_v47, %v1283_v47  ;;  %v5260_v41 = vsel %vm2979_vm14, %v2376_v63, -inf  ;;  %v5263_v19 = vsel %vm2979_vm14, %v2383_v4, -inf  ;;  %v2813_v24 = vmax.f32 %v2811_v60, %v2812_v54 }
 0x25d   : > { %v5266_v13 = vsel %vm2979_vm14, %v2390_v35, -inf  ;;  %v2819_v28 = vrot.slane %v2818_v16, 4  ;;  %v2826_v59 = vrot.slane %v2825_v42, 4  ;;  %v2833_v23 = vrot.slane %v2832_v3, 4 }
 0x25e   : > { %v1553_v7 = vrot.slane %v1283_v47, %v4839_v39  ;;  %v2814_v55 = vrot.slane %v2813_v24, 2  ;;  %v1560_v33 = vrot.slane %v1546_v62, %v4839_v39  ;;  %v1818_v30 = vcombine.high %v1347_v43, %v1347_v43 }
 0x25f   : > { %v1825_v17 = vrot.slane %v1347_v43, %v4839_v39  ;;  %v2820_v14 = vmax.f32 %v2818_v16, %v2819_v28  ;;  %v2827_v56 = vmax.f32 %v2825_v42, %v2826_v59  ;;  %v2834_v5 = vmax.f32 %v2832_v3, %v2833_v23 }
 0x260   : > { %v1561_v40 = vcombine.high %v1553_v7, %v1553_v7  ;;  %v2815_v18 = vmax.f32 %v2813_v24, %v2814_v55  ;;  %v1562_v15 = vcombine.high %v1560_v33, %v1560_v33  ;;  %v2307_v27 = vsel %vm2082_vm13, %v1553_v7, -inf }
 0x261   : > { %v2321_v9 = vsel %vm2082_vm13, %v1560_v33, -inf  ;;  %v2821_v51 = vrot.slane %v2820_v14, 2  ;;  %v2828_v22 = vrot.slane %v2827_v56, 2  ;;  %v2835_v25 = vrot.slane %v2834_v5, 2 }
 0x262   : > { %v2308_v26 = vrot.slane %v2307_v27, 4  ;;  %v2816_v12 = vrot.slane %v2815_v18, 1  ;;  %v2314_v45 = vsel %vm2082_vm13, %v1561_v40, -inf  ;;  %v2322_v6 = vrot.slane %v2321_v9, 4 }
 0x263   : > { %v2328_v1 = vsel %vm2082_vm13, %v1562_v15, -inf  ;;  %v2822_v57 = vmax.f32 %v2820_v14, %v2821_v51  ;;  %v2829_v61 = vmax.f32 %v2827_v56, %v2828_v22  ;;  %v2836_v34 = vmax.f32 %v2834_v5, %v2835_v25 }
 0x264   : > { %v2309_v20 = vmax.f32 %v2307_v27, %v2308_v26  ;;  %v2817_v37 = vmax.f32 %v2815_v18, %v2816_v12  ;;  %v2315_v21 = vrot.slane %v2314_v45, 4  ;;  %v2323_v36 = vmax.f32 %v2321_v9, %v2322_v6 }
 0x265   : > { %v2329_v53 = vrot.slane %v2328_v1, 4  ;;  %v2823_v11 = vrot.slane %v2822_v57, 1  ;;  %v2830_v2 = vrot.slane %v2829_v61, 1  ;;  %v2837_v58 = vrot.slane %v2836_v34, 1 }
 0x266   : > { %v2310_v46 = vrot.slane %v2309_v20, 2  ;;  %v5276_v49 = vsel %vm2979_vm14, %v2817_v37, -inf  ;;  %v2316_v38 = vmax.f32 %v2314_v45, %v2315_v21  ;;  %v2324_v10 = vrot.slane %v2323_v36, 2 }
 0x267   : > { %v2330_v32 = vmax.f32 %v2328_v1, %v2329_v53  ;;  %v2824_v8 = vmax.f32 %v2822_v57, %v2823_v11  ;;  %v2831_v29 = vmax.f32 %v2829_v61, %v2830_v2  ;;  %v2838_v31 = vmax.f32 %v2836_v34, %v2837_v58 }
 0x268   : > { %v2311_v0 = vmax.f32 %v2309_v20, %v2310_v46  ;;  %v2317_v47 = vrot.slane %v2316_v38, 2  ;;  %v2325_v50 = vmax.f32 %v2323_v36, %v2324_v10  ;;  %v1832_v60 = vrot.slane %v1818_v30, %v4839_v39 }
 0x269   : > { %v2331_v44 = vrot.slane %v2330_v32, 2  ;;  %v5280_v63 = vsel %vm2979_vm14, %v2824_v8, -inf  ;;  %v5283_v4 = vsel %vm2979_vm14, %v2831_v29, -inf  ;;  %v5286_v35 = vsel %vm2979_vm14, %v2838_v31, -inf }
 0x26a   : > { %v2312_v54 = vrot.slane %v2311_v0, 1  ;;  %v2318_v16 = vmax.f32 %v2316_v38, %v2317_v47  ;;  %v2326_v42 = vrot.slane %v2325_v50, 1  ;;  %v1833_v62 = vcombine.high %v1825_v17, %v1825_v17 }
 0x26b   : > { %v2332_v3 = vmax.f32 %v2330_v32, %v2331_v44  ;;  %v1834_v24 = vcombine.high %v1832_v60, %v1832_v60  ;;  %v2755_v28 = vsel %vm2082_vm13, %v1825_v17, -inf  ;;  %v2769_v59 = vsel %vm2082_vm13, %v1832_v60, -inf  ;;  %v4053_v32 = vpop.f32.mrf.mxu0 }
 0x26c   : > { %v2313_v43 = vmax.f32 %v2311_v0, %v2312_v54  ;;  %v2319_v23 = vrot.slane %v2318_v16, 1  ;;  %v2327_v7 = vmax.f32 %v2325_v50, %v2326_v42  ;;  %v2756_v33 = vrot.slane %v2755_v28, 4 }
 0x26d   : > { %v2333_v55 = vrot.slane %v2332_v3, 1  ;;  %v2762_v14 = vsel %vm2082_vm13, %v1833_v62, -inf  ;;  %v2770_v56 = vrot.slane %v2769_v59, 4  ;;  %v2776_v5 = vsel %vm2082_vm13, %v1834_v24, -inf }
 0x26e   : > { %v3028_v30 = vsel %vm2979_vm14, %v2313_v43, -inf  ;;  %v2320_v40 = vmax.f32 %v2318_v16, %v2319_v23  ;;  %v3034_v27 = vsel %vm2979_vm14, %v2327_v7, -inf  ;;  %v2757_v9 = vmax.f32 %v2755_v28, %v2756_v33 }
 0x26f   : > { %v2334_v18 = vmax.f32 %v2332_v3, %v2333_v55  ;;  %v3030_v15 = vmax.f32 %v3028_v30, %v5251_v48  ;;  %v3036_v17 = vmax.f32 %v3034_v27, %v5263_v19  ;;  %v2763_v51 = vrot.slane %v2762_v14, 4 }
 0x270   : > { %v2771_v22 = vmax.f32 %v2769_v59, %v2770_v56  ;;  %v3031_v25 = vsel %vm2979_vm14, %v2320_v40, -inf  ;;  %v2777_v45 = vrot.slane %v2776_v5, 4  ;;  %v2758_v57 = vrot.slane %v2757_v9, 2 }
 0x271   : > { %v3037_v26 = vsel %vm2979_vm14, %v2334_v18, -inf  ;;  %v3195_v12 = vadd.f32 %v5209_v52, %v3030_v15  ;;  %v3033_v6 = vmax.f32 %v3031_v25, %v5260_v41  ;;  %v3197_v48 = vadd.f32 %v5209_v52, %v3036_v17 }
 0x272   : > { %v3039_v1 = vmax.f32 %v3037_v26, %v5266_v13  ;;  %v2764_v34 = vmax.f32 %v2762_v14, %v2763_v51  ;;  %v2772_v19 = vrot.slane %v2771_v22, 2  ;;  %v2778_v20 = vmax.f32 %v2776_v5, %v2777_v45 }
 0x273   : > { %v3259_v61 = vmax.f32 %v3195_v12, 0.0  ;;  %v3196_v37 = vadd.f32 %v5209_v52, %v3033_v6  ;;  %v3261_v36 = vmax.f32 %v3197_v48, 0.0  ;;  %v2759_v53 = vmax.f32 %v2757_v9, %v2758_v57 }
 0x274   : > { %v3198_v21 = vadd.f32 %v5209_v52, %v3039_v1  ;;  %v2765_v2 = vrot.slane %v2764_v34, 2  ;;  %v2773_v58 = vmax.f32 %v2771_v22, %v2772_v19  ;;  %v2779_v46 = vrot.slane %v2778_v20, 2 }
 0x275   : > { %v3972_v11 = vpack.c.bf16 %v3259_v61, %v3259_v61  ;;  %v3260_v41 = vmax.f32 %v3196_v37, 0.0  ;;  %v3974_v13 = vpack.c.bf16 %v3261_v36, %v3261_v36  ;;  %v2760_v10 = vrot.slane %v2759_v53, 1 }
 0x276   : > { %v3262_v38 = vmax.f32 %v3198_v21, 0.0  ;;  %v2766_v29 = vmax.f32 %v2764_v34, %v2765_v2  ;;  %v2774_v31 = vrot.slane %v2773_v58, 1  ;;  %v2780_v0 = vmax.f32 %v2778_v20, %v2779_v46  ;;  %v4069_v20 = vpop.f32.mrf.mxu1 }
 0x277   : > { %v3579_v8 = vunpack.c.l.b16 %v3972_v11  ;;  %v3973_v47 = vpack.c.bf16 %v3260_v41, %v3260_v41  ;;  %v3581_v44 = vunpack.c.l.b16 %v3974_v13  ;;  %v2761_v60 = vmax.f32 %v2759_v53, %v2760_v10 }
 0x278   : > { %v3975_v50 = vpack.c.bf16 %v3262_v38, %v3262_v38  ;;  %v2767_v54 = vrot.slane %v2766_v29, 1  ;;  %v2775_v16 = vmax.f32 %v2773_v58, %v2774_v31  ;;  %v2781_v42 = vrot.slane %v2780_v0, 1 }
 0x279   : > { %v1597_v3 = vcombine.high %v4053_v32, %v4053_v32  ;;  %v3580_v62 = vunpack.c.l.b16 %v3973_v47  ;;  %v3664_v24 = vrot.slane %v3581_v44, 6  ;;  %v3124_v28 = vsel %vm2979_vm14, %v2761_v60, -inf }
 0x27a   : > { %v3582_v43 = vunpack.c.l.b16 %v3975_v50  ;;  %v2768_v59 = vmax.f32 %v2766_v29, %v2767_v54  ;;  %v2782_v23 = vmax.f32 %v2780_v0, %v2781_v42  ;;  %v3126_v7 = vmax.f32 %v3124_v28, %v5276_v49 }
 0x27b   : > { %v3130_v55 = vsel %vm2979_vm14, %v2775_v16, -inf  ;;  %v3662_v33 = vrot.slane %v3580_v62, 7  ;;  %v1604_v56 = vrot.slane %v4053_v32, %v4839_v39  ;;  %v1611_v15 = vrot.slane %v1597_v3, %v4839_v39 }
 0x27c   : > { %v5307_v30 = vrot.slane %v3582_v43, 5  ;;  %v3132_v14 = vmax.f32 %v3130_v55, %v5283_v4  ;;  %v3127_v5 = vsel %vm2979_vm14, %v2768_v59, -inf  ;;  %v3133_v40 = vsel %vm2979_vm14, %v2782_v23, -inf }
 0x27d   : > { %v3227_v18 = vadd.f32 %v5209_v52, %v3126_v7  ;;  %v3663_v27 = vsel %vm3628_vm15, %v3662_v33, %v3579_v8  ;;  %v3129_v49 = vmax.f32 %v3127_v5, %v5280_v63  ;;  %v3135_v17 = vmax.f32 %v3133_v40, %v5286_v35 }
 0x27e   : > { %v3229_v9 = vadd.f32 %v5209_v52, %v3132_v14  ;;  %v5320_v4 = vsel %vm3631_vm0, %v3664_v24, %v3663_v27  ;;  %v1612_v22 = vcombine.high %v1604_v56, %v1604_v56  ;;  %v1613_v25 = vcombine.high %v1611_v15, %v1611_v15 }
 0x27f   : > { %v3291_v51 = vmax.f32 %v3227_v18, 0.0  ;;  %v3228_v26 = vadd.f32 %v5209_v52, %v3129_v49  ;;  %v3230_v12 = vadd.f32 %v5209_v52, %v3135_v17  ;;  %v2391_v6 = vsel %vm2082_vm13, %v1604_v56, -inf }
 0x280   : > { %v3293_v45 = vmax.f32 %v3229_v9, 0.0  ;;  %v2392_v48 = vrot.slane %v2391_v6, 4  ;;  %v2398_v63 = vsel %vm2082_vm13, %v1612_v22, -inf  ;;  %v2405_v35 = vsel %vm2082_vm13, %v1611_v15, -inf }
 0x281   : > { %v4004_v1 = vpack.c.bf16 %v3291_v51, %v3291_v51  ;;  %v3292_v57 = vmax.f32 %v3228_v26, 0.0  ;;  %v3294_v61 = vmax.f32 %v3230_v12, 0.0  ;;  %v2399_v19 = vrot.slane %v2398_v63, 4  ;;  %v1286_v51 = vpop.f32.mrf.mxu0 }
 0x282   : > { %v4006_v34 = vpack.c.bf16 %v3293_v45, %v3293_v45  ;;  %v2393_v21 = vmax.f32 %v2391_v6, %v2392_v48  ;;  %v2406_v36 = vrot.slane %v2405_v35, 4  ;;  %v2412_v53 = vsel %vm2082_vm13, %v1613_v25, -inf }
 0x283   : > { %v3611_v37 = vunpack.c.l.b16 %v4004_v1  ;;  %v4005_v11 = vpack.c.bf16 %v3292_v57, %v3292_v57  ;;  %v4007_v2 = vpack.c.bf16 %v3294_v61, %v3294_v61  ;;  %v2400_v46 = vmax.f32 %v2398_v63, %v2399_v19 }
 0x284   : > { %v3613_v58 = vunpack.c.l.b16 %v4006_v34  ;;  %v2394_v41 = vrot.slane %v2393_v21, 2  ;;  %v2407_v38 = vmax.f32 %v2405_v35, %v2406_v36  ;;  %v2413_v13 = vrot.slane %v2412_v53, 4  ;;  %v1350_v34 = vpop.f32.mrf.mxu1 }
 0x285   : > { %v1869_v10 = vcombine.high %v4069_v20, %v4069_v20  ;;  %v3612_v32 = vunpack.c.l.b16 %v4005_v11  ;;  %v3614_v8 = vunpack.c.l.b16 %v4007_v2  ;;  %v2401_v31 = vrot.slane %v2400_v46, 2 }
 0x286   : > { %v3720_v29 = vrot.slane %v3613_v58, 6  ;;  %v2395_v0 = vmax.f32 %v2393_v21, %v2394_v41  ;;  %v2408_v47 = vrot.slane %v2407_v38, 2  ;;  %v2414_v50 = vmax.f32 %v2412_v53, %v2413_v13 }
 0x287   : > { %v1876_v44 = vrot.slane %v4069_v20, %v4839_v39  ;;  %v3718_v60 = vrot.slane %v3612_v32, 7  ;;  %v5329_v54 = vrot.slane %v3614_v8, 5  ;;  %v2402_v16 = vmax.f32 %v2400_v46, %v2401_v31 }
 0x288   : > { %v1883_v42 = vrot.slane %v1869_v10, %v4839_v39  ;;  %v2396_v3 = vrot.slane %v2395_v0, 1  ;;  %v2409_v62 = vmax.f32 %v2407_v38, %v2408_v47  ;;  %v2415_v43 = vrot.slane %v2414_v50, 2 }
 0x289   : > { %v1884_v24 = vcombine.high %v1876_v44, %v1876_v44  ;;  %v3719_v28 = vsel %vm3628_vm15, %v3718_v60, %v3611_v37  ;;  %v2403_v59 = vrot.slane %v2402_v16, 1  ;;  %v2839_v7 = vsel %vm2082_vm13, %v1876_v44, -inf }
 0x28a   : > { %v1885_v23 = vcombine.high %v1883_v42, %v1883_v42  ;;  %v5335_v55 = vsel %vm3631_vm0, %v3720_v29, %v3719_v28  ;;  %v2397_v33 = vmax.f32 %v2395_v0, %v2396_v3  ;;  %v2410_v14 = vrot.slane %v2409_v62, 1 }
 0x28b   : > { %v2416_v56 = vmax.f32 %v2414_v50, %v2415_v43  ;;  %v2404_v5 = vmax.f32 %v2402_v16, %v2403_v59  ;;  %v2840_v40 = vrot.slane %v2839_v7, 4  ;;  %v2846_v18 = vsel %vm2082_vm13, %v1884_v24, -inf }
 0x28c   : > { %v2853_v15 = vsel %vm2082_vm13, %v1883_v42, -inf  ;;  %v2411_v27 = vmax.f32 %v2409_v62, %v2410_v14  ;;  %v5340_v17 = vsel %vm2979_vm14, %v2397_v33, -inf  ;;  %v2847_v9 = vrot.slane %v2846_v18, 4 }
 0x28d   : > { %v2417_v49 = vrot.slane %v2416_v56, 1  ;;  %v5343_v22 = vsel %vm2979_vm14, %v2404_v5, -inf  ;;  %v2841_v25 = vmax.f32 %v2839_v7, %v2840_v40  ;;  %v2854_v26 = vrot.slane %v2853_v15, 4 }
 0x28e   : > { %v2860_v12 = vsel %vm2082_vm13, %v1885_v23, -inf  ;;  %v5347_v6 = vsel %vm2979_vm14, %v2411_v27, -inf  ;;  %v2848_v1 = vmax.f32 %v2846_v18, %v2847_v9  ;;  %v1563_v57 = vcombine.high %v1286_v51, %v1286_v51 }
 0x28f   : > { %v2418_v45 = vmax.f32 %v2416_v56, %v2417_v49  ;;  %v2861_v48 = vrot.slane %v2860_v12, 4  ;;  %v2842_v63 = vrot.slane %v2841_v25, 2  ;;  %v2855_v35 = vmax.f32 %v2853_v15, %v2854_v26 }
 0x290   : > { %v1570_v61 = vrot.slane %v1286_v51, %v4839_v39  ;;  %v2849_v20 = vrot.slane %v2848_v1, 2  ;;  %v5356_v21 = vsel %vm3634_vm1, %v5307_v30, %v5320_v4  ;;  %v1577_v11 = vrot.slane %v1563_v57, %v4839_v39 }
 0x291   : > { %v5351_v19 = vsel %vm2979_vm14, %v2418_v45, -inf  ;;  %v2862_v37 = vmax.f32 %v2860_v12, %v2861_v48  ;;  %v2843_v36 = vmax.f32 %v2841_v25, %v2842_v63  ;;  %v2856_v53 = vrot.slane %v2855_v35, 2 }
 0x292   : > { %v1578_v2 = vcombine.high %v1570_v61, %v1570_v61  ;;  %v2850_v58 = vmax.f32 %v2848_v1, %v2849_v20  ;;  %v2335_v41 = vsel %vm2082_vm13, %v1570_v61, -inf  ;;  %v1835_v38 = vcombine.high %v1350_v34, %v1350_v34 }
 0x293   : > { %v2863_v46 = vrot.slane %v2862_v37, 2  ;;  %v2844_v13 = vrot.slane %v2843_v36, 1  ;;  %v2857_v10 = vmax.f32 %v2855_v35, %v2856_v53  ;;  %v1579_v32 = vcombine.high %v1577_v11, %v1577_v11 }
 0x294   : > { %v2336_v8 = vrot.slane %v2335_v41, 4  ;;  %v2851_v29 = vrot.slane %v2850_v58, 1  ;;  %v2342_v0 = vsel %vm2082_vm13, %v1578_v2, -inf  ;;  %v2349_v30 = vsel %vm2082_vm13, %v1577_v11, -inf }
 0x295   : > { %v2864_v31 = vmax.f32 %v2862_v37, %v2863_v46  ;;  %v2845_v4 = vmax.f32 %v2843_v36, %v2844_v13  ;;  %v2858_v47 = vrot.slane %v2857_v10, 1  ;;  %v2343_v44 = vrot.slane %v2342_v0, 4 }
 0x296   : > { %v2337_v50 = vmax.f32 %v2335_v41, %v2336_v8  ;;  %v2852_v60 = vmax.f32 %v2850_v58, %v2851_v29  ;;  %v2350_v42 = vrot.slane %v2349_v30, 4  ;;  %v2356_v3 = vsel %vm2082_vm13, %v1579_v32, -inf }
 0x297   : > { %v2865_v16 = vrot.slane %v2864_v31, 1  ;;  %v2859_v62 = vmax.f32 %v2857_v10, %v2858_v47  ;;  %v5364_v43 = vsel %vm2979_vm14, %v2845_v4, -inf  ;;  %v2344_v28 = vmax.f32 %v2342_v0, %v2343_v44 }
 0x298   : > { %v2338_v24 = vrot.slane %v2337_v50, 2  ;;  %v5367_v23 = vsel %vm2979_vm14, %v2852_v60, -inf  ;;  %v2351_v7 = vmax.f32 %v2349_v30, %v2350_v42  ;;  %v2357_v33 = vrot.slane %v2356_v3, 4 }
 0x299   : > { %v2866_v59 = vmax.f32 %v2864_v31, %v2865_v16  ;;  %v5370_v14 = vsel %vm2979_vm14, %v2859_v62, -inf  ;;  %v2345_v5 = vrot.slane %v2344_v28, 2  ;;  %v1842_v40 = vrot.slane %v1350_v34, %v4839_v39 }
 0x29a   : > { %v2339_v56 = vmax.f32 %v2337_v50, %v2338_v24  ;;  %v2352_v15 = vrot.slane %v2351_v7, 2  ;;  %v2358_v27 = vmax.f32 %v2356_v3, %v2357_v33  ;;  %v1849_v49 = vrot.slane %v1835_v38, %v4839_v39 }
 0x29b   : > { %v5374_v18 = vsel %vm2979_vm14, %v2866_v59, -inf  ;;  %v2346_v51 = vmax.f32 %v2344_v28, %v2345_v5  ;;  %v1850_v25 = vcombine.high %v1842_v40, %v1842_v40  ;;  %v2783_v26 = vsel %vm2082_vm13, %v1842_v40, -inf }
 0x29c   : > { %v2340_v9 = vrot.slane %v2339_v56, 1  ;;  %v2353_v12 = vmax.f32 %v2351_v7, %v2352_v15  ;;  %v2359_v45 = vrot.slane %v2358_v27, 2  ;;  %v1851_v1 = vcombine.high %v1849_v49, %v1849_v49 }
 0x29d   : > { %v2784_v48 = vrot.slane %v2783_v26, 4  ;;  %v2347_v35 = vrot.slane %v2346_v51, 1  ;;  %v2790_v57 = vsel %vm2082_vm13, %v1850_v25, -inf  ;;  %v2797_v61 = vsel %vm2082_vm13, %v1849_v49, -inf }
 0x29e   : > { %v2341_v63 = vmax.f32 %v2339_v56, %v2340_v9  ;;  %v2354_v34 = vrot.slane %v2353_v12, 1  ;;  %v2360_v20 = vmax.f32 %v2358_v27, %v2359_v45  ;;  %v2791_v36 = vrot.slane %v2790_v57, 4 }
 0x29f   : > { %v2785_v37 = vmax.f32 %v2783_v26, %v2784_v48  ;;  %v2348_v53 = vmax.f32 %v2346_v51, %v2347_v35  ;;  %v2798_v2 = vrot.slane %v2797_v61, 4  ;;  %v2804_v58 = vsel %vm2082_vm13, %v1851_v1, -inf }
 0x2a0   : > { %v3040_v11 = vsel %vm2979_vm14, %v2341_v63, -inf  ;;  %v2355_v46 = vmax.f32 %v2353_v12, %v2354_v34  ;;  %v2361_v41 = vrot.slane %v2360_v20, 1  ;;  %v2792_v32 = vmax.f32 %v2790_v57, %v2791_v36 }
 0x2a1   : > { %v3042_v38 = vmax.f32 %v3040_v11, %v5340_v17  ;;  %v2786_v13 = vrot.slane %v2785_v37, 2  ;;  %v3043_v10 = vsel %vm2979_vm14, %v2348_v53, -inf  ;;  %v2799_v8 = vmax.f32 %v2797_v61, %v2798_v2 }
 0x2a2   : > { %v2805_v29 = vrot.slane %v2804_v58, 4  ;;  %v2362_v31 = vmax.f32 %v2360_v20, %v2361_v41  ;;  %v3045_v0 = vmax.f32 %v3043_v10, %v5343_v22  ;;  %v3046_v30 = vsel %vm2979_vm14, %v2355_v46, -inf  ;;  %v4056_v41 = vpop.f32.mrf.mxu0 }
 0x2a3   : > { %v3199_v4 = vadd.f32 %v5209_v52, %v3042_v38  ;;  %v3048_v47 = vmax.f32 %v3046_v30, %v5347_v6  ;;  %v2787_v50 = vmax.f32 %v2785_v37, %v2786_v13  ;;  %v2793_v44 = vrot.slane %v2792_v32, 2 }
 0x2a4   : > { %v2800_v60 = vrot.slane %v2799_v8, 2  ;;  %v3049_v17 = vsel %vm2979_vm14, %v2362_v31, -inf  ;;  %v3200_v16 = vadd.f32 %v5209_v52, %v3045_v0  ;;  %v2806_v3 = vmax.f32 %v2804_v58, %v2805_v29 }
 0x2a5   : > { %v3263_v42 = vmax.f32 %v3199_v4, 0.0  ;;  %v3051_v62 = vmax.f32 %v3049_v17, %v5351_v19  ;;  %v3201_v24 = vadd.f32 %v5209_v52, %v3048_v47  ;;  %v2788_v22 = vrot.slane %v2787_v50, 1 }
 0x2a6   : > { %v2794_v28 = vmax.f32 %v2792_v32, %v2793_v44  ;;  %v3264_v59 = vmax.f32 %v3200_v16, 0.0  ;;  %v2801_v33 = vmax.f32 %v2799_v8, %v2800_v60  ;;  %v2807_v56 = vrot.slane %v2806_v3, 2 }
 0x2a7   : > { %v3976_v7 = vpack.c.bf16 %v3263_v42, %v3263_v42  ;;  %v3202_v6 = vadd.f32 %v5209_v52, %v3051_v62  ;;  %v3265_v5 = vmax.f32 %v3201_v24, 0.0  ;;  %v2789_v40 = vmax.f32 %v2787_v50, %v2788_v22 }
 0x2a8   : > { %v2795_v15 = vrot.slane %v2794_v28, 1  ;;  %v3977_v27 = vpack.c.bf16 %v3264_v59, %v3264_v59  ;;  %v2802_v9 = vrot.slane %v2801_v33, 1  ;;  %v2808_v51 = vmax.f32 %v2806_v3, %v2807_v56 }
 0x2a9   : > { %v3583_v49 = vunpack.c.l.b16 %v3976_v7  ;;  %v3266_v25 = vmax.f32 %v3202_v6, 0.0  ;;  %v3978_v26 = vpack.c.bf16 %v3265_v5, %v3265_v5  ;;  %v3136_v12 = vsel %vm2979_vm14, %v2789_v40, -inf  ;;  %v4072_v40 = vpop.f32.mrf.mxu1 }
 0x2aa   : > { %v2796_v19 = vmax.f32 %v2794_v28, %v2795_v15  ;;  %v3584_v45 = vunpack.c.l.b16 %v3977_v27  ;;  %v2803_v48 = vmax.f32 %v2801_v33, %v2802_v9  ;;  %v2809_v63 = vrot.slane %v2808_v51, 1 }
 0x2ab   : > { %v3668_v1 = vrot.slane %v3583_v49, 4  ;;  %v3979_v35 = vpack.c.bf16 %v3266_v25, %v3266_v25  ;;  %v3585_v57 = vunpack.c.l.b16 %v3978_v26  ;;  %v3138_v61 = vmax.f32 %v3136_v12, %v5364_v43 }
 0x2ac   : > { %v3139_v34 = vsel %vm2979_vm14, %v2796_v19, -inf  ;;  %v3670_v37 = vrot.slane %v3584_v45, 3  ;;  %v2810_v36 = vmax.f32 %v2808_v51, %v2809_v63  ;;  %v3142_v58 = vsel %vm2979_vm14, %v2803_v48, -inf }
 0x2ad   : > { %v3669_v20 = vsel %vm3637_vm2, %v3668_v1, %v5356_v21  ;;  %v3141_v53 = vmax.f32 %v3139_v34, %v5367_v23  ;;  %v3586_v11 = vunpack.c.l.b16 %v3979_v35  ;;  %v3672_v2 = vrot.slane %v3585_v57, 2 }
 0x2ae   : > { %v3231_v46 = vadd.f32 %v5209_v52, %v3138_v61  ;;  %v3671_v38 = vsel %vm3640_vm3, %v3670_v37, %v3669_v20  ;;  %v3144_v43 = vmax.f32 %v3142_v58, %v5370_v14  ;;  %v3145_v13 = vsel %vm2979_vm14, %v2810_v36, -inf }
 0x2af   : > { %v3232_v10 = vadd.f32 %v5209_v52, %v3141_v53  ;;  %v3673_v21 = vsel %vm3643_vm4, %v3672_v2, %v3671_v38  ;;  %v3674_v32 = vrot.slane %v3586_v11, 1  ;;  %v3147_v23 = vmax.f32 %v3145_v13, %v5374_v18 }
 0x2b0   : > { %v3295_v8 = vmax.f32 %v3231_v46, 0.0  ;;  %v3233_v29 = vadd.f32 %v5209_v52, %v3144_v43  ;;  %v3723_v0 = vsel %vm3634_vm1, %v5329_v54, %v5335_v55  ;;  %v1648_v30 = vcombine.high %v4056_v41, %v4056_v41 }
 0x2b1   : > { %v3296_v31 = vmax.f32 %v3232_v10, 0.0  ;;  %v3675_v14 = vsel %vm3646_vm5, %v3674_v32, %v3673_v21  ;;  %v3234_v4 = vadd.f32 %v5209_v52, %v3147_v23  ;;  %v1655_v50 = vrot.slane %v4056_v41, %v4839_v39 }
 0x2b2   : > { %v4008_v47 = vpack.c.bf16 %v3295_v8, %v3295_v8  ;;  %v3748_v44 = vpack.c.b16 %v3675_v14, %v3675_v14  ;;  %v3297_v60 = vmax.f32 %v3233_v29, 0.0  ;;  %v1662_v17 = vrot.slane %v1648_v30, %v4839_v39  ;;  %v1299_v30 = vpop.f32.mrf.mxu0 }
 0x2b3   : > { %v4009_v18 = vpack.c.bf16 %v3296_v31, %v3296_v31  ;;  %v3298_v16 = vmax.f32 %v3234_v4, 0.0  ;;  %v1663_v3 = vcombine.high %v1655_v50, %v1655_v50  ;;  %v2475_v62 = vsel %vm2082_vm13, %v1655_v50, -inf }
 0x2b4   : > { %v3615_v42 = vunpack.c.l.b16 %v4008_v47  ;;  %3765 = vst.msk [vmem:[%s5036_s8 + $0x8] sm:$0xf] %vm3762_vm6, %v3748_v44  ;;  %v4010_v54 = vpack.c.bf16 %v3297_v60, %v3297_v60  ;;  %v1664_v24 = vcombine.high %v1662_v17, %v1662_v17  ;;  %v2476_v22 = vrot.slane %v2475_v62, 4 }
 0x2b5   : > { %v3616_v55 = vunpack.c.l.b16 %v4009_v18  ;;  %v4011_v52 = vpack.c.bf16 %v3298_v16, %v3298_v16  ;;  %v2482_v59 = vsel %vm2082_vm13, %v1663_v3, -inf  ;;  %v2489_v7 = vsel %vm2082_vm13, %v1662_v17, -inf }
 0x2b6   : > { %v3724_v28 = vrot.slane %v3615_v42, 4  ;;  %v3617_v33 = vunpack.c.l.b16 %v4010_v54  ;;  %v2477_v6 = vmax.f32 %v2475_v62, %v2476_v22  ;;  %v2483_v5 = vrot.slane %v2482_v59, 4 }
 0x2b7   : > { %v3726_v56 = vrot.slane %v3616_v55, 3  ;;  %v3618_v15 = vunpack.c.l.b16 %v4011_v52  ;;  %v2490_v49 = vrot.slane %v2489_v7, 4  ;;  %v2496_v9 = vsel %vm2082_vm13, %v1664_v24, -inf }
 0x2b8   : > { %v3725_v27 = vsel %vm3637_vm2, %v3724_v28, %v3723_v0  ;;  %v3728_v25 = vrot.slane %v3617_v33, 2  ;;  %v2478_v26 = vrot.slane %v2477_v6, 2  ;;  %v2484_v19 = vmax.f32 %v2482_v59, %v2483_v5  ;;  %v1363_v5 = vpop.f32.mrf.mxu1 }
 0x2b9   : > { %v3727_v51 = vsel %vm3640_vm3, %v3726_v56, %v3725_v27  ;;  %v3730_v12 = vrot.slane %v3618_v15, 1  ;;  %v2491_v45 = vmax.f32 %v2489_v7, %v2490_v49  ;;  %v2497_v1 = vrot.slane %v2496_v9, 4 }
 0x2ba   : > { %v1920_v48 = vcombine.high %v4072_v40, %v4072_v40  ;;  %v3729_v63 = vsel %vm3643_vm4, %v3728_v25, %v3727_v51  ;;  %v2479_v35 = vmax.f32 %v2477_v6, %v2478_v26  ;;  %v2485_v57 = vrot.slane %v2484_v19, 2 }
 0x2bb   : > { %v1927_v61 = vrot.slane %v4072_v40, %v4839_v39  ;;  %v3731_v34 = vsel %vm3646_vm5, %v3730_v12, %v3729_v63  ;;  %v2492_v20 = vrot.slane %v2491_v45, 2  ;;  %v2498_v37 = vmax.f32 %v2496_v9, %v2497_v1 }
 0x2bc   : > { %v1934_v36 = vrot.slane %v1920_v48, %v4839_v39  ;;  %v3752_v53 = vpack.c.b16 %v3731_v34, %v3731_v34  ;;  %v2480_v11 = vrot.slane %v2479_v35, 1  ;;  %v2486_v2 = vmax.f32 %v2484_v19, %v2485_v57 }
 0x2bd   : > { %v1935_v58 = vcombine.high %v1927_v61, %v1927_v61  ;;  %v2493_v46 = vmax.f32 %v2491_v45, %v2492_v20  ;;  %v2499_v41 = vrot.slane %v2498_v37, 2  ;;  %v2923_v43 = vsel %vm2082_vm13, %v1927_v61, -inf }
 0x2be   : > { %v1936_v38 = vcombine.high %v1934_v36, %v1934_v36  ;;  %3769 = vst.msk [vmem:[%s5036_s8 + $0x18] sm:$0xf] %vm3762_vm6, %v3752_v53  ;;  %v2481_v13 = vmax.f32 %v2479_v35, %v2480_v11  ;;  %v2924_v10 = vrot.slane %v2923_v43, 4  ;;  %v2487_v32 = vrot.slane %v2486_v2, 1 }
 0x2bf   : > { %v2930_v21 = vsel %vm2082_vm13, %v1935_v58, -inf  ;;  %v2500_v23 = vmax.f32 %v2498_v37, %v2499_v41  ;;  %v2937_v29 = vsel %vm2082_vm13, %v1934_v36, -inf  ;;  %v2494_v14 = vrot.slane %v2493_v46, 1 }
 0x2c0   : > { %v2931_v8 = vrot.slane %v2930_v21, 4  ;;  %v2925_v31 = vmax.f32 %v2923_v43, %v2924_v10  ;;  %v2938_v0 = vrot.slane %v2937_v29, 4  ;;  %v2944_v50 = vsel %vm2082_vm13, %v1936_v38, -inf }
 0x2c1   : > { %v2501_v4 = vrot.slane %v2500_v23, 1  ;;  %v2945_v18 = vrot.slane %v2944_v50, 4  ;;  %v2488_v17 = vmax.f32 %v2486_v2, %v2487_v32  ;;  %v5434_v16 = vsel %vm2979_vm14, %v2481_v13, -inf }
 0x2c2   : > { %v2932_v47 = vmax.f32 %v2930_v21, %v2931_v8  ;;  %v2926_v44 = vrot.slane %v2925_v31, 2  ;;  %v2939_v60 = vmax.f32 %v2937_v29, %v2938_v0  ;;  %v1614_v3 = vcombine.high %v1299_v30, %v1299_v30 }
 0x2c3   : > { %v2946_v55 = vmax.f32 %v2944_v50, %v2945_v18  ;;  %v1621_v24 = vrot.slane %v1299_v30, %v4839_v39  ;;  %v2495_v22 = vmax.f32 %v2493_v46, %v2494_v14  ;;  %v2502_v52 = vmax.f32 %v2500_v23, %v2501_v4 }
 0x2c4   : > { %v2933_v42 = vrot.slane %v2932_v47, 2  ;;  %v2927_v62 = vmax.f32 %v2925_v31, %v2926_v44  ;;  %v2940_v54 = vrot.slane %v2939_v60, 2  ;;  %v1628_v59 = vrot.slane %v1614_v3, %v4839_v39 }
 0x2c5   : > { %v2947_v56 = vrot.slane %v2946_v55, 2  ;;  %v1629_v6 = vcombine.high %v1621_v24, %v1621_v24  ;;  %v2419_v27 = vsel %vm2082_vm13, %v1621_v24, -inf  ;;  %v5441_v9 = vsel %vm2979_vm14, %v2488_v17, -inf }
 0x2c6   : > { %v2934_v28 = vmax.f32 %v2932_v47, %v2933_v42  ;;  %v2928_v7 = vrot.slane %v2927_v62, 1  ;;  %v2941_v33 = vmax.f32 %v2939_v60, %v2940_v54  ;;  %v1630_v15 = vcombine.high %v1628_v59, %v1628_v59 }
 0x2c7   : > { %v2433_v49 = vsel %vm2082_vm13, %v1628_v59, -inf  ;;  %v5443_v25 = vmax.f32 %v2946_v55, %v2947_v56  ;;  %v2420_v26 = vrot.slane %v2419_v27, 4  ;;  %v2426_v19 = vsel %vm2082_vm13, %v1629_v6, -inf }
 0x2c8   : > { %v2935_v40 = vrot.slane %v2934_v28, 1  ;;  %v2942_v51 = vrot.slane %v2941_v33, 1  ;;  %v2434_v12 = vrot.slane %v2433_v49, 4  ;;  %v2440_v45 = vsel %vm2082_vm13, %v1630_v15, -inf }
 0x2c9   : > { %v1886_v1 = vcombine.high %v1363_v5, %v1363_v5  ;;  %v3059_v48 = vsel %vm2979_vm14, %v2495_v22, -inf  ;;  %v5449_v63 = vsel %vm2979_vm14, %v2502_v52, -inf  ;;  %v2929_v35 = vmax.f32 %v2927_v62, %v2928_v7 }
 0x2ca   : > { %v2421_v57 = vmax.f32 %v2419_v27, %v2420_v26  ;;  %v5451_v61 = vmax.f32 %v2934_v28, %v2935_v40  ;;  %v2427_v34 = vrot.slane %v2426_v19, 4  ;;  %v2435_v20 = vmax.f32 %v2433_v49, %v2434_v12 }
 0x2cb   : > { %v2441_v37 = vrot.slane %v2440_v45, 4  ;;  %v5453_v36 = vmax.f32 %v2941_v33, %v2942_v51  ;;  %v2949_v53 = vrot.slane %v5443_v25, 1  ;;  %v1893_v2 = vrot.slane %v1363_v5, %v4839_v39  ;;  %v5473_v51 = vld [vmem:[%s5613_s2] ss:$0 sm:$0xff] }
 0x2cc   : > { %v2422_v11 = vrot.slane %v2421_v57, 2  ;;  %v2428_v58 = vmax.f32 %v2426_v19, %v2427_v34  ;;  %v2436_v46 = vrot.slane %v2435_v20, 2  ;;  %v1900_v38 = vrot.slane %v1886_v1, %v4839_v39 }
 0x2cd   : > { %v2442_v41 = vmax.f32 %v2440_v45, %v2441_v37  ;;  %v5459_v43 = vsel %vm2979_vm14, %v2929_v35, -inf  ;;  %v1901_v10 = vcombine.high %v1893_v2, %v1893_v2  ;;  %v2867_v21 = vsel %vm2082_vm13, %v1893_v2, -inf }
 0x2ce   : > { %v2423_v13 = vmax.f32 %v2421_v57, %v2422_v11  ;;  %v2429_v32 = vrot.slane %v2428_v58, 2  ;;  %v2437_v23 = vmax.f32 %v2435_v20, %v2436_v46  ;;  %v1902_v29 = vcombine.high %v1900_v38, %v1900_v38 }
 0x2cf   : > { %v2443_v8 = vrot.slane %v2442_v41, 2  ;;  %v2868_v0 = vrot.slane %v2867_v21, 4  ;;  %v2874_v30 = vsel %vm2082_vm13, %v1901_v10, -inf  ;;  %v2881_v14 = vsel %vm2082_vm13, %v1900_v38, -inf }
 0x2d0   : > { %v2424_v31 = vrot.slane %v2423_v13, 1  ;;  %v2430_v4 = vmax.f32 %v2428_v58, %v2429_v32  ;;  %v2438_v47 = vrot.slane %v2437_v23, 1  ;;  %v2875_v44 = vrot.slane %v2874_v30, 4 }
 0x2d1   : > { %v2444_v50 = vmax.f32 %v2442_v41, %v2443_v8  ;;  %v2869_v18 = vmax.f32 %v2867_v21, %v2868_v0  ;;  %v2882_v17 = vrot.slane %v2881_v14, 4  ;;  %v2888_v42 = vsel %vm2082_vm13, %v1902_v29, -inf }
 0x2d2   : > { %v2425_v60 = vmax.f32 %v2423_v13, %v2424_v31  ;;  %v2431_v3 = vrot.slane %v2430_v4, 1  ;;  %v2439_v62 = vmax.f32 %v2437_v23, %v2438_v47  ;;  %v2876_v55 = vmax.f32 %v2874_v30, %v2875_v44 }
 0x2d3   : > { %v2445_v54 = vrot.slane %v2444_v50, 1  ;;  %v2870_v22 = vrot.slane %v2869_v18, 2  ;;  %v2883_v52 = vmax.f32 %v2881_v14, %v2882_v17  ;;  %v2889_v28 = vrot.slane %v2888_v42, 4 }
 0x2d4   : > { %v3052_v24 = vsel %vm2979_vm14, %v2425_v60, -inf  ;;  %v2432_v59 = vmax.f32 %v2430_v4, %v2431_v3  ;;  %v3058_v56 = vsel %vm2979_vm14, %v2439_v62, -inf  ;;  %v2877_v40 = vrot.slane %v2876_v55, 2 }
 0x2d5   : > { %v2446_v7 = vmax.f32 %v2444_v50, %v2445_v54  ;;  %v3054_v33 = vmax.f32 %v3052_v24, %v5434_v16  ;;  %v3060_v6 = vmax.f32 %v3058_v56, %v3059_v48  ;;  %v2871_v5 = vmax.f32 %v2869_v18, %v2870_v22 }
 0x2d6   : > { %v2884_v15 = vrot.slane %v2883_v52, 2  ;;  %v3055_v27 = vsel %vm2979_vm14, %v2432_v59, -inf  ;;  %v2890_v19 = vmax.f32 %v2888_v42, %v2889_v28  ;;  %v2950_v48 = vmax.f32 %v5443_v25, %v2949_v53  ;;  %v4057_v53 = vpop.f32.mrf.mxu0 }
 0x2d7   : > { %v3061_v49 = vsel %vm2979_vm14, %v2446_v7, -inf  ;;  %v3203_v26 = vadd.f32 %v5473_v51, %v3054_v33  ;;  %v3057_v16 = vmax.f32 %v3055_v27, %v5441_v9  ;;  %v3205_v45 = vadd.f32 %v5473_v51, %v3060_v6 }
 0x2d8   : > { %v3063_v12 = vmax.f32 %v3061_v49, %v5449_v63  ;;  %v2872_v1 = vrot.slane %v2871_v5, 1  ;;  %v2878_v35 = vmax.f32 %v2876_v55, %v2877_v40  ;;  %v2885_v57 = vmax.f32 %v2883_v52, %v2884_v15 }
 0x2d9   : > { %v2891_v34 = vrot.slane %v2890_v19, 2  ;;  %v3204_v20 = vadd.f32 %v5473_v51, %v3057_v16  ;;  %v3269_v11 = vmax.f32 %v3205_v45, 0.0  ;;  %v3152_v58 = vsel %vm2979_vm14, %v5451_v61, -inf }
 0x2da   : > { %v3206_v37 = vadd.f32 %v5473_v51, %v3063_v12  ;;  %v2873_v2 = vmax.f32 %v2871_v5, %v2872_v1  ;;  %v2879_v9 = vrot.slane %v2878_v35, 1  ;;  %v2886_v46 = vrot.slane %v2885_v57, 1 }
 0x2db   : > { %v2892_v63 = vmax.f32 %v2890_v19, %v2891_v34  ;;  %v3267_v41 = vmax.f32 %v3203_v26, 0.0  ;;  %v3268_v38 = vmax.f32 %v3204_v20, 0.0  ;;  %v3155_v10 = vsel %vm2979_vm14, %v5453_v36, -inf  ;;  %v4073_v26 = vpop.f32.mrf.mxu1 }
 0x2dc   : > { %v3270_v13 = vmax.f32 %v3206_v37, 0.0  ;;  %v3148_v25 = vsel %vm2979_vm14, %v2873_v2, -inf  ;;  %v2880_v21 = vmax.f32 %v2878_v35, %v2879_v9  ;;  %v2887_v32 = vmax.f32 %v2885_v57, %v2886_v46 }
 0x2dd   : > { %v2893_v23 = vrot.slane %v2892_v63, 1  ;;  %v3158_v8 = vsel %vm2979_vm14, %v2950_v48, -inf  ;;  %v3981_v29 = vpack.c.bf16 %v3268_v38, %v3268_v38  ;;  %v3982_v31 = vpack.c.bf16 %v3269_v11, %v3269_v11 }
 0x2de   : > { %v3150_v61 = vmax.f32 %v3148_v25, %v5459_v43  ;;  %v3151_v30 = vsel %vm2979_vm14, %v2880_v21, -inf  ;;  %v3154_v14 = vsel %vm2979_vm14, %v2887_v32, -inf  ;;  %v1665_v4 = vcombine.high %v4057_v53, %v4057_v53 }
 0x2df   : > { %v2894_v0 = vmax.f32 %v2892_v63, %v2893_v23  ;;  %v3980_v47 = vpack.c.bf16 %v3267_v41, %v3267_v41  ;;  %v3983_v50 = vpack.c.bf16 %v3270_v13, %v3270_v13  ;;  %v3588_v44 = vunpack.c.l.b16 %v3981_v29 }
 0x2e0   : > { %v3153_v60 = vmax.f32 %v3151_v30, %v3152_v58  ;;  %v3156_v36 = vmax.f32 %v3154_v14, %v3155_v10  ;;  %v3235_v17 = vadd.f32 %v5473_v51, %v3150_v61  ;;  %v1672_v42 = vrot.slane %v4057_v53, %v4839_v39 }
 0x2e1   : > { %v3157_v18 = vsel %vm2979_vm14, %v2894_v0, -inf  ;;  %v3589_v3 = vunpack.c.l.b16 %v3982_v31  ;;  %v3676_v62 = vrot.slane %v3588_v44, 7  ;;  %v1679_v22 = vrot.slane %v1665_v4, %v4839_v39 }
 0x2e2   : > { %v3159_v43 = vmax.f32 %v3157_v18, %v3158_v8  ;;  %v3236_v54 = vadd.f32 %v5473_v51, %v3153_v60  ;;  %v3237_v55 = vadd.f32 %v5473_v51, %v3156_v36  ;;  %v3299_v24 = vmax.f32 %v3235_v17, 0.0 }
 0x2e3   : > { %v1680_v52 = vcombine.high %v1672_v42, %v1672_v42  ;;  %v2503_v7 = vsel %vm2082_vm13, %v1672_v42, -inf  ;;  %v3587_v33 = vunpack.c.l.b16 %v3980_v47  ;;  %v3590_v56 = vunpack.c.l.b16 %v3983_v50 }
 0x2e4   : > { %v3238_v28 = vadd.f32 %v5473_v51, %v3159_v43  ;;  %v3300_v59 = vmax.f32 %v3236_v54, 0.0  ;;  %v3301_v6 = vmax.f32 %v3237_v55, 0.0  ;;  %v1681_v5 = vcombine.high %v1679_v22, %v1679_v22  ;;  %v1302_v43 = vpop.f32.mrf.mxu0 }
 0x2e5   : > { %v3678_v40 = vrot.slane %v3589_v3, 6  ;;  %v2504_v27 = vrot.slane %v2503_v7, 4  ;;  %v2510_v49 = vsel %vm2082_vm13, %v1680_v52, -inf  ;;  %v3677_v19 = vsel %vm3628_vm15, %v3676_v62, %v3587_v33 }
 0x2e6   : > { %v3302_v15 = vmax.f32 %v3238_v28, 0.0  ;;  %v5501_v16 = vpack.c.bf16 %v3299_v24, %v3299_v24  ;;  %v2511_v12 = vrot.slane %v2510_v49, 4  ;;  %v2517_v45 = vsel %vm2082_vm13, %v1679_v22, -inf }
 0x2e7   : > { %v4013_v1 = vpack.c.bf16 %v3300_v59, %v3300_v59  ;;  %v4014_v48 = vpack.c.bf16 %v3301_v6, %v3301_v6  ;;  %v2505_v35 = vmax.f32 %v2503_v7, %v2504_v27  ;;  %v2518_v57 = vrot.slane %v2517_v45, 4 }
 0x2e8   : > { %v5504_v34 = vpack.c.bf16 %v3302_v15, %v3302_v15  ;;  %v2512_v20 = vmax.f32 %v2510_v49, %v2511_v12  ;;  %v2524_v37 = vsel %vm2082_vm13, %v1681_v5, -inf  ;;  %v1937_v11 = vcombine.high %v4073_v26, %v4073_v26 }
 0x2e9   : > { %v5508_v2 = vsel %vm3631_vm0, %v3678_v40, %v3677_v19  ;;  %v5510_v58 = vrot.slane %v3590_v56, 5  ;;  %v2506_v9 = vrot.slane %v2505_v35, 2  ;;  %v2519_v46 = vmax.f32 %v2517_v45, %v2518_v57 }
 0x2ea   : > { %v3619_v63 = vunpack.c.l.b16 %v5501_v16  ;;  %v2513_v41 = vrot.slane %v2512_v20, 2  ;;  %v2525_v38 = vrot.slane %v2524_v37, 4  ;;  %v1944_v13 = vrot.slane %v4073_v26, %v4839_v39 }
 0x2eb   : > { %v3620_v25 = vunpack.c.l.b16 %v4013_v1  ;;  %v3621_v53 = vunpack.c.l.b16 %v4014_v48  ;;  %v2507_v10 = vmax.f32 %v2505_v35, %v2506_v9  ;;  %v2520_v21 = vrot.slane %v2519_v46, 2 }
 0x2ec   : > { %v3622_v32 = vunpack.c.l.b16 %v5504_v34  ;;  %v2514_v23 = vmax.f32 %v2512_v20, %v2513_v41  ;;  %v2526_v8 = vmax.f32 %v2524_v37, %v2525_v38  ;;  %v1951_v29 = vrot.slane %v1937_v11, %v4839_v39 }
 0x2ed   : > { %v2508_v31 = vrot.slane %v2507_v10, 1  ;;  %v2521_v61 = vmax.f32 %v2519_v46, %v2520_v21  ;;  %v1952_v0 = vcombine.high %v1944_v13, %v1944_v13  ;;  %v2951_v30 = vsel %vm2082_vm13, %v1944_v13, -inf }
 0x2ee   : > { %v2515_v14 = vrot.slane %v2514_v23, 1  ;;  %v2527_v4 = vrot.slane %v2526_v8, 2  ;;  %v1953_v47 = vcombine.high %v1951_v29, %v1951_v29  ;;  %v2952_v50 = vrot.slane %v2951_v30, 4 }
 0x2ef   : > { %v2509_v44 = vmax.f32 %v2507_v10, %v2508_v31  ;;  %v2522_v60 = vrot.slane %v2521_v61, 1  ;;  %v2958_v36 = vsel %vm2082_vm13, %v1952_v0, -inf  ;;  %v2965_v18 = vsel %vm2082_vm13, %v1951_v29, -inf }
 0x2f0   : > { %v2516_v17 = vmax.f32 %v2514_v23, %v2515_v14  ;;  %v2528_v42 = vmax.f32 %v2526_v8, %v2527_v4  ;;  %v2953_v3 = vmax.f32 %v2951_v30, %v2952_v50  ;;  %v2959_v62 = vrot.slane %v2958_v36, 4 }
 0x2f1   : > { %v5519_v54 = vrot.slane %v3620_v25, 7  ;;  %v2523_v55 = vmax.f32 %v2521_v61, %v2522_v60  ;;  %v2966_v24 = vrot.slane %v2965_v18, 4  ;;  %v2972_v22 = vsel %vm2082_vm13, %v1953_v47, -inf  ;;  %v1366_v61 = vpop.f32.mrf.mxu1 }
 0x2f2   : > { %v5522_v52 = vrot.slane %v3621_v53, 6  ;;  %v2529_v28 = vrot.slane %v2528_v42, 1  ;;  %v2954_v59 = vrot.slane %v2953_v3, 2  ;;  %v2960_v7 = vmax.f32 %v2958_v36, %v2959_v62 }
 0x2f3   : > { %v5525_v33 = vsel %vm2979_vm14, %v2509_v44, -inf  ;;  %v2967_v56 = vmax.f32 %v2965_v18, %v2966_v24  ;;  %v2973_v6 = vrot.slane %v2972_v22, 4  ;;  %v1631_v5 = vcombine.high %v1302_v43, %v1302_v43 }
 0x2f4   : > { %v5528_v40 = vsel %vm2979_vm14, %v2516_v17, -inf  ;;  %v2955_v15 = vmax.f32 %v2953_v3, %v2954_v59  ;;  %v2961_v27 = vrot.slane %v2960_v7, 2  ;;  %v1638_v49 = vrot.slane %v1302_v43, %v4839_v39 }
 0x2f5   : > { %v5532_v26 = vsel %vm2979_vm14, %v2523_v55, -inf  ;;  %v2968_v19 = vrot.slane %v2967_v56, 2  ;;  %v2974_v12 = vmax.f32 %v2972_v22, %v2973_v6  ;;  %v1645_v45 = vrot.slane %v1631_v5, %v4839_v39 }
 0x2f6   : > { %v2530_v1 = vmax.f32 %v2528_v42, %v2529_v28  ;;  %v2956_v48 = vrot.slane %v2955_v15, 1  ;;  %v2962_v35 = vmax.f32 %v2960_v7, %v2961_v27  ;;  %v1646_v57 = vcombine.high %v1638_v49, %v1638_v49 }
 0x2f7   : > { %v2969_v20 = vmax.f32 %v2967_v56, %v2968_v19  ;;  %v2975_v37 = vrot.slane %v2974_v12, 2  ;;  %v1647_v11 = vcombine.high %v1645_v45, %v1645_v45  ;;  %v2447_v9 = vsel %vm2082_vm13, %v1638_v49, -inf }
 0x2f8   : > { %v2957_v46 = vmax.f32 %v2955_v15, %v2956_v48  ;;  %v2963_v41 = vrot.slane %v2962_v35, 1  ;;  %v2448_v38 = vrot.slane %v2447_v9, 4  ;;  %v2454_v13 = vsel %vm2082_vm13, %v1646_v57, -inf }
 0x2f9   : > { %v2970_v25 = vrot.slane %v2969_v20, 1  ;;  %v2976_v53 = vmax.f32 %v2974_v12, %v2975_v37  ;;  %v2455_v10 = vrot.slane %v2454_v13, 4  ;;  %v2461_v21 = vsel %vm2082_vm13, %v1645_v45, -inf }
 0x2fa   : > { %v2964_v23 = vmax.f32 %v2962_v35, %v2963_v41  ;;  %v2449_v8 = vmax.f32 %v2447_v9, %v2448_v38  ;;  %v2462_v29 = vrot.slane %v2461_v21, 4  ;;  %v5541_v31 = vsel %vm3634_vm1, %v5510_v58, %v5508_v2 }
 0x2fb   : > { %v2971_v0 = vmax.f32 %v2969_v20, %v2970_v25  ;;  %v2977_v30 = vrot.slane %v2976_v53, 1  ;;  %v2456_v14 = vmax.f32 %v2454_v13, %v2455_v10  ;;  %v2468_v4 = vsel %vm2082_vm13, %v1647_v11, -inf }
 0x2fc   : > { %v3074_v47 = vsel %vm2979_vm14, %v2530_v1, -inf  ;;  %v2450_v50 = vrot.slane %v2449_v8, 2  ;;  %v2463_v44 = vmax.f32 %v2461_v21, %v2462_v29  ;;  %v2469_v60 = vrot.slane %v2468_v4, 4 }
 0x2fd   : > { %v5546_v36 = vsel %vm2979_vm14, %v2957_v46, -inf  ;;  %v5549_v18 = vsel %vm2979_vm14, %v2964_v23, -inf  ;;  %v2457_v17 = vrot.slane %v2456_v14, 2  ;;  %v1903_v2 = vcombine.high %v1366_v61, %v1366_v61 }
 0x2fe   : > { %v2451_v58 = vmax.f32 %v2449_v8, %v2450_v50  ;;  %v2464_v42 = vrot.slane %v2463_v44, 2  ;;  %v2470_v3 = vmax.f32 %v2468_v4, %v2469_v60  ;;  %v1910_v62 = vrot.slane %v1366_v61, %v4839_v39 }
 0x2ff   : > { %v5552_v43 = vmax.f32 %v2976_v53, %v2977_v30  ;;  %v5555_v55 = vsel %vm2979_vm14, %v2971_v0, -inf  ;;  %v2458_v24 = vmax.f32 %v2456_v14, %v2457_v17  ;;  %v1917_v22 = vrot.slane %v1903_v2, %v4839_v39 }
 0x300   : > { %v2452_v28 = vrot.slane %v2451_v58, 1  ;;  %v2465_v59 = vmax.f32 %v2463_v44, %v2464_v42  ;;  %v2471_v7 = vrot.slane %v2470_v3, 2  ;;  %v1918_v56 = vcombine.high %v1910_v62, %v1910_v62 }
 0x301   : > { %v2459_v6 = vrot.slane %v2458_v24, 1  ;;  %v1919_v5 = vcombine.high %v1917_v22, %v1917_v22  ;;  %v2895_v15 = vsel %vm2082_vm13, %v1910_v62, -inf  ;;  %v2909_v27 = vsel %vm2082_vm13, %v1917_v22, -inf }
 0x302   : > { %v2453_v49 = vmax.f32 %v2451_v58, %v2452_v28  ;;  %v2466_v19 = vrot.slane %v2465_v59, 1  ;;  %v2472_v12 = vmax.f32 %v2470_v3, %v2471_v7  ;;  %v2896_v45 = vrot.slane %v2895_v15, 4 }
 0x303   : > { %v2460_v1 = vmax.f32 %v2458_v24, %v2459_v6  ;;  %v2902_v48 = vsel %vm2082_vm13, %v1918_v56, -inf  ;;  %v2910_v35 = vrot.slane %v2909_v27, 4  ;;  %v2916_v39 = vsel %vm2082_vm13, %v1919_v5, -inf }
 0x304   : > { %v2467_v57 = vmax.f32 %v2465_v59, %v2466_v19  ;;  %v2473_v20 = vrot.slane %v2472_v12, 1  ;;  %v3064_v37 = vsel %vm2979_vm14, %v2453_v49, -inf  ;;  %v2897_v11 = vmax.f32 %v2895_v15, %v2896_v45 }
 0x305   : > { %v3066_v9 = vmax.f32 %v3064_v37, %v5525_v33  ;;  %v3067_v46 = vsel %vm2979_vm14, %v2460_v1, -inf  ;;  %v2903_v41 = vrot.slane %v2902_v48, 4  ;;  %v2911_v38 = vmax.f32 %v2909_v27, %v2910_v35 }
 0x306   : > { %v2474_v13 = vmax.f32 %v2472_v12, %v2473_v20  ;;  %v3069_v25 = vmax.f32 %v3067_v46, %v5528_v40  ;;  %v3070_v53 = vsel %vm2979_vm14, %v2467_v57, -inf  ;;  %v2898_v10 = vrot.slane %v2897_v11, 2 }
 0x307   : > { %v3072_v21 = vmax.f32 %v3070_v53, %v5532_v26  ;;  %v3207_v23 = vadd.f32 %v5473_v51, %v3066_v9  ;;  %v2904_v8 = vmax.f32 %v2902_v48, %v2903_v41  ;;  %v2912_v29 = vrot.slane %v2911_v38, 2 }
 0x308   : > { %v3073_v61 = vsel %vm2979_vm14, %v2474_v13, -inf  ;;  %v3208_v33 = vadd.f32 %v5473_v51, %v3069_v25  ;;  %v2899_v0 = vmax.f32 %v2897_v11, %v2898_v10  ;;  %v2917_v30 = vrot.slane %v2916_v39, 4 }
 0x309   : > { %v3075_v14 = vmax.f32 %v3073_v61, %v3074_v47  ;;  %v3209_v4 = vadd.f32 %v5473_v51, %v3072_v21  ;;  %v3271_v50 = vmax.f32 %v3207_v23, 0.0  ;;  %v2905_v40 = vrot.slane %v2904_v8, 2 }
 0x30a   : > { %v3272_v44 = vmax.f32 %v3208_v33, 0.0  ;;  %v2900_v60 = vrot.slane %v2899_v0, 1  ;;  %v2913_v17 = vmax.f32 %v2911_v38, %v2912_v29  ;;  %v2918_v2 = vmax.f32 %v2916_v39, %v2917_v30 }
 0x30b   : > { %v3210_v26 = vadd.f32 %v5473_v51, %v3075_v14  ;;  %v3273_v58 = vmax.f32 %v3209_v4, 0.0  ;;  %v3984_v42 = vpack.c.bf16 %v3271_v50, %v3271_v50  ;;  %v2906_v3 = vmax.f32 %v2904_v8, %v2905_v40 }
 0x30c   : > { %v3985_v62 = vpack.c.bf16 %v3272_v44, %v3272_v44  ;;  %v2901_v24 = vmax.f32 %v2899_v0, %v2900_v60  ;;  %v2914_v22 = vrot.slane %v2913_v17, 1  ;;  %v2919_v28 = vrot.slane %v2918_v2, 2 }
 0x30d   : > { %v3274_v59 = vmax.f32 %v3210_v26, 0.0  ;;  %v3986_v7 = vpack.c.bf16 %v3273_v58, %v3273_v58  ;;  %v3591_v47 = vunpack.c.l.b16 %v3984_v42  ;;  %v2907_v56 = vrot.slane %v2906_v3, 1 }
 0x30e   : > { %v3592_v6 = vunpack.c.l.b16 %v3985_v62  ;;  %v2915_v5 = vmax.f32 %v2913_v17, %v2914_v22  ;;  %v2920_v15 = vmax.f32 %v2918_v2, %v2919_v28  ;;  %v3160_v27 = vsel %vm2979_vm14, %v2901_v24, -inf }
 0x30f   : > { %v3987_v49 = vpack.c.bf16 %v3274_v59, %v3274_v59  ;;  %v3593_v19 = vunpack.c.l.b16 %v3986_v7  ;;  %v3682_v12 = vrot.slane %v3591_v47, 4  ;;  %v2908_v45 = vmax.f32 %v2906_v3, %v2907_v56 }
 0x310   : > { %v3684_v1 = vrot.slane %v3592_v6, 3  ;;  %v2921_v48 = vrot.slane %v2920_v15, 1  ;;  %v3162_v35 = vmax.f32 %v3160_v27, %v5546_v36  ;;  %v3166_v39 = vsel %vm2979_vm14, %v2915_v5, -inf }
 0x311   : > { %v3594_v57 = vunpack.c.l.b16 %v3987_v49  ;;  %v3683_v20 = vsel %vm3637_vm2, %v3682_v12, %v5541_v31  ;;  %v3686_v37 = vrot.slane %v3593_v19, 2  ;;  %v3163_v11 = vsel %vm2979_vm14, %v2908_v45, -inf }
 0x312   : > { %v3685_v9 = vsel %vm3640_vm3, %v3684_v1, %v3683_v20  ;;  %v2922_v46 = vmax.f32 %v2920_v15, %v2921_v48  ;;  %v3165_v41 = vmax.f32 %v3163_v11, %v5549_v18  ;;  %v3168_v38 = vmax.f32 %v3166_v39, %v5555_v55 }
 0x313   : > { %v3733_v36 = vsel %vm3628_vm15, %v5519_v54, %v3619_v63  ;;  %v3687_v13 = vsel %vm3643_vm4, %v3686_v37, %v3685_v9  ;;  %v3688_v25 = vrot.slane %v3594_v57, 1  ;;  %v3239_v31 = vadd.f32 %v5473_v51, %v3162_v35 }
 0x314   : > { %v3170_v53 = vsel %vm2979_vm14, %v5552_v43, -inf  ;;  %v3169_v10 = vsel %vm2979_vm14, %v2922_v46, -inf  ;;  %v3240_v18 = vadd.f32 %v5473_v51, %v3165_v41  ;;  %v3241_v55 = vadd.f32 %v5473_v51, %v3168_v38 }
 0x315   : > { %v3689_v16 = vsel %vm3646_vm5, %v3688_v25, %v3687_v13  ;;  %v3171_v21 = vmax.f32 %v3169_v10, %v3170_v53  ;;  %v3303_v23 = vmax.f32 %v3239_v31, 0.0  ;;  %v3736_v63 = vrot.slane %v3622_v32, 5 }
 0x316   : > { %v3749_v54 = vpack.c.b16 %v3689_v16, %v3689_v16  ;;  %v3304_v8 = vmax.f32 %v3240_v18, 0.0  ;;  %v3305_v29 = vmax.f32 %v3241_v55, 0.0  ;;  %v3735_v61 = vsel %vm3631_vm0, %v5522_v52, %v3733_v36 }
 0x317   : > { %v3242_v43 = vadd.f32 %v5473_v51, %v3171_v21  ;;  %v4016_v33 = vpack.c.bf16 %v3303_v23, %v3303_v23  ;;  %v3737_v34 = vsel %vm3634_vm1, %v3736_v63, %v3735_v61 }
 0x318   : > { %3766 = vst.msk [vmem:[%s5036_s8 + $0xc] sm:$0xf] %vm3762_vm6, %v3749_v54  ;;  %v4017_v0 = vpack.c.bf16 %v3304_v8, %v3304_v8  ;;  %v4018_v30 = vpack.c.bf16 %v3305_v29, %v3305_v29 }
 0x319   : > { %v3306_v14 = vmax.f32 %v3242_v43, 0.0  ;;  %v3623_v4 = vunpack.c.l.b16 %v4016_v33 }
 0x31a   : > { %v3624_v50 = vunpack.c.l.b16 %v4017_v0  ;;  %v3625_v40 = vunpack.c.l.b16 %v4018_v30 }
 0x31b   : > { %v4019_v32 = vpack.c.bf16 %v3306_v14, %v3306_v14  ;;  %v3738_v44 = vrot.slane %v3623_v4, 4 }
 0x31c   : > { %v3740_v60 = vrot.slane %v3624_v50, 3  ;;  %v3742_v17 = vrot.slane %v3625_v40, 2 }
 0x31d   : > { %v3626_v2 = vunpack.c.l.b16 %v4019_v32  ;;  %v3739_v52 = vsel %vm3637_vm2, %v3738_v44, %v3737_v34 }
 0x31e   : > { %v3741_v51 = vsel %vm3640_vm3, %v3740_v60, %v3739_v52 }
 0x31f   : > { %v3743_v26 = vsel %vm3643_vm4, %v3742_v17, %v3741_v51  ;;  %v3744_v58 = vrot.slane %v3626_v2, 1 }
 0x321   : > { %v3745_v42 = vsel %vm3646_vm5, %v3744_v58, %v3743_v26 }
 0x322   : > { %v3753_v3 = vpack.c.b16 %v3745_v42, %v3745_v42 }
 0x324   : > { %3770 = vst.msk [vmem:[%s5036_s8 + $0x1c] sm:$0xf] %vm3762_vm6, %v3753_v3 }
 0x325 PF: > { %s13_s12 = sadd.s32 1, %s4144_s12  }
 0x326   : > { %p10_p4 = scmp.ge.s32.totalorder %s13_s12, 4  }
 0x328   :  { %12 = sbr.rel (!%p10_p4) target bundleno = 1 (0x1), region = 62 }

</bundles_post_ra>
